<compile_context>
chip_gen: v7x
topology: tpu7x:2x2x1
jax: 0.10.0
libtpu: 0.0.40
codegen_flags: <defaults>
</compile_context>

<pallas_src>
import jax
import jax.numpy as jnp
from jax.experimental import pallas as pl
from jax.experimental.pallas import tpu as pltpu


# ---------------------------------------------------------------------------
# helpers
# ---------------------------------------------------------------------------
def get_kernel_sizes(dates: int):
    thrsh = (dates - 3) // 2
    result = [1]
    while result[-1] < thrsh:
        result.append(result[-1] * 5)
    del result[-1]
    return result


def _round8(n):
    return -(-n // 8) * 8


# ---------------------------------------------------------------------------
# encoder builder: returns (prepare_params, forward)
# ---------------------------------------------------------------------------
def build_encoder(dates, inputSize, hiddenSize, layerSize, fusionSize,
                  embeddingSize, eps=1e-5):
    ks = get_kernel_sizes(dates)
    nb = len(ks)
    L = dates
    Cin = inputSize
    Hc = hiddenSize
    nl = layerSize
    E0, E1 = embeddingSize
    Hh = E0                                  # GRU hidden == embeddingSize[0]
    kes = [k + 4 for k in ks]                # conv2 kernel with pool folded in
    louts = [L - 2 * k - 2 for k in ks]
    S = sum(louts)
    K2 = sum(ke * Hc for ke in kes)
    G = (2 * nl - 1) * 3 * Hh                # rows of the fused recurrent matmul

    # ---- activation-slab row layout (8-aligned blocks) ----
    p1_offs, off = [], 0
    for k in ks:
        p1_offs.append(off)
        off += _round8(k * Cin)
    P1R = off                                # contraction dim of conv1 matmul
    XG_OFF = P1R                             # time-major GRU input block
    ACT_ROWS = XG_OFF + _round8(Cin)

    # ---- parameter-slab layout (single f32 slab -> single DMA) ----
    par_entries = [
        ("W1", nb * Hc, P1R), ("b1", nb * Hc, 1),
        ("W2", nb * E0, K2), ("b2", nb * E0, 1),
        ("Wih0", 3 * Hh, Cin), ("bih0", 3 * Hh, 1),
        ("Mrec", G, nl * Hh), ("brec", G, 1),
        ("Wcf", S, E1), ("Wrf", nl, E1), ("bias", 1, E1),
        ("gamma", E0, 1), ("beta", E0, 1),
    ]
    PAR, off = {}, 0
    for name, rr, cc in par_entries:
        PAR[name] = (off, rr, cc)
        off += _round8(rr)
    PAR_ROWS = off
    PAR_COLS = max(cc for _, _, cc in par_entries)

    # -------------------- host-side parameter packing ---------------------
    def prepare_params(p):
        P = jax.lax.Precision.HIGHEST
        W1 = jnp.zeros((nb * Hc, P1R), jnp.float32)
        W2 = jnp.zeros((nb * E0, K2), jnp.float32)
        b1s, b2s, c2 = [], [], 0
        for i, ((w1, b1, w2, b2), k) in enumerate(zip(p["conv"], ks)):
            ke = k + 4
            # conv1 im2col weight: W1[h, j*Cin + c] = w1[h, c, j]
            W1i = jnp.transpose(w1, (0, 2, 1)).reshape(Hc, k * Cin)
            W1 = W1.at[i * Hc:(i + 1) * Hc,
                       p1_offs[i]:p1_offs[i] + k * Cin].set(W1i)
            b1s.append(b1.reshape(Hc, 1))
            # fold AvgPool1d(5,1) into conv2: 5-tap moving average of taps
            w2e = jnp.zeros((E0, Hc, ke), jnp.float32)
            for m in range(5):
                w2e = w2e.at[:, :, m:m + k].add(0.2 * w2)
            W2i = jnp.transpose(w2e, (0, 2, 1)).reshape(E0, ke * Hc)
            W2 = W2.at[i * E0:(i + 1) * E0, c2:c2 + ke * Hc].set(W2i)
            c2 += ke * Hc
            b2s.append(b2.reshape(E0, 1))
        b1bd = jnp.concatenate(b1s, axis=0)
        b2bd = jnp.concatenate(b2s, axis=0)

        # GRU: layer-0 input projection + wavefront block recurrent matrix
        wih0, _, bih0, _ = p["gru"][0]
        Mrec = jnp.zeros((G, nl * Hh), jnp.float32)
        brec = jnp.zeros((G, 1), jnp.float32)
        for l, (wih, whh, bih, bhh) in enumerate(p["gru"]):
            Mrec = Mrec.at[l * 3 * Hh:(l + 1) * 3 * Hh,
                           l * Hh:(l + 1) * Hh].set(whh)
            brec = brec.at[l * 3 * Hh:(l + 1) * 3 * Hh, 0].set(bhh)
            if l >= 1:
                r0 = (nl + l - 1) * 3 * Hh
                Mrec = Mrec.at[r0:r0 + 3 * Hh, (l - 1) * Hh:l * Hh].set(wih)
                brec = brec.at[r0:r0 + 3 * Hh, 0].set(bih)

        # fold cnnFusion / rnnFusion / finalFusion (exact: all linear)
        F = p["wc"].shape[0]
        WfcT = p["wf"][:, :F].T
        WfrT = p["wf"][:, F:].T
        Wcf = jnp.dot(p["wc"].T, WfcT, precision=P)           # (S,  E1)
        Wrf = jnp.dot(p["wr"].T, WfrT, precision=P)           # (nl, E1)
        bias = (jnp.dot(p["bc"][None, :], WfcT, precision=P)
                + jnp.dot(p["br"][None, :], WfrT, precision=P)
                + p["bf"][None, :])                           # (1, E1)

        slab = jnp.zeros((PAR_ROWS, PAR_COLS), jnp.float32)

        def put(s, name, arr):
            r0, rr, cc = PAR[name]
            assert arr.shape == (rr, cc), (name, arr.shape, (rr, cc))
            return s.at[r0:r0 + rr, 0:cc].set(arr.astype(jnp.float32))

        slab = put(slab, "W1", W1)
        slab = put(slab, "b1", b1bd)
        slab = put(slab, "W2", W2)
        slab = put(slab, "b2", b2bd)
        slab = put(slab, "Wih0", wih0)
        slab = put(slab, "bih0", bih0.reshape(3 * Hh, 1))
        slab = put(slab, "Mrec", Mrec)
        slab = put(slab, "brec", brec)
        slab = put(slab, "Wcf", Wcf)
        slab = put(slab, "Wrf", Wrf)
        slab = put(slab, "bias", bias)
        slab = put(slab, "gamma", p["gamma"].reshape(E0, 1))
        slab = put(slab, "beta", p["beta"].reshape(E0, 1))
        return slab

    # ------------------------------ forward --------------------------------
    def _forward(x, par):
        B = x.shape[0]
        T = L
        BL = B * L
        WX = BL + max(kes) - 1        # extra cols so shifted slices stay in range

        # activation slab: conv1 im2col patches (hoisted) + time-major x
        act = jnp.zeros((ACT_ROWS, WX), jnp.float32)
        for i, k in enumerate(ks):
            blocks = [jnp.pad(x[:, :, j:], ((0, 0), (0, 0), (0, j)))
                      for j in range(k)]
            p1 = (jnp.concatenate(blocks, axis=1)
                  .transpose(1, 0, 2).reshape(k * Cin, BL))
            act = act.at[p1_offs[i]:p1_offs[i] + k * Cin, 0:BL].set(p1)
        xgT = jnp.transpose(x, (1, 2, 0)).reshape(Cin, BL)    # [c, t*B + b]
        act = act.at[XG_OFF:XG_OFF + Cin, 0:BL].set(xgT)

        def kernel(act_ref, par_ref, o_ref):
            f32 = jnp.float32

            def getp(name):
                r0, rr, cc = PAR[name]
                return par_ref[r0:r0 + rr, 0:cc]

            # ------------- CNN: 2 MXU matmuls for all branches -------------
            p1 = act_ref[0:P1R, :]                             # (P1R, WX)
            h1 = jnp.maximum(
                jnp.dot(getp("W1"), p1, preferred_element_type=f32)
                + getp("b1"), 0.0)                             # (nb*Hc, WX)
            rows = []
            for i in range(nb):
                h1i = h1[i * Hc:(i + 1) * Hc, :]
                for jj in range(kes[i]):
                    rows.append(h1i[:, jj:jj + BL])
            p2 = jnp.concatenate(rows, axis=0)                 # (K2, BL)
            conv = (jnp.dot(getp("W2"), p2, preferred_element_type=f32)
                    + getp("b2"))                              # (nb*E0, BL)

            # ---------------- GRU: wavefront over layers -------------------
            xg = act_ref[XG_OFF:XG_OFF + Cin, 0:BL]            # (Cin, T*B)
            gi0 = (jnp.dot(getp("Wih0"), xg, preferred_element_type=f32)
                   + getp("bih0"))                             # (3Hh, T*B)
            Mrec = getp("Mrec")
            brec = getp("brec")
            hS = jnp.zeros((nl * Hh, B), f32)
            for s in range(T + nl - 1):
                if s == 0:
                    gall = brec + jnp.zeros((G, B), f32)       # hS == 0
                else:
                    gall = (jnp.dot(Mrec, hS, preferred_element_type=f32)
                            + brec)                            # (G, B)
                newh = []
                for l in range(nl):
                    t = s - l
                    hp = hS[l * Hh:(l + 1) * Hh, :]
                    if t < 0 or t >= T:
                        newh.append(hp)
                        continue
                    if l == 0:
                        gi = gi0[:, t * B:(t + 1) * B]
                    else:
                        r0 = (nl + l - 1) * 3 * Hh
                        gi = gall[r0:r0 + 3 * Hh, :]
                    gh = gall[l * 3 * Hh:(l + 1) * 3 * Hh, :]
                    r = jax.nn.sigmoid(gi[0:Hh] + gh[0:Hh])
                    z = jax.nn.sigmoid(gi[Hh:2 * Hh] + gh[Hh:2 * Hh])
                    n = jnp.tanh(gi[2 * Hh:3 * Hh] + r * gh[2 * Hh:3 * Hh])
                    newh.append((1.0 - z) * n + z * hp)
                hS = jnp.concatenate(newh, axis=0) if nl > 1 else newh[0]

            # ---------- fused cnnFusion + rnnFusion + finalFusion ----------
            Wcf = getp("Wcf")
            Wrf = getp("Wrf")
            emb = jnp.zeros((B * E0, E1), f32) + getp("bias")  # (B*E0, E1)
            coff = 0
            for i in range(nb):
                lo = louts[i]
                cnn_i = jnp.concatenate(
                    [conv[i * E0:(i + 1) * E0, b * L:b * L + lo]
                     for b in range(B)], axis=0)               # (B*E0, lo)
                emb = emb + jnp.dot(cnn_i, Wcf[coff:coff + lo, :],
                                    preferred_element_type=f32)
                coff += lo
            for l in range(nl):
                hcol = jnp.concatenate(
                    [hS[l * Hh:(l + 1) * Hh, b:b + 1] for b in range(B)],
                    axis=0)                                    # (B*E0, 1)
                emb = emb + hcol * Wrf[l:l + 1, :]

            # ------------- BatchNorm1d (batch statistics) ------------------
            inv_n = 1.0 / float(B * E1)
            rsum = jnp.sum(emb, axis=1, keepdims=True)         # (B*E0, 1)
            tot = rsum[0:E0, :]
            for b in range(1, B):
                tot = tot + rsum[b * E0:(b + 1) * E0, :]
            mean = tot * inv_n                                 # (E0, 1)
            cent = emb - jnp.concatenate([mean] * B, axis=0)
            ssum = jnp.sum(cent * cent, axis=1, keepdims=True)
            tot2 = ssum[0:E0, :]
            for b in range(1, B):
                tot2 = tot2 + ssum[b * E0:(b + 1) * E0, :]
            inv_std = jax.lax.rsqrt(tot2 * inv_n + eps)        # (E0, 1)
            scale = jnp.concatenate([inv_std * getp("gamma")] * B, axis=0)
            shift = jnp.concatenate([getp("beta")] * B, axis=0)
            o_ref[...] = cent * scale + shift                  # single store

        vmem = pl.BlockSpec(memory_space=pltpu.MemorySpace.VMEM)
        out = pl.pallas_call(
            kernel,
            out_shape=jax.ShapeDtypeStruct((B * E0, E1), jnp.float32),
            in_specs=[vmem, vmem],
            out_specs=vmem,
        )(act, par)
        return out.reshape(B, E0, E1)

    return prepare_params, jax.jit(_forward)


# ---------------------------------------------------------------------------
# parameter init (deterministic, synthetic — PyTorch-style layouts)
# ---------------------------------------------------------------------------
def init_params(key, dates, inputSize, hiddenSize, layerSize, fusionSize,
                embeddingSize):
    e0, e1 = embeddingSize
    ks = get_kernel_sizes(dates)
    sizes = [dates - 2 * k - 2 for k in ks]
    keys = iter(jax.random.split(key, 128))

    def u(shape, scale):
        return jax.random.uniform(next(keys), shape, jnp.float32, -scale, scale)

    conv = []
    for k in ks:
        s1 = 1.0 / (inputSize * k) ** 0.5
        s2 = 1.0 / (hiddenSize * k) ** 0.5
        conv.append((u((hiddenSize, inputSize, k), s1), u((hiddenSize,), s1),
                     u((e0, hiddenSize, k), s2), u((e0,), s2)))

    gru = []
    for l in range(layerSize):
        in_l = inputSize if l == 0 else e0
        s = 1.0 / e0 ** 0.5
        gru.append((u((3 * e0, in_l), s), u((3 * e0, e0), s),
                    u((3 * e0,), s), u((3 * e0,), s)))

    S = sum(sizes)
    s_c = 1.0 / S ** 0.5
    s_r = 1.0 / layerSize ** 0.5
    s_f = 1.0 / (2 * fusionSize) ** 0.5
    return dict(
        ks=ks, conv=conv, gru=gru,
        wc=u((fusionSize, S), s_c), bc=u((fusionSize,), s_c),
        wr=u((fusionSize, layerSize), s_r), br=u((fusionSize,), s_r),
        wf=u((e1, 2 * fusionSize), s_f), bf=u((e1,), s_f),
        gamma=jnp.ones((e0,), jnp.float32), beta=jnp.zeros((e0,), jnp.float32),
    )


# ---------------------------------------------------------------------------
# pure-JAX reference of the ORIGINAL (unfolded) PyTorch computation
# ---------------------------------------------------------------------------
def reference_forward(x, p, eps=1e-5):
    P = jax.lax.Precision.HIGHEST
    B, Cin, L = x.shape

    feats = []
    for (w1, b1, w2, b2) in p["conv"]:
        Hc, _, k = w1.shape
        L1 = L - k + 1
        h1 = sum(jnp.einsum("hc,bcl->bhl", w1[:, :, j], x[:, :, j:j + L1],
                            precision=P) for j in range(k)) + b1[None, :, None]
        h1 = jnp.maximum(h1, 0.0)
        L2 = L1 - k + 1
        h2 = sum(jnp.einsum("eh,bhl->bel", w2[:, :, j], h1[:, :, j:j + L2],
                            precision=P) for j in range(k)) + b2[None, :, None]
        Lout = L2 - 4
        feats.append(sum(h2[:, :, j:j + Lout] for j in range(5)) / 5.0)
    cnn_cat = jnp.concatenate(feats, axis=2)              # (B, E0, S)

    xb = jnp.transpose(x, (0, 2, 1))                      # (B, T, Cin)
    H = p["gru"][0][1].shape[1]
    seq = xb
    h_layers = []
    for (wih, whh, bih, bhh) in p["gru"]:
        h = jnp.zeros((B, H), jnp.float32)
        outs = []
        for t in range(seq.shape[1]):
            xt = seq[:, t, :]
            gi = jnp.dot(xt, wih.T, precision=P) + bih[None, :]
            gh = jnp.dot(h, whh.T, precision=P) + bhh[None, :]
            r = jax.nn.sigmoid(gi[:, :H] + gh[:, :H])
            z = jax.nn.sigmoid(gi[:, H:2 * H] + gh[:, H:2 * H])
            n = jnp.tanh(gi[:, 2 * H:] + r * gh[:, 2 * H:])
            h = (1.0 - z) * n + z * h
            outs.append(h)
        seq = jnp.stack(outs, axis=1)
        h_layers.append(h)
    h_rnn = jnp.stack(h_layers, axis=2)                   # (B, H, Lyr)

    cf = (jnp.einsum("bes,fs->bef", cnn_cat, p["wc"], precision=P)
          + p["bc"][None, None, :])
    rf = (jnp.einsum("bel,fl->bef", h_rnn, p["wr"], precision=P)
          + p["br"][None, None, :])
    ff = jnp.concatenate([cf, rf], axis=2)
    emb = (jnp.einsum("bef,gf->beg", ff, p["wf"], precision=P)
           + p["bf"][None, None, :])

    mean = jnp.mean(emb, axis=(0, 2), keepdims=True)
    var = jnp.mean((emb - mean) ** 2, axis=(0, 2), keepdims=True)
    return ((emb - mean) * jax.lax.rsqrt(var + eps)
            * p["gamma"][None, :, None] + p["beta"][None, :, None])


# ---------------------------------------------------------------------------
if __name__ == "__main__":
    dates, inputSize, hiddenSize, layerSize, fusionSize = 16, 4, 8, 2, 16
    embeddingSize = (8, 8)
    batch = 2

    key = jax.random.PRNGKey(0)
    pkey, xkey = jax.random.split(key)
    params = init_params(pkey, dates, inputSize, hiddenSize, layerSize,
                         fusionSize, embeddingSize)
    x = jax.random.normal(xkey, (batch, inputSize, dates), jnp.float32)

    prepare_params, encoder_forward = build_encoder(
        dates, inputSize, hiddenSize, layerSize, fusionSize, embeddingSize)
    par = prepare_params(params)

    out = jax.block_until_ready(encoder_forward(x, par))

    ref = reference_forward(x, params)
    assert out.shape == (batch, embeddingSize[0], embeddingSize[1]), out.shape
    max_diff = float(jnp.max(jnp.abs(out - ref)))
    assert jnp.allclose(out, ref, atol=3e-3, rtol=3e-3), max_diff

    print("KERNEL_OK")
</pallas_src>

<mosaic_0001>
module attributes {stable_mosaic.version = 11 : i64} {
  func.func @kernel(%arg0: memref<40x40xf32, #tpu.memory_space<vmem>>, %arg1: memref<304x112xf32, #tpu.memory_space<vmem>>, %arg2: memref<16x8xf32, #tpu.memory_space<vmem>>) attributes {dimension_semantics = [], scalar_prefetch = 0 : i64, scratch_operands = 0 : i64, tpu.core_type = #tpu.core_type<tc>} {
    %c0 = arith.constant 0 : index
    %c0_0 = arith.constant 0 : index
    %0 = vector.load %arg0[%c0, %c0_0] : memref<40x40xf32, #tpu.memory_space<vmem>>, vector<32x40xf32>
    %c0_1 = arith.constant 0 : index
    %c0_2 = arith.constant 0 : index
    %1 = vector.load %arg1[%c0_1, %c0_2] : memref<304x112xf32, #tpu.memory_space<vmem>>, vector<16x32xf32>
    %cst = arith.constant dense<0.000000e+00> : vector<16x40xf32>
    %2 = tpu.matmul %1, %0, %cst {dimension_numbers = #tpu.dot_dimension_numbers<[1], [0], [0], [1], [0, 0, 1, 1], [], []>} : vector<16x32xf32>, vector<32x40xf32>, vector<16x40xf32> -> vector<16x40xf32>
    %c16 = arith.constant 16 : index
    %c0_3 = arith.constant 0 : index
    %3 = vector.load %arg1[%c16, %c0_3] : memref<304x112xf32, #tpu.memory_space<vmem>>, vector<16x1xf32>
    %4 = vector.broadcast %3 : vector<16x1xf32> to vector<16x40xf32>
    %5 = arith.addf %2, %4 : vector<16x40xf32>
    %cst_4 = arith.constant 0.000000e+00 : f32
    %6 = vector.broadcast %cst_4 : f32 to vector<16x40xf32>
    %7 = arith.maximumf %5, %6 : vector<16x40xf32>
    %8 = vector.extract_strided_slice %7 {offsets = [0, 0], sizes = [8, 40], strides = [1, 1]} : vector<16x40xf32> to vector<8x40xf32>
    %9 = vector.extract_strided_slice %8 {offsets = [0, 0], sizes = [8, 32], strides = [1, 1]} : vector<8x40xf32> to vector<8x32xf32>
    %10 = vector.extract_strided_slice %8 {offsets = [0, 1], sizes = [8, 32], strides = [1, 1]} : vector<8x40xf32> to vector<8x32xf32>
    %11 = vector.extract_strided_slice %8 {offsets = [0, 2], sizes = [8, 32], strides = [1, 1]} : vector<8x40xf32> to vector<8x32xf32>
    %12 = vector.extract_strided_slice %8 {offsets = [0, 3], sizes = [8, 32], strides = [1, 1]} : vector<8x40xf32> to vector<8x32xf32>
    %13 = vector.extract_strided_slice %8 {offsets = [0, 4], sizes = [8, 32], strides = [1, 1]} : vector<8x40xf32> to vector<8x32xf32>
    %14 = vector.extract_strided_slice %7 {offsets = [8, 0], sizes = [8, 40], strides = [1, 1]} : vector<16x40xf32> to vector<8x40xf32>
    %15 = vector.extract_strided_slice %14 {offsets = [0, 0], sizes = [8, 32], strides = [1, 1]} : vector<8x40xf32> to vector<8x32xf32>
    %16 = vector.extract_strided_slice %14 {offsets = [0, 1], sizes = [8, 32], strides = [1, 1]} : vector<8x40xf32> to vector<8x32xf32>
    %17 = vector.extract_strided_slice %14 {offsets = [0, 2], sizes = [8, 32], strides = [1, 1]} : vector<8x40xf32> to vector<8x32xf32>
    %18 = vector.extract_strided_slice %14 {offsets = [0, 3], sizes = [8, 32], strides = [1, 1]} : vector<8x40xf32> to vector<8x32xf32>
    %19 = vector.extract_strided_slice %14 {offsets = [0, 4], sizes = [8, 32], strides = [1, 1]} : vector<8x40xf32> to vector<8x32xf32>
    %20 = vector.extract_strided_slice %14 {offsets = [0, 5], sizes = [8, 32], strides = [1, 1]} : vector<8x40xf32> to vector<8x32xf32>
    %21 = vector.extract_strided_slice %14 {offsets = [0, 6], sizes = [8, 32], strides = [1, 1]} : vector<8x40xf32> to vector<8x32xf32>
    %22 = vector.extract_strided_slice %14 {offsets = [0, 7], sizes = [8, 32], strides = [1, 1]} : vector<8x40xf32> to vector<8x32xf32>
    %23 = vector.extract_strided_slice %14 {offsets = [0, 8], sizes = [8, 32], strides = [1, 1]} : vector<8x40xf32> to vector<8x32xf32>
    %24 = tpu.concatenate %9, %10, %11, %12, %13, %15, %16, %17, %18, %19, %20, %21, %22, %23 in 0 : vector<8x32xf32>, vector<8x32xf32>, vector<8x32xf32>, vector<8x32xf32>, vector<8x32xf32>, vector<8x32xf32>, vector<8x32xf32>, vector<8x32xf32>, vector<8x32xf32>, vector<8x32xf32>, vector<8x32xf32>, vector<8x32xf32>, vector<8x32xf32>, vector<8x32xf32> -> vector<112x32xf32>
    %c32 = arith.constant 32 : index
    %c0_5 = arith.constant 0 : index
    %25 = vector.load %arg1[%c32, %c0_5] : memref<304x112xf32, #tpu.memory_space<vmem>>, vector<16x112xf32>
    %cst_6 = arith.constant dense<0.000000e+00> : vector<16x32xf32>
    %26 = tpu.matmul %25, %24, %cst_6 {dimension_numbers = #tpu.dot_dimension_numbers<[1], [0], [0], [1], [0, 0, 1, 1], [], []>} : vector<16x112xf32>, vector<112x32xf32>, vector<16x32xf32> -> vector<16x32xf32>
    %c48 = arith.constant 48 : index
    %c0_7 = arith.constant 0 : index
    %27 = vector.load %arg1[%c48, %c0_7] : memref<304x112xf32, #tpu.memory_space<vmem>>, vector<16x1xf32>
    %28 = vector.broadcast %27 : vector<16x1xf32> to vector<16x32xf32>
    %29 = arith.addf %26, %28 : vector<16x32xf32>
    %c32_8 = arith.constant 32 : index
    %c0_9 = arith.constant 0 : index
    %30 = vector.load %arg0[%c32_8, %c0_9] : memref<40x40xf32, #tpu.memory_space<vmem>>, vector<4x32xf32>
    %c64 = arith.constant 64 : index
    %c0_10 = arith.constant 0 : index
    %31 = vector.load %arg1[%c64, %c0_10] : memref<304x112xf32, #tpu.memory_space<vmem>>, vector<24x4xf32>
    %cst_11 = arith.constant dense<0.000000e+00> : vector<24x32xf32>
    %32 = tpu.matmul %31, %30, %cst_11 {dimension_numbers = #tpu.dot_dimension_numbers<[1], [0], [0], [1], [0, 0, 1, 1], [], []>} : vector<24x4xf32>, vector<4x32xf32>, vector<24x32xf32> -> vector<24x32xf32>
    %c88 = arith.constant 88 : index
    %c0_12 = arith.constant 0 : index
    %33 = vector.load %arg1[%c88, %c0_12] : memref<304x112xf32, #tpu.memory_space<vmem>>, vector<24x1xf32>
    %34 = vector.broadcast %33 : vector<24x1xf32> to vector<24x32xf32>
    %35 = arith.addf %32, %34 : vector<24x32xf32>
    %c112 = arith.constant 112 : index
    %c0_13 = arith.constant 0 : index
    %36 = vector.load %arg1[%c112, %c0_13] : memref<304x112xf32, #tpu.memory_space<vmem>>, vector<72x16xf32>
    %c184 = arith.constant 184 : index
    %c0_14 = arith.constant 0 : index
    %37 = vector.load %arg1[%c184, %c0_14] : memref<304x112xf32, #tpu.memory_space<vmem>>, vector<72x1xf32>
    %cst_15 = arith.constant 0.000000e+00 : f32
    %38 = vector.broadcast %cst_15 : f32 to vector<16x2xf32>
    %cst_16 = arith.constant 0.000000e+00 : f32
    %39 = vector.broadcast %cst_16 : f32 to vector<72x2xf32>
    %40 = vector.broadcast %37 : vector<72x1xf32> to vector<72x2xf32>
    %41 = arith.addf %40, %39 : vector<72x2xf32>
    %42 = vector.extract_strided_slice %38 {offsets = [0, 0], sizes = [8, 2], strides = [1, 1]} : vector<16x2xf32> to vector<8x2xf32>
    %43 = vector.extract_strided_slice %35 {offsets = [0, 0], sizes = [24, 2], strides = [1, 1]} : vector<24x32xf32> to vector<24x2xf32>
    %44 = vector.extract_strided_slice %41 {offsets = [0, 0], sizes = [24, 2], strides = [1, 1]} : vector<72x2xf32> to vector<24x2xf32>
    %45 = vector.extract_strided_slice %43 {offsets = [0, 0], sizes = [8, 2], strides = [1, 1]} : vector<24x2xf32> to vector<8x2xf32>
    %46 = vector.extract_strided_slice %44 {offsets = [0, 0], sizes = [8, 2], strides = [1, 1]} : vector<24x2xf32> to vector<8x2xf32>
    %47 = arith.addf %45, %46 : vector<8x2xf32>
    %48 = arith.negf %47 : vector<8x2xf32>
    %49 = math.exp %48 : vector<8x2xf32>
    %cst_17 = arith.constant 1.000000e+00 : f32
    %50 = vector.broadcast %cst_17 : f32 to vector<8x2xf32>
    %51 = arith.addf %50, %49 : vector<8x2xf32>
    %52 = arith.divf %50, %51 : vector<8x2xf32>
    %53 = vector.extract_strided_slice %43 {offsets = [8, 0], sizes = [8, 2], strides = [1, 1]} : vector<24x2xf32> to vector<8x2xf32>
    %54 = vector.extract_strided_slice %44 {offsets = [8, 0], sizes = [8, 2], strides = [1, 1]} : vector<24x2xf32> to vector<8x2xf32>
    %55 = arith.addf %53, %54 : vector<8x2xf32>
    %56 = arith.negf %55 : vector<8x2xf32>
    %57 = math.exp %56 : vector<8x2xf32>
    %cst_18 = arith.constant 1.000000e+00 : f32
    %58 = vector.broadcast %cst_18 : f32 to vector<8x2xf32>
    %59 = arith.addf %58, %57 : vector<8x2xf32>
    %60 = arith.divf %58, %59 : vector<8x2xf32>
    %61 = vector.extract_strided_slice %43 {offsets = [16, 0], sizes = [8, 2], strides = [1, 1]} : vector<24x2xf32> to vector<8x2xf32>
    %62 = vector.extract_strided_slice %44 {offsets = [16, 0], sizes = [8, 2], strides = [1, 1]} : vector<24x2xf32> to vector<8x2xf32>
    %63 = arith.mulf %52, %62 : vector<8x2xf32>
    %64 = arith.addf %61, %63 : vector<8x2xf32>
    %65 = math.tanh %64 : vector<8x2xf32>
    %cst_19 = arith.constant 1.000000e+00 : f32
    %66 = vector.broadcast %cst_19 : f32 to vector<8x2xf32>
    %67 = arith.subf %66, %60 : vector<8x2xf32>
    %68 = arith.mulf %67, %65 : vector<8x2xf32>
    %69 = arith.mulf %60, %42 : vector<8x2xf32>
    %70 = arith.addf %68, %69 : vector<8x2xf32>
    %71 = vector.extract_strided_slice %38 {offsets = [8, 0], sizes = [8, 2], strides = [1, 1]} : vector<16x2xf32> to vector<8x2xf32>
    %72 = tpu.concatenate %70, %71 in 0 : vector<8x2xf32>, vector<8x2xf32> -> vector<16x2xf32>
    %cst_20 = arith.constant dense<0.000000e+00> : vector<72x2xf32>
    %73 = tpu.matmul %36, %72, %cst_20 {dimension_numbers = #tpu.dot_dimension_numbers<[1], [0], [0], [1], [0, 0, 1, 1], [], []>} : vector<72x16xf32>, vector<16x2xf32>, vector<72x2xf32> -> vector<72x2xf32>
    %74 = vector.broadcast %37 : vector<72x1xf32> to vector<72x2xf32>
    %75 = arith.addf %73, %74 : vector<72x2xf32>
    %76 = vector.extract_strided_slice %72 {offsets = [0, 0], sizes = [8, 2], strides = [1, 1]} : vector<16x2xf32> to vector<8x2xf32>
    %77 = vector.extract_strided_slice %35 {offsets = [0, 2], sizes = [24, 2], strides = [1, 1]} : vector<24x32xf32> to vector<24x2xf32>
    %78 = vector.extract_strided_slice %75 {offsets = [0, 0], sizes = [24, 2], strides = [1, 1]} : vector<72x2xf32> to vector<24x2xf32>
    %79 = vector.extract_strided_slice %77 {offsets = [0, 0], sizes = [8, 2], strides = [1, 1]} : vector<24x2xf32> to vector<8x2xf32>
    %80 = vector.extract_strided_slice %78 {offsets = [0, 0], sizes = [8, 2], strides = [1, 1]} : vector<24x2xf32> to vector<8x2xf32>
    %81 = arith.addf %79, %80 : vector<8x2xf32>
    %82 = arith.negf %81 : vector<8x2xf32>
    %83 = math.exp %82 : vector<8x2xf32>
    %cst_21 = arith.constant 1.000000e+00 : f32
    %84 = vector.broadcast %cst_21 : f32 to vector<8x2xf32>
    %85 = arith.addf %84, %83 : vector<8x2xf32>
    %86 = arith.divf %84, %85 : vector<8x2xf32>
    %87 = vector.extract_strided_slice %77 {offsets = [8, 0], sizes = [8, 2], strides = [1, 1]} : vector<24x2xf32> to vector<8x2xf32>
    %88 = vector.extract_strided_slice %78 {offsets = [8, 0], sizes = [8, 2], strides = [1, 1]} : vector<24x2xf32> to vector<8x2xf32>
    %89 = arith.addf %87, %88 : vector<8x2xf32>
    %90 = arith.negf %89 : vector<8x2xf32>
    %91 = math.exp %90 : vector<8x2xf32>
    %cst_22 = arith.constant 1.000000e+00 : f32
    %92 = vector.broadcast %cst_22 : f32 to vector<8x2xf32>
    %93 = arith.addf %92, %91 : vector<8x2xf32>
    %94 = arith.divf %92, %93 : vector<8x2xf32>
    %95 = vector.extract_strided_slice %77 {offsets = [16, 0], sizes = [8, 2], strides = [1, 1]} : vector<24x2xf32> to vector<8x2xf32>
    %96 = vector.extract_strided_slice %78 {offsets = [16, 0], sizes = [8, 2], strides = [1, 1]} : vector<24x2xf32> to vector<8x2xf32>
    %97 = arith.mulf %86, %96 : vector<8x2xf32>
    %98 = arith.addf %95, %97 : vector<8x2xf32>
    %99 = math.tanh %98 : vector<8x2xf32>
    %cst_23 = arith.constant 1.000000e+00 : f32
    %100 = vector.broadcast %cst_23 : f32 to vector<8x2xf32>
    %101 = arith.subf %100, %94 : vector<8x2xf32>
    %102 = arith.mulf %101, %99 : vector<8x2xf32>
    %103 = arith.mulf %94, %76 : vector<8x2xf32>
    %104 = arith.addf %102, %103 : vector<8x2xf32>
    %105 = vector.extract_strided_slice %72 {offsets = [8, 0], sizes = [8, 2], strides = [1, 1]} : vector<16x2xf32> to vector<8x2xf32>
    %106 = vector.extract_strided_slice %75 {offsets = [48, 0], sizes = [24, 2], strides = [1, 1]} : vector<72x2xf32> to vector<24x2xf32>
    %107 = vector.extract_strided_slice %75 {offsets = [24, 0], sizes = [24, 2], strides = [1, 1]} : vector<72x2xf32> to vector<24x2xf32>
    %108 = vector.extract_strided_slice %106 {offsets = [0, 0], sizes = [8, 2], strides = [1, 1]} : vector<24x2xf32> to vector<8x2xf32>
    %109 = vector.extract_strided_slice %107 {offsets = [0, 0], sizes = [8, 2], strides = [1, 1]} : vector<24x2xf32> to vector<8x2xf32>
    %110 = arith.addf %108, %109 : vector<8x2xf32>
    %111 = arith.negf %110 : vector<8x2xf32>
    %112 = math.exp %111 : vector<8x2xf32>
    %cst_24 = arith.constant 1.000000e+00 : f32
    %113 = vector.broadcast %cst_24 : f32 to vector<8x2xf32>
    %114 = arith.addf %113, %112 : vector<8x2xf32>
    %115 = arith.divf %113, %114 : vector<8x2xf32>
    %116 = vector.extract_strided_slice %106 {offsets = [8, 0], sizes = [8, 2], strides = [1, 1]} : vector<24x2xf32> to vector<8x2xf32>
    %117 = vector.extract_strided_slice %107 {offsets = [8, 0], sizes = [8, 2], strides = [1, 1]} : vector<24x2xf32> to vector<8x2xf32>
    %118 = arith.addf %116, %117 : vector<8x2xf32>
    %119 = arith.negf %118 : vector<8x2xf32>
    %120 = math.exp %119 : vector<8x2xf32>
    %cst_25 = arith.constant 1.000000e+00 : f32
    %121 = vector.broadcast %cst_25 : f32 to vector<8x2xf32>
    %122 = arith.addf %121, %120 : vector<8x2xf32>
    %123 = arith.divf %121, %122 : vector<8x2xf32>
    %124 = vector.extract_strided_slice %106 {offsets = [16, 0], sizes = [8, 2], strides = [1, 1]} : vector<24x2xf32> to vector<8x2xf32>
    %125 = vector.extract_strided_slice %107 {offsets = [16, 0], sizes = [8, 2], strides = [1, 1]} : vector<24x2xf32> to vector<8x2xf32>
    %126 = arith.mulf %115, %125 : vector<8x2xf32>
    %127 = arith.addf %124, %126 : vector<8x2xf32>
    %128 = math.tanh %127 : vector<8x2xf32>
    %cst_26 = arith.constant 1.000000e+00 : f32
    %129 = vector.broadcast %cst_26 : f32 to vector<8x2xf32>
    %130 = arith.subf %129, %123 : vector<8x2xf32>
    %131 = arith.mulf %130, %128 : vector<8x2xf32>
    %132 = arith.mulf %123, %105 : vector<8x2xf32>
    %133 = arith.addf %131, %132 : vector<8x2xf32>
    %134 = tpu.concatenate %104, %133 in 0 : vector<8x2xf32>, vector<8x2xf32> -> vector<16x2xf32>
    %cst_27 = arith.constant dense<0.000000e+00> : vector<72x2xf32>
    %135 = tpu.matmul %36, %134, %cst_27 {dimension_numbers = #tpu.dot_dimension_numbers<[1], [0], [0], [1], [0, 0, 1, 1], [], []>} : vector<72x16xf32>, vector<16x2xf32>, vector<72x2xf32> -> vector<72x2xf32>
    %136 = vector.broadcast %37 : vector<72x1xf32> to vector<72x2xf32>
    %137 = arith.addf %135, %136 : vector<72x2xf32>
    %138 = vector.extract_strided_slice %134 {offsets = [0, 0], sizes = [8, 2], strides = [1, 1]} : vector<16x2xf32> to vector<8x2xf32>
    %139 = vector.extract_strided_slice %35 {offsets = [0, 4], sizes = [24, 2], strides = [1, 1]} : vector<24x32xf32> to vector<24x2xf32>
    %140 = vector.extract_strided_slice %137 {offsets = [0, 0], sizes = [24, 2], strides = [1, 1]} : vector<72x2xf32> to vector<24x2xf32>
    %141 = vector.extract_strided_slice %139 {offsets = [0, 0], sizes = [8, 2], strides = [1, 1]} : vector<24x2xf32> to vector<8x2xf32>
    %142 = vector.extract_strided_slice %140 {offsets = [0, 0], sizes = [8, 2], strides = [1, 1]} : vector<24x2xf32> to vector<8x2xf32>
    %143 = arith.addf %141, %142 : vector<8x2xf32>
    %144 = arith.negf %143 : vector<8x2xf32>
    %145 = math.exp %144 : vector<8x2xf32>
    %cst_28 = arith.constant 1.000000e+00 : f32
    %146 = vector.broadcast %cst_28 : f32 to vector<8x2xf32>
    %147 = arith.addf %146, %145 : vector<8x2xf32>
    %148 = arith.divf %146, %147 : vector<8x2xf32>
    %149 = vector.extract_strided_slice %139 {offsets = [8, 0], sizes = [8, 2], strides = [1, 1]} : vector<24x2xf32> to vector<8x2xf32>
    %150 = vector.extract_strided_slice %140 {offsets = [8, 0], sizes = [8, 2], strides = [1, 1]} : vector<24x2xf32> to vector<8x2xf32>
    %151 = arith.addf %149, %150 : vector<8x2xf32>
    %152 = arith.negf %151 : vector<8x2xf32>
    %153 = math.exp %152 : vector<8x2xf32>
    %cst_29 = arith.constant 1.000000e+00 : f32
    %154 = vector.broadcast %cst_29 : f32 to vector<8x2xf32>
    %155 = arith.addf %154, %153 : vector<8x2xf32>
    %156 = arith.divf %154, %155 : vector<8x2xf32>
    %157 = vector.extract_strided_slice %139 {offsets = [16, 0], sizes = [8, 2], strides = [1, 1]} : vector<24x2xf32> to vector<8x2xf32>
    %158 = vector.extract_strided_slice %140 {offsets = [16, 0], sizes = [8, 2], strides = [1, 1]} : vector<24x2xf32> to vector<8x2xf32>
    %159 = arith.mulf %148, %158 : vector<8x2xf32>
    %160 = arith.addf %157, %159 : vector<8x2xf32>
    %161 = math.tanh %160 : vector<8x2xf32>
    %cst_30 = arith.constant 1.000000e+00 : f32
    %162 = vector.broadcast %cst_30 : f32 to vector<8x2xf32>
    %163 = arith.subf %162, %156 : vector<8x2xf32>
    %164 = arith.mulf %163, %161 : vector<8x2xf32>
    %165 = arith.mulf %156, %138 : vector<8x2xf32>
    %166 = arith.addf %164, %165 : vector<8x2xf32>
    %167 = vector.extract_strided_slice %134 {offsets = [8, 0], sizes = [8, 2], strides = [1, 1]} : vector<16x2xf32> to vector<8x2xf32>
    %168 = vector.extract_strided_slice %137 {offsets = [48, 0], sizes = [24, 2], strides = [1, 1]} : vector<72x2xf32> to vector<24x2xf32>
    %169 = vector.extract_strided_slice %137 {offsets = [24, 0], sizes = [24, 2], strides = [1, 1]} : vector<72x2xf32> to vector<24x2xf32>
    %170 = vector.extract_strided_slice %168 {offsets = [0, 0], sizes = [8, 2], strides = [1, 1]} : vector<24x2xf32> to vector<8x2xf32>
    %171 = vector.extract_strided_slice %169 {offsets = [0, 0], sizes = [8, 2], strides = [1, 1]} : vector<24x2xf32> to vector<8x2xf32>
    %172 = arith.addf %170, %171 : vector<8x2xf32>
    %173 = arith.negf %172 : vector<8x2xf32>
    %174 = math.exp %173 : vector<8x2xf32>
    %cst_31 = arith.constant 1.000000e+00 : f32
    %175 = vector.broadcast %cst_31 : f32 to vector<8x2xf32>
    %176 = arith.addf %175, %174 : vector<8x2xf32>
    %177 = arith.divf %175, %176 : vector<8x2xf32>
    %178 = vector.extract_strided_slice %168 {offsets = [8, 0], sizes = [8, 2], strides = [1, 1]} : vector<24x2xf32> to vector<8x2xf32>
    %179 = vector.extract_strided_slice %169 {offsets = [8, 0], sizes = [8, 2], strides = [1, 1]} : vector<24x2xf32> to vector<8x2xf32>
    %180 = arith.addf %178, %179 : vector<8x2xf32>
    %181 = arith.negf %180 : vector<8x2xf32>
    %182 = math.exp %181 : vector<8x2xf32>
    %cst_32 = arith.constant 1.000000e+00 : f32
    %183 = vector.broadcast %cst_32 : f32 to vector<8x2xf32>
    %184 = arith.addf %183, %182 : vector<8x2xf32>
    %185 = arith.divf %183, %184 : vector<8x2xf32>
    %186 = vector.extract_strided_slice %168 {offsets = [16, 0], sizes = [8, 2], strides = [1, 1]} : vector<24x2xf32> to vector<8x2xf32>
    %187 = vector.extract_strided_slice %169 {offsets = [16, 0], sizes = [8, 2], strides = [1, 1]} : vector<24x2xf32> to vector<8x2xf32>
    %188 = arith.mulf %177, %187 : vector<8x2xf32>
    %189 = arith.addf %186, %188 : vector<8x2xf32>
    %190 = math.tanh %189 : vector<8x2xf32>
    %cst_33 = arith.constant 1.000000e+00 : f32
    %191 = vector.broadcast %cst_33 : f32 to vector<8x2xf32>
    %192 = arith.subf %191, %185 : vector<8x2xf32>
    %193 = arith.mulf %192, %190 : vector<8x2xf32>
    %194 = arith.mulf %185, %167 : vector<8x2xf32>
    %195 = arith.addf %193, %194 : vector<8x2xf32>
    %196 = tpu.concatenate %166, %195 in 0 : vector<8x2xf32>, vector<8x2xf32> -> vector<16x2xf32>
    %cst_34 = arith.constant dense<0.000000e+00> : vector<72x2xf32>
    %197 = tpu.matmul %36, %196, %cst_34 {dimension_numbers = #tpu.dot_dimension_numbers<[1], [0], [0], [1], [0, 0, 1, 1], [], []>} : vector<72x16xf32>, vector<16x2xf32>, vector<72x2xf32> -> vector<72x2xf32>
    %198 = vector.broadcast %37 : vector<72x1xf32> to vector<72x2xf32>
    %199 = arith.addf %197, %198 : vector<72x2xf32>
    %200 = vector.extract_strided_slice %196 {offsets = [0, 0], sizes = [8, 2], strides = [1, 1]} : vector<16x2xf32> to vector<8x2xf32>
    %201 = vector.extract_strided_slice %35 {offsets = [0, 6], sizes = [24, 2], strides = [1, 1]} : vector<24x32xf32> to vector<24x2xf32>
    %202 = vector.extract_strided_slice %199 {offsets = [0, 0], sizes = [24, 2], strides = [1, 1]} : vector<72x2xf32> to vector<24x2xf32>
    %203 = vector.extract_strided_slice %201 {offsets = [0, 0], sizes = [8, 2], strides = [1, 1]} : vector<24x2xf32> to vector<8x2xf32>
    %204 = vector.extract_strided_slice %202 {offsets = [0, 0], sizes = [8, 2], strides = [1, 1]} : vector<24x2xf32> to vector<8x2xf32>
    %205 = arith.addf %203, %204 : vector<8x2xf32>
    %206 = arith.negf %205 : vector<8x2xf32>
    %207 = math.exp %206 : vector<8x2xf32>
    %cst_35 = arith.constant 1.000000e+00 : f32
    %208 = vector.broadcast %cst_35 : f32 to vector<8x2xf32>
    %209 = arith.addf %208, %207 : vector<8x2xf32>
    %210 = arith.divf %208, %209 : vector<8x2xf32>
    %211 = vector.extract_strided_slice %201 {offsets = [8, 0], sizes = [8, 2], strides = [1, 1]} : vector<24x2xf32> to vector<8x2xf32>
    %212 = vector.extract_strided_slice %202 {offsets = [8, 0], sizes = [8, 2], strides = [1, 1]} : vector<24x2xf32> to vector<8x2xf32>
    %213 = arith.addf %211, %212 : vector<8x2xf32>
    %214 = arith.negf %213 : vector<8x2xf32>
    %215 = math.exp %214 : vector<8x2xf32>
    %cst_36 = arith.constant 1.000000e+00 : f32
    %216 = vector.broadcast %cst_36 : f32 to vector<8x2xf32>
    %217 = arith.addf %216, %215 : vector<8x2xf32>
    %218 = arith.divf %216, %217 : vector<8x2xf32>
    %219 = vector.extract_strided_slice %201 {offsets = [16, 0], sizes = [8, 2], strides = [1, 1]} : vector<24x2xf32> to vector<8x2xf32>
    %220 = vector.extract_strided_slice %202 {offsets = [16, 0], sizes = [8, 2], strides = [1, 1]} : vector<24x2xf32> to vector<8x2xf32>
    %221 = arith.mulf %210, %220 : vector<8x2xf32>
    %222 = arith.addf %219, %221 : vector<8x2xf32>
    %223 = math.tanh %222 : vector<8x2xf32>
    %cst_37 = arith.constant 1.000000e+00 : f32
    %224 = vector.broadcast %cst_37 : f32 to vector<8x2xf32>
    %225 = arith.subf %224, %218 : vector<8x2xf32>
    %226 = arith.mulf %225, %223 : vector<8x2xf32>
    %227 = arith.mulf %218, %200 : vector<8x2xf32>
    %228 = arith.addf %226, %227 : vector<8x2xf32>
    %229 = vector.extract_strided_slice %196 {offsets = [8, 0], sizes = [8, 2], strides = [1, 1]} : vector<16x2xf32> to vector<8x2xf32>
    %230 = vector.extract_strided_slice %199 {offsets = [48, 0], sizes = [24, 2], strides = [1, 1]} : vector<72x2xf32> to vector<24x2xf32>
    %231 = vector.extract_strided_slice %199 {offsets = [24, 0], sizes = [24, 2], strides = [1, 1]} : vector<72x2xf32> to vector<24x2xf32>
    %232 = vector.extract_strided_slice %230 {offsets = [0, 0], sizes = [8, 2], strides = [1, 1]} : vector<24x2xf32> to vector<8x2xf32>
    %233 = vector.extract_strided_slice %231 {offsets = [0, 0], sizes = [8, 2], strides = [1, 1]} : vector<24x2xf32> to vector<8x2xf32>
    %234 = arith.addf %232, %233 : vector<8x2xf32>
    %235 = arith.negf %234 : vector<8x2xf32>
    %236 = math.exp %235 : vector<8x2xf32>
    %cst_38 = arith.constant 1.000000e+00 : f32
    %237 = vector.broadcast %cst_38 : f32 to vector<8x2xf32>
    %238 = arith.addf %237, %236 : vector<8x2xf32>
    %239 = arith.divf %237, %238 : vector<8x2xf32>
    %240 = vector.extract_strided_slice %230 {offsets = [8, 0], sizes = [8, 2], strides = [1, 1]} : vector<24x2xf32> to vector<8x2xf32>
    %241 = vector.extract_strided_slice %231 {offsets = [8, 0], sizes = [8, 2], strides = [1, 1]} : vector<24x2xf32> to vector<8x2xf32>
    %242 = arith.addf %240, %241 : vector<8x2xf32>
    %243 = arith.negf %242 : vector<8x2xf32>
    %244 = math.exp %243 : vector<8x2xf32>
    %cst_39 = arith.constant 1.000000e+00 : f32
    %245 = vector.broadcast %cst_39 : f32 to vector<8x2xf32>
    %246 = arith.addf %245, %244 : vector<8x2xf32>
    %247 = arith.divf %245, %246 : vector<8x2xf32>
    %248 = vector.extract_strided_slice %230 {offsets = [16, 0], sizes = [8, 2], strides = [1, 1]} : vector<24x2xf32> to vector<8x2xf32>
    %249 = vector.extract_strided_slice %231 {offsets = [16, 0], sizes = [8, 2], strides = [1, 1]} : vector<24x2xf32> to vector<8x2xf32>
    %250 = arith.mulf %239, %249 : vector<8x2xf32>
    %251 = arith.addf %248, %250 : vector<8x2xf32>
    %252 = math.tanh %251 : vector<8x2xf32>
    %cst_40 = arith.constant 1.000000e+00 : f32
    %253 = vector.broadcast %cst_40 : f32 to vector<8x2xf32>
    %254 = arith.subf %253, %247 : vector<8x2xf32>
    %255 = arith.mulf %254, %252 : vector<8x2xf32>
    %256 = arith.mulf %247, %229 : vector<8x2xf32>
    %257 = arith.addf %255, %256 : vector<8x2xf32>
    %258 = tpu.concatenate %228, %257 in 0 : vector<8x2xf32>, vector<8x2xf32> -> vector<16x2xf32>
    %cst_41 = arith.constant dense<0.000000e+00> : vector<72x2xf32>
    %259 = tpu.matmul %36, %258, %cst_41 {dimension_numbers = #tpu.dot_dimension_numbers<[1], [0], [0], [1], [0, 0, 1, 1], [], []>} : vector<72x16xf32>, vector<16x2xf32>, vector<72x2xf32> -> vector<72x2xf32>
    %260 = vector.broadcast %37 : vector<72x1xf32> to vector<72x2xf32>
    %261 = arith.addf %259, %260 : vector<72x2xf32>
    %262 = vector.extract_strided_slice %258 {offsets = [0, 0], sizes = [8, 2], strides = [1, 1]} : vector<16x2xf32> to vector<8x2xf32>
    %263 = vector.extract_strided_slice %35 {offsets = [0, 8], sizes = [24, 2], strides = [1, 1]} : vector<24x32xf32> to vector<24x2xf32>
    %264 = vector.extract_strided_slice %261 {offsets = [0, 0], sizes = [24, 2], strides = [1, 1]} : vector<72x2xf32> to vector<24x2xf32>
    %265 = vector.extract_strided_slice %263 {offsets = [0, 0], sizes = [8, 2], strides = [1, 1]} : vector<24x2xf32> to vector<8x2xf32>
    %266 = vector.extract_strided_slice %264 {offsets = [0, 0], sizes = [8, 2], strides = [1, 1]} : vector<24x2xf32> to vector<8x2xf32>
    %267 = arith.addf %265, %266 : vector<8x2xf32>
    %268 = arith.negf %267 : vector<8x2xf32>
    %269 = math.exp %268 : vector<8x2xf32>
    %cst_42 = arith.constant 1.000000e+00 : f32
    %270 = vector.broadcast %cst_42 : f32 to vector<8x2xf32>
    %271 = arith.addf %270, %269 : vector<8x2xf32>
    %272 = arith.divf %270, %271 : vector<8x2xf32>
    %273 = vector.extract_strided_slice %263 {offsets = [8, 0], sizes = [8, 2], strides = [1, 1]} : vector<24x2xf32> to vector<8x2xf32>
    %274 = vector.extract_strided_slice %264 {offsets = [8, 0], sizes = [8, 2], strides = [1, 1]} : vector<24x2xf32> to vector<8x2xf32>
    %275 = arith.addf %273, %274 : vector<8x2xf32>
    %276 = arith.negf %275 : vector<8x2xf32>
    %277 = math.exp %276 : vector<8x2xf32>
    %cst_43 = arith.constant 1.000000e+00 : f32
    %278 = vector.broadcast %cst_43 : f32 to vector<8x2xf32>
    %279 = arith.addf %278, %277 : vector<8x2xf32>
    %280 = arith.divf %278, %279 : vector<8x2xf32>
    %281 = vector.extract_strided_slice %263 {offsets = [16, 0], sizes = [8, 2], strides = [1, 1]} : vector<24x2xf32> to vector<8x2xf32>
    %282 = vector.extract_strided_slice %264 {offsets = [16, 0], sizes = [8, 2], strides = [1, 1]} : vector<24x2xf32> to vector<8x2xf32>
    %283 = arith.mulf %272, %282 : vector<8x2xf32>
    %284 = arith.addf %281, %283 : vector<8x2xf32>
    %285 = math.tanh %284 : vector<8x2xf32>
    %cst_44 = arith.constant 1.000000e+00 : f32
    %286 = vector.broadcast %cst_44 : f32 to vector<8x2xf32>
    %287 = arith.subf %286, %280 : vector<8x2xf32>
    %288 = arith.mulf %287, %285 : vector<8x2xf32>
    %289 = arith.mulf %280, %262 : vector<8x2xf32>
    %290 = arith.addf %288, %289 : vector<8x2xf32>
    %291 = vector.extract_strided_slice %258 {offsets = [8, 0], sizes = [8, 2], strides = [1, 1]} : vector<16x2xf32> to vector<8x2xf32>
    %292 = vector.extract_strided_slice %261 {offsets = [48, 0], sizes = [24, 2], strides = [1, 1]} : vector<72x2xf32> to vector<24x2xf32>
    %293 = vector.extract_strided_slice %261 {offsets = [24, 0], sizes = [24, 2], strides = [1, 1]} : vector<72x2xf32> to vector<24x2xf32>
    %294 = vector.extract_strided_slice %292 {offsets = [0, 0], sizes = [8, 2], strides = [1, 1]} : vector<24x2xf32> to vector<8x2xf32>
    %295 = vector.extract_strided_slice %293 {offsets = [0, 0], sizes = [8, 2], strides = [1, 1]} : vector<24x2xf32> to vector<8x2xf32>
    %296 = arith.addf %294, %295 : vector<8x2xf32>
    %297 = arith.negf %296 : vector<8x2xf32>
    %298 = math.exp %297 : vector<8x2xf32>
    %cst_45 = arith.constant 1.000000e+00 : f32
    %299 = vector.broadcast %cst_45 : f32 to vector<8x2xf32>
    %300 = arith.addf %299, %298 : vector<8x2xf32>
    %301 = arith.divf %299, %300 : vector<8x2xf32>
    %302 = vector.extract_strided_slice %292 {offsets = [8, 0], sizes = [8, 2], strides = [1, 1]} : vector<24x2xf32> to vector<8x2xf32>
    %303 = vector.extract_strided_slice %293 {offsets = [8, 0], sizes = [8, 2], strides = [1, 1]} : vector<24x2xf32> to vector<8x2xf32>
    %304 = arith.addf %302, %303 : vector<8x2xf32>
    %305 = arith.negf %304 : vector<8x2xf32>
    %306 = math.exp %305 : vector<8x2xf32>
    %cst_46 = arith.constant 1.000000e+00 : f32
    %307 = vector.broadcast %cst_46 : f32 to vector<8x2xf32>
    %308 = arith.addf %307, %306 : vector<8x2xf32>
    %309 = arith.divf %307, %308 : vector<8x2xf32>
    %310 = vector.extract_strided_slice %292 {offsets = [16, 0], sizes = [8, 2], strides = [1, 1]} : vector<24x2xf32> to vector<8x2xf32>
    %311 = vector.extract_strided_slice %293 {offsets = [16, 0], sizes = [8, 2], strides = [1, 1]} : vector<24x2xf32> to vector<8x2xf32>
    %312 = arith.mulf %301, %311 : vector<8x2xf32>
    %313 = arith.addf %310, %312 : vector<8x2xf32>
    %314 = math.tanh %313 : vector<8x2xf32>
    %cst_47 = arith.constant 1.000000e+00 : f32
    %315 = vector.broadcast %cst_47 : f32 to vector<8x2xf32>
    %316 = arith.subf %315, %309 : vector<8x2xf32>
    %317 = arith.mulf %316, %314 : vector<8x2xf32>
    %318 = arith.mulf %309, %291 : vector<8x2xf32>
    %319 = arith.addf %317, %318 : vector<8x2xf32>
    %320 = tpu.concatenate %290, %319 in 0 : vector<8x2xf32>, vector<8x2xf32> -> vector<16x2xf32>
    %cst_48 = arith.constant dense<0.000000e+00> : vector<72x2xf32>
    %321 = tpu.matmul %36, %320, %cst_48 {dimension_numbers = #tpu.dot_dimension_numbers<[1], [0], [0], [1], [0, 0, 1, 1], [], []>} : vector<72x16xf32>, vector<16x2xf32>, vector<72x2xf32> -> vector<72x2xf32>
    %322 = vector.broadcast %37 : vector<72x1xf32> to vector<72x2xf32>
    %323 = arith.addf %321, %322 : vector<72x2xf32>
    %324 = vector.extract_strided_slice %320 {offsets = [0, 0], sizes = [8, 2], strides = [1, 1]} : vector<16x2xf32> to vector<8x2xf32>
    %325 = vector.extract_strided_slice %35 {offsets = [0, 10], sizes = [24, 2], strides = [1, 1]} : vector<24x32xf32> to vector<24x2xf32>
    %326 = vector.extract_strided_slice %323 {offsets = [0, 0], sizes = [24, 2], strides = [1, 1]} : vector<72x2xf32> to vector<24x2xf32>
    %327 = vector.extract_strided_slice %325 {offsets = [0, 0], sizes = [8, 2], strides = [1, 1]} : vector<24x2xf32> to vector<8x2xf32>
    %328 = vector.extract_strided_slice %326 {offsets = [0, 0], sizes = [8, 2], strides = [1, 1]} : vector<24x2xf32> to vector<8x2xf32>
    %329 = arith.addf %327, %328 : vector<8x2xf32>
    %330 = arith.negf %329 : vector<8x2xf32>
    %331 = math.exp %330 : vector<8x2xf32>
    %cst_49 = arith.constant 1.000000e+00 : f32
    %332 = vector.broadcast %cst_49 : f32 to vector<8x2xf32>
    %333 = arith.addf %332, %331 : vector<8x2xf32>
    %334 = arith.divf %332, %333 : vector<8x2xf32>
    %335 = vector.extract_strided_slice %325 {offsets = [8, 0], sizes = [8, 2], strides = [1, 1]} : vector<24x2xf32> to vector<8x2xf32>
    %336 = vector.extract_strided_slice %326 {offsets = [8, 0], sizes = [8, 2], strides = [1, 1]} : vector<24x2xf32> to vector<8x2xf32>
    %337 = arith.addf %335, %336 : vector<8x2xf32>
    %338 = arith.negf %337 : vector<8x2xf32>
    %339 = math.exp %338 : vector<8x2xf32>
    %cst_50 = arith.constant 1.000000e+00 : f32
    %340 = vector.broadcast %cst_50 : f32 to vector<8x2xf32>
    %341 = arith.addf %340, %339 : vector<8x2xf32>
    %342 = arith.divf %340, %341 : vector<8x2xf32>
    %343 = vector.extract_strided_slice %325 {offsets = [16, 0], sizes = [8, 2], strides = [1, 1]} : vector<24x2xf32> to vector<8x2xf32>
    %344 = vector.extract_strided_slice %326 {offsets = [16, 0], sizes = [8, 2], strides = [1, 1]} : vector<24x2xf32> to vector<8x2xf32>
    %345 = arith.mulf %334, %344 : vector<8x2xf32>
    %346 = arith.addf %343, %345 : vector<8x2xf32>
    %347 = math.tanh %346 : vector<8x2xf32>
    %cst_51 = arith.constant 1.000000e+00 : f32
    %348 = vector.broadcast %cst_51 : f32 to vector<8x2xf32>
    %349 = arith.subf %348, %342 : vector<8x2xf32>
    %350 = arith.mulf %349, %347 : vector<8x2xf32>
    %351 = arith.mulf %342, %324 : vector<8x2xf32>
    %352 = arith.addf %350, %351 : vector<8x2xf32>
    %353 = vector.extract_strided_slice %320 {offsets = [8, 0], sizes = [8, 2], strides = [1, 1]} : vector<16x2xf32> to vector<8x2xf32>
    %354 = vector.extract_strided_slice %323 {offsets = [48, 0], sizes = [24, 2], strides = [1, 1]} : vector<72x2xf32> to vector<24x2xf32>
    %355 = vector.extract_strided_slice %323 {offsets = [24, 0], sizes = [24, 2], strides = [1, 1]} : vector<72x2xf32> to vector<24x2xf32>
    %356 = vector.extract_strided_slice %354 {offsets = [0, 0], sizes = [8, 2], strides = [1, 1]} : vector<24x2xf32> to vector<8x2xf32>
    %357 = vector.extract_strided_slice %355 {offsets = [0, 0], sizes = [8, 2], strides = [1, 1]} : vector<24x2xf32> to vector<8x2xf32>
    %358 = arith.addf %356, %357 : vector<8x2xf32>
    %359 = arith.negf %358 : vector<8x2xf32>
    %360 = math.exp %359 : vector<8x2xf32>
    %cst_52 = arith.constant 1.000000e+00 : f32
    %361 = vector.broadcast %cst_52 : f32 to vector<8x2xf32>
    %362 = arith.addf %361, %360 : vector<8x2xf32>
    %363 = arith.divf %361, %362 : vector<8x2xf32>
    %364 = vector.extract_strided_slice %354 {offsets = [8, 0], sizes = [8, 2], strides = [1, 1]} : vector<24x2xf32> to vector<8x2xf32>
    %365 = vector.extract_strided_slice %355 {offsets = [8, 0], sizes = [8, 2], strides = [1, 1]} : vector<24x2xf32> to vector<8x2xf32>
    %366 = arith.addf %364, %365 : vector<8x2xf32>
    %367 = arith.negf %366 : vector<8x2xf32>
    %368 = math.exp %367 : vector<8x2xf32>
    %cst_53 = arith.constant 1.000000e+00 : f32
    %369 = vector.broadcast %cst_53 : f32 to vector<8x2xf32>
    %370 = arith.addf %369, %368 : vector<8x2xf32>
    %371 = arith.divf %369, %370 : vector<8x2xf32>
    %372 = vector.extract_strided_slice %354 {offsets = [16, 0], sizes = [8, 2], strides = [1, 1]} : vector<24x2xf32> to vector<8x2xf32>
    %373 = vector.extract_strided_slice %355 {offsets = [16, 0], sizes = [8, 2], strides = [1, 1]} : vector<24x2xf32> to vector<8x2xf32>
    %374 = arith.mulf %363, %373 : vector<8x2xf32>
    %375 = arith.addf %372, %374 : vector<8x2xf32>
    %376 = math.tanh %375 : vector<8x2xf32>
    %cst_54 = arith.constant 1.000000e+00 : f32
    %377 = vector.broadcast %cst_54 : f32 to vector<8x2xf32>
    %378 = arith.subf %377, %371 : vector<8x2xf32>
    %379 = arith.mulf %378, %376 : vector<8x2xf32>
    %380 = arith.mulf %371, %353 : vector<8x2xf32>
    %381 = arith.addf %379, %380 : vector<8x2xf32>
    %382 = tpu.concatenate %352, %381 in 0 : vector<8x2xf32>, vector<8x2xf32> -> vector<16x2xf32>
    %cst_55 = arith.constant dense<0.000000e+00> : vector<72x2xf32>
    %383 = tpu.matmul %36, %382, %cst_55 {dimension_numbers = #tpu.dot_dimension_numbers<[1], [0], [0], [1], [0, 0, 1, 1], [], []>} : vector<72x16xf32>, vector<16x2xf32>, vector<72x2xf32> -> vector<72x2xf32>
    %384 = vector.broadcast %37 : vector<72x1xf32> to vector<72x2xf32>
    %385 = arith.addf %383, %384 : vector<72x2xf32>
    %386 = vector.extract_strided_slice %382 {offsets = [0, 0], sizes = [8, 2], strides = [1, 1]} : vector<16x2xf32> to vector<8x2xf32>
    %387 = vector.extract_strided_slice %35 {offsets = [0, 12], sizes = [24, 2], strides = [1, 1]} : vector<24x32xf32> to vector<24x2xf32>
    %388 = vector.extract_strided_slice %385 {offsets = [0, 0], sizes = [24, 2], strides = [1, 1]} : vector<72x2xf32> to vector<24x2xf32>
    %389 = vector.extract_strided_slice %387 {offsets = [0, 0], sizes = [8, 2], strides = [1, 1]} : vector<24x2xf32> to vector<8x2xf32>
    %390 = vector.extract_strided_slice %388 {offsets = [0, 0], sizes = [8, 2], strides = [1, 1]} : vector<24x2xf32> to vector<8x2xf32>
    %391 = arith.addf %389, %390 : vector<8x2xf32>
    %392 = arith.negf %391 : vector<8x2xf32>
    %393 = math.exp %392 : vector<8x2xf32>
    %cst_56 = arith.constant 1.000000e+00 : f32
    %394 = vector.broadcast %cst_56 : f32 to vector<8x2xf32>
    %395 = arith.addf %394, %393 : vector<8x2xf32>
    %396 = arith.divf %394, %395 : vector<8x2xf32>
    %397 = vector.extract_strided_slice %387 {offsets = [8, 0], sizes = [8, 2], strides = [1, 1]} : vector<24x2xf32> to vector<8x2xf32>
    %398 = vector.extract_strided_slice %388 {offsets = [8, 0], sizes = [8, 2], strides = [1, 1]} : vector<24x2xf32> to vector<8x2xf32>
    %399 = arith.addf %397, %398 : vector<8x2xf32>
    %400 = arith.negf %399 : vector<8x2xf32>
    %401 = math.exp %400 : vector<8x2xf32>
    %cst_57 = arith.constant 1.000000e+00 : f32
    %402 = vector.broadcast %cst_57 : f32 to vector<8x2xf32>
    %403 = arith.addf %402, %401 : vector<8x2xf32>
    %404 = arith.divf %402, %403 : vector<8x2xf32>
    %405 = vector.extract_strided_slice %387 {offsets = [16, 0], sizes = [8, 2], strides = [1, 1]} : vector<24x2xf32> to vector<8x2xf32>
    %406 = vector.extract_strided_slice %388 {offsets = [16, 0], sizes = [8, 2], strides = [1, 1]} : vector<24x2xf32> to vector<8x2xf32>
    %407 = arith.mulf %396, %406 : vector<8x2xf32>
    %408 = arith.addf %405, %407 : vector<8x2xf32>
    %409 = math.tanh %408 : vector<8x2xf32>
    %cst_58 = arith.constant 1.000000e+00 : f32
    %410 = vector.broadcast %cst_58 : f32 to vector<8x2xf32>
    %411 = arith.subf %410, %404 : vector<8x2xf32>
    %412 = arith.mulf %411, %409 : vector<8x2xf32>
    %413 = arith.mulf %404, %386 : vector<8x2xf32>
    %414 = arith.addf %412, %413 : vector<8x2xf32>
    %415 = vector.extract_strided_slice %382 {offsets = [8, 0], sizes = [8, 2], strides = [1, 1]} : vector<16x2xf32> to vector<8x2xf32>
    %416 = vector.extract_strided_slice %385 {offsets = [48, 0], sizes = [24, 2], strides = [1, 1]} : vector<72x2xf32> to vector<24x2xf32>
    %417 = vector.extract_strided_slice %385 {offsets = [24, 0], sizes = [24, 2], strides = [1, 1]} : vector<72x2xf32> to vector<24x2xf32>
    %418 = vector.extract_strided_slice %416 {offsets = [0, 0], sizes = [8, 2], strides = [1, 1]} : vector<24x2xf32> to vector<8x2xf32>
    %419 = vector.extract_strided_slice %417 {offsets = [0, 0], sizes = [8, 2], strides = [1, 1]} : vector<24x2xf32> to vector<8x2xf32>
    %420 = arith.addf %418, %419 : vector<8x2xf32>
    %421 = arith.negf %420 : vector<8x2xf32>
    %422 = math.exp %421 : vector<8x2xf32>
    %cst_59 = arith.constant 1.000000e+00 : f32
    %423 = vector.broadcast %cst_59 : f32 to vector<8x2xf32>
    %424 = arith.addf %423, %422 : vector<8x2xf32>
    %425 = arith.divf %423, %424 : vector<8x2xf32>
    %426 = vector.extract_strided_slice %416 {offsets = [8, 0], sizes = [8, 2], strides = [1, 1]} : vector<24x2xf32> to vector<8x2xf32>
    %427 = vector.extract_strided_slice %417 {offsets = [8, 0], sizes = [8, 2], strides = [1, 1]} : vector<24x2xf32> to vector<8x2xf32>
    %428 = arith.addf %426, %427 : vector<8x2xf32>
    %429 = arith.negf %428 : vector<8x2xf32>
    %430 = math.exp %429 : vector<8x2xf32>
    %cst_60 = arith.constant 1.000000e+00 : f32
    %431 = vector.broadcast %cst_60 : f32 to vector<8x2xf32>
    %432 = arith.addf %431, %430 : vector<8x2xf32>
    %433 = arith.divf %431, %432 : vector<8x2xf32>
    %434 = vector.extract_strided_slice %416 {offsets = [16, 0], sizes = [8, 2], strides = [1, 1]} : vector<24x2xf32> to vector<8x2xf32>
    %435 = vector.extract_strided_slice %417 {offsets = [16, 0], sizes = [8, 2], strides = [1, 1]} : vector<24x2xf32> to vector<8x2xf32>
    %436 = arith.mulf %425, %435 : vector<8x2xf32>
    %437 = arith.addf %434, %436 : vector<8x2xf32>
    %438 = math.tanh %437 : vector<8x2xf32>
    %cst_61 = arith.constant 1.000000e+00 : f32
    %439 = vector.broadcast %cst_61 : f32 to vector<8x2xf32>
    %440 = arith.subf %439, %433 : vector<8x2xf32>
    %441 = arith.mulf %440, %438 : vector<8x2xf32>
    %442 = arith.mulf %433, %415 : vector<8x2xf32>
    %443 = arith.addf %441, %442 : vector<8x2xf32>
    %444 = tpu.concatenate %414, %443 in 0 : vector<8x2xf32>, vector<8x2xf32> -> vector<16x2xf32>
    %cst_62 = arith.constant dense<0.000000e+00> : vector<72x2xf32>
    %445 = tpu.matmul %36, %444, %cst_62 {dimension_numbers = #tpu.dot_dimension_numbers<[1], [0], [0], [1], [0, 0, 1, 1], [], []>} : vector<72x16xf32>, vector<16x2xf32>, vector<72x2xf32> -> vector<72x2xf32>
    %446 = vector.broadcast %37 : vector<72x1xf32> to vector<72x2xf32>
    %447 = arith.addf %445, %446 : vector<72x2xf32>
    %448 = vector.extract_strided_slice %444 {offsets = [0, 0], sizes = [8, 2], strides = [1, 1]} : vector<16x2xf32> to vector<8x2xf32>
    %449 = vector.extract_strided_slice %35 {offsets = [0, 14], sizes = [24, 2], strides = [1, 1]} : vector<24x32xf32> to vector<24x2xf32>
    %450 = vector.extract_strided_slice %447 {offsets = [0, 0], sizes = [24, 2], strides = [1, 1]} : vector<72x2xf32> to vector<24x2xf32>
    %451 = vector.extract_strided_slice %449 {offsets = [0, 0], sizes = [8, 2], strides = [1, 1]} : vector<24x2xf32> to vector<8x2xf32>
    %452 = vector.extract_strided_slice %450 {offsets = [0, 0], sizes = [8, 2], strides = [1, 1]} : vector<24x2xf32> to vector<8x2xf32>
    %453 = arith.addf %451, %452 : vector<8x2xf32>
    %454 = arith.negf %453 : vector<8x2xf32>
    %455 = math.exp %454 : vector<8x2xf32>
    %cst_63 = arith.constant 1.000000e+00 : f32
    %456 = vector.broadcast %cst_63 : f32 to vector<8x2xf32>
    %457 = arith.addf %456, %455 : vector<8x2xf32>
    %458 = arith.divf %456, %457 : vector<8x2xf32>
    %459 = vector.extract_strided_slice %449 {offsets = [8, 0], sizes = [8, 2], strides = [1, 1]} : vector<24x2xf32> to vector<8x2xf32>
    %460 = vector.extract_strided_slice %450 {offsets = [8, 0], sizes = [8, 2], strides = [1, 1]} : vector<24x2xf32> to vector<8x2xf32>
    %461 = arith.addf %459, %460 : vector<8x2xf32>
    %462 = arith.negf %461 : vector<8x2xf32>
    %463 = math.exp %462 : vector<8x2xf32>
    %cst_64 = arith.constant 1.000000e+00 : f32
    %464 = vector.broadcast %cst_64 : f32 to vector<8x2xf32>
    %465 = arith.addf %464, %463 : vector<8x2xf32>
    %466 = arith.divf %464, %465 : vector<8x2xf32>
    %467 = vector.extract_strided_slice %449 {offsets = [16, 0], sizes = [8, 2], strides = [1, 1]} : vector<24x2xf32> to vector<8x2xf32>
    %468 = vector.extract_strided_slice %450 {offsets = [16, 0], sizes = [8, 2], strides = [1, 1]} : vector<24x2xf32> to vector<8x2xf32>
    %469 = arith.mulf %458, %468 : vector<8x2xf32>
    %470 = arith.addf %467, %469 : vector<8x2xf32>
    %471 = math.tanh %470 : vector<8x2xf32>
    %cst_65 = arith.constant 1.000000e+00 : f32
    %472 = vector.broadcast %cst_65 : f32 to vector<8x2xf32>
    %473 = arith.subf %472, %466 : vector<8x2xf32>
    %474 = arith.mulf %473, %471 : vector<8x2xf32>
    %475 = arith.mulf %466, %448 : vector<8x2xf32>
    %476 = arith.addf %474, %475 : vector<8x2xf32>
    %477 = vector.extract_strided_slice %444 {offsets = [8, 0], sizes = [8, 2], strides = [1, 1]} : vector<16x2xf32> to vector<8x2xf32>
    %478 = vector.extract_strided_slice %447 {offsets = [48, 0], sizes = [24, 2], strides = [1, 1]} : vector<72x2xf32> to vector<24x2xf32>
    %479 = vector.extract_strided_slice %447 {offsets = [24, 0], sizes = [24, 2], strides = [1, 1]} : vector<72x2xf32> to vector<24x2xf32>
    %480 = vector.extract_strided_slice %478 {offsets = [0, 0], sizes = [8, 2], strides = [1, 1]} : vector<24x2xf32> to vector<8x2xf32>
    %481 = vector.extract_strided_slice %479 {offsets = [0, 0], sizes = [8, 2], strides = [1, 1]} : vector<24x2xf32> to vector<8x2xf32>
    %482 = arith.addf %480, %481 : vector<8x2xf32>
    %483 = arith.negf %482 : vector<8x2xf32>
    %484 = math.exp %483 : vector<8x2xf32>
    %cst_66 = arith.constant 1.000000e+00 : f32
    %485 = vector.broadcast %cst_66 : f32 to vector<8x2xf32>
    %486 = arith.addf %485, %484 : vector<8x2xf32>
    %487 = arith.divf %485, %486 : vector<8x2xf32>
    %488 = vector.extract_strided_slice %478 {offsets = [8, 0], sizes = [8, 2], strides = [1, 1]} : vector<24x2xf32> to vector<8x2xf32>
    %489 = vector.extract_strided_slice %479 {offsets = [8, 0], sizes = [8, 2], strides = [1, 1]} : vector<24x2xf32> to vector<8x2xf32>
    %490 = arith.addf %488, %489 : vector<8x2xf32>
    %491 = arith.negf %490 : vector<8x2xf32>
    %492 = math.exp %491 : vector<8x2xf32>
    %cst_67 = arith.constant 1.000000e+00 : f32
    %493 = vector.broadcast %cst_67 : f32 to vector<8x2xf32>
    %494 = arith.addf %493, %492 : vector<8x2xf32>
    %495 = arith.divf %493, %494 : vector<8x2xf32>
    %496 = vector.extract_strided_slice %478 {offsets = [16, 0], sizes = [8, 2], strides = [1, 1]} : vector<24x2xf32> to vector<8x2xf32>
    %497 = vector.extract_strided_slice %479 {offsets = [16, 0], sizes = [8, 2], strides = [1, 1]} : vector<24x2xf32> to vector<8x2xf32>
    %498 = arith.mulf %487, %497 : vector<8x2xf32>
    %499 = arith.addf %496, %498 : vector<8x2xf32>
    %500 = math.tanh %499 : vector<8x2xf32>
    %cst_68 = arith.constant 1.000000e+00 : f32
    %501 = vector.broadcast %cst_68 : f32 to vector<8x2xf32>
    %502 = arith.subf %501, %495 : vector<8x2xf32>
    %503 = arith.mulf %502, %500 : vector<8x2xf32>
    %504 = arith.mulf %495, %477 : vector<8x2xf32>
    %505 = arith.addf %503, %504 : vector<8x2xf32>
    %506 = tpu.concatenate %476, %505 in 0 : vector<8x2xf32>, vector<8x2xf32> -> vector<16x2xf32>
    %cst_69 = arith.constant dense<0.000000e+00> : vector<72x2xf32>
    %507 = tpu.matmul %36, %506, %cst_69 {dimension_numbers = #tpu.dot_dimension_numbers<[1], [0], [0], [1], [0, 0, 1, 1], [], []>} : vector<72x16xf32>, vector<16x2xf32>, vector<72x2xf32> -> vector<72x2xf32>
    %508 = vector.broadcast %37 : vector<72x1xf32> to vector<72x2xf32>
    %509 = arith.addf %507, %508 : vector<72x2xf32>
    %510 = vector.extract_strided_slice %506 {offsets = [0, 0], sizes = [8, 2], strides = [1, 1]} : vector<16x2xf32> to vector<8x2xf32>
    %511 = vector.extract_strided_slice %35 {offsets = [0, 16], sizes = [24, 2], strides = [1, 1]} : vector<24x32xf32> to vector<24x2xf32>
    %512 = vector.extract_strided_slice %509 {offsets = [0, 0], sizes = [24, 2], strides = [1, 1]} : vector<72x2xf32> to vector<24x2xf32>
    %513 = vector.extract_strided_slice %511 {offsets = [0, 0], sizes = [8, 2], strides = [1, 1]} : vector<24x2xf32> to vector<8x2xf32>
    %514 = vector.extract_strided_slice %512 {offsets = [0, 0], sizes = [8, 2], strides = [1, 1]} : vector<24x2xf32> to vector<8x2xf32>
    %515 = arith.addf %513, %514 : vector<8x2xf32>
    %516 = arith.negf %515 : vector<8x2xf32>
    %517 = math.exp %516 : vector<8x2xf32>
    %cst_70 = arith.constant 1.000000e+00 : f32
    %518 = vector.broadcast %cst_70 : f32 to vector<8x2xf32>
    %519 = arith.addf %518, %517 : vector<8x2xf32>
    %520 = arith.divf %518, %519 : vector<8x2xf32>
    %521 = vector.extract_strided_slice %511 {offsets = [8, 0], sizes = [8, 2], strides = [1, 1]} : vector<24x2xf32> to vector<8x2xf32>
    %522 = vector.extract_strided_slice %512 {offsets = [8, 0], sizes = [8, 2], strides = [1, 1]} : vector<24x2xf32> to vector<8x2xf32>
    %523 = arith.addf %521, %522 : vector<8x2xf32>
    %524 = arith.negf %523 : vector<8x2xf32>
    %525 = math.exp %524 : vector<8x2xf32>
    %cst_71 = arith.constant 1.000000e+00 : f32
    %526 = vector.broadcast %cst_71 : f32 to vector<8x2xf32>
    %527 = arith.addf %526, %525 : vector<8x2xf32>
    %528 = arith.divf %526, %527 : vector<8x2xf32>
    %529 = vector.extract_strided_slice %511 {offsets = [16, 0], sizes = [8, 2], strides = [1, 1]} : vector<24x2xf32> to vector<8x2xf32>
    %530 = vector.extract_strided_slice %512 {offsets = [16, 0], sizes = [8, 2], strides = [1, 1]} : vector<24x2xf32> to vector<8x2xf32>
    %531 = arith.mulf %520, %530 : vector<8x2xf32>
    %532 = arith.addf %529, %531 : vector<8x2xf32>
    %533 = math.tanh %532 : vector<8x2xf32>
    %cst_72 = arith.constant 1.000000e+00 : f32
    %534 = vector.broadcast %cst_72 : f32 to vector<8x2xf32>
    %535 = arith.subf %534, %528 : vector<8x2xf32>
    %536 = arith.mulf %535, %533 : vector<8x2xf32>
    %537 = arith.mulf %528, %510 : vector<8x2xf32>
    %538 = arith.addf %536, %537 : vector<8x2xf32>
    %539 = vector.extract_strided_slice %506 {offsets = [8, 0], sizes = [8, 2], strides = [1, 1]} : vector<16x2xf32> to vector<8x2xf32>
    %540 = vector.extract_strided_slice %509 {offsets = [48, 0], sizes = [24, 2], strides = [1, 1]} : vector<72x2xf32> to vector<24x2xf32>
    %541 = vector.extract_strided_slice %509 {offsets = [24, 0], sizes = [24, 2], strides = [1, 1]} : vector<72x2xf32> to vector<24x2xf32>
    %542 = vector.extract_strided_slice %540 {offsets = [0, 0], sizes = [8, 2], strides = [1, 1]} : vector<24x2xf32> to vector<8x2xf32>
    %543 = vector.extract_strided_slice %541 {offsets = [0, 0], sizes = [8, 2], strides = [1, 1]} : vector<24x2xf32> to vector<8x2xf32>
    %544 = arith.addf %542, %543 : vector<8x2xf32>
    %545 = arith.negf %544 : vector<8x2xf32>
    %546 = math.exp %545 : vector<8x2xf32>
    %cst_73 = arith.constant 1.000000e+00 : f32
    %547 = vector.broadcast %cst_73 : f32 to vector<8x2xf32>
    %548 = arith.addf %547, %546 : vector<8x2xf32>
    %549 = arith.divf %547, %548 : vector<8x2xf32>
    %550 = vector.extract_strided_slice %540 {offsets = [8, 0], sizes = [8, 2], strides = [1, 1]} : vector<24x2xf32> to vector<8x2xf32>
    %551 = vector.extract_strided_slice %541 {offsets = [8, 0], sizes = [8, 2], strides = [1, 1]} : vector<24x2xf32> to vector<8x2xf32>
    %552 = arith.addf %550, %551 : vector<8x2xf32>
    %553 = arith.negf %552 : vector<8x2xf32>
    %554 = math.exp %553 : vector<8x2xf32>
    %cst_74 = arith.constant 1.000000e+00 : f32
    %555 = vector.broadcast %cst_74 : f32 to vector<8x2xf32>
    %556 = arith.addf %555, %554 : vector<8x2xf32>
    %557 = arith.divf %555, %556 : vector<8x2xf32>
    %558 = vector.extract_strided_slice %540 {offsets = [16, 0], sizes = [8, 2], strides = [1, 1]} : vector<24x2xf32> to vector<8x2xf32>
    %559 = vector.extract_strided_slice %541 {offsets = [16, 0], sizes = [8, 2], strides = [1, 1]} : vector<24x2xf32> to vector<8x2xf32>
    %560 = arith.mulf %549, %559 : vector<8x2xf32>
    %561 = arith.addf %558, %560 : vector<8x2xf32>
    %562 = math.tanh %561 : vector<8x2xf32>
    %cst_75 = arith.constant 1.000000e+00 : f32
    %563 = vector.broadcast %cst_75 : f32 to vector<8x2xf32>
    %564 = arith.subf %563, %557 : vector<8x2xf32>
    %565 = arith.mulf %564, %562 : vector<8x2xf32>
    %566 = arith.mulf %557, %539 : vector<8x2xf32>
    %567 = arith.addf %565, %566 : vector<8x2xf32>
    %568 = tpu.concatenate %538, %567 in 0 : vector<8x2xf32>, vector<8x2xf32> -> vector<16x2xf32>
    %cst_76 = arith.constant dense<0.000000e+00> : vector<72x2xf32>
    %569 = tpu.matmul %36, %568, %cst_76 {dimension_numbers = #tpu.dot_dimension_numbers<[1], [0], [0], [1], [0, 0, 1, 1], [], []>} : vector<72x16xf32>, vector<16x2xf32>, vector<72x2xf32> -> vector<72x2xf32>
    %570 = vector.broadcast %37 : vector<72x1xf32> to vector<72x2xf32>
    %571 = arith.addf %569, %570 : vector<72x2xf32>
    %572 = vector.extract_strided_slice %568 {offsets = [0, 0], sizes = [8, 2], strides = [1, 1]} : vector<16x2xf32> to vector<8x2xf32>
    %573 = vector.extract_strided_slice %35 {offsets = [0, 18], sizes = [24, 2], strides = [1, 1]} : vector<24x32xf32> to vector<24x2xf32>
    %574 = vector.extract_strided_slice %571 {offsets = [0, 0], sizes = [24, 2], strides = [1, 1]} : vector<72x2xf32> to vector<24x2xf32>
    %575 = vector.extract_strided_slice %573 {offsets = [0, 0], sizes = [8, 2], strides = [1, 1]} : vector<24x2xf32> to vector<8x2xf32>
    %576 = vector.extract_strided_slice %574 {offsets = [0, 0], sizes = [8, 2], strides = [1, 1]} : vector<24x2xf32> to vector<8x2xf32>
    %577 = arith.addf %575, %576 : vector<8x2xf32>
    %578 = arith.negf %577 : vector<8x2xf32>
    %579 = math.exp %578 : vector<8x2xf32>
    %cst_77 = arith.constant 1.000000e+00 : f32
    %580 = vector.broadcast %cst_77 : f32 to vector<8x2xf32>
    %581 = arith.addf %580, %579 : vector<8x2xf32>
    %582 = arith.divf %580, %581 : vector<8x2xf32>
    %583 = vector.extract_strided_slice %573 {offsets = [8, 0], sizes = [8, 2], strides = [1, 1]} : vector<24x2xf32> to vector<8x2xf32>
    %584 = vector.extract_strided_slice %574 {offsets = [8, 0], sizes = [8, 2], strides = [1, 1]} : vector<24x2xf32> to vector<8x2xf32>
    %585 = arith.addf %583, %584 : vector<8x2xf32>
    %586 = arith.negf %585 : vector<8x2xf32>
    %587 = math.exp %586 : vector<8x2xf32>
    %cst_78 = arith.constant 1.000000e+00 : f32
    %588 = vector.broadcast %cst_78 : f32 to vector<8x2xf32>
    %589 = arith.addf %588, %587 : vector<8x2xf32>
    %590 = arith.divf %588, %589 : vector<8x2xf32>
    %591 = vector.extract_strided_slice %573 {offsets = [16, 0], sizes = [8, 2], strides = [1, 1]} : vector<24x2xf32> to vector<8x2xf32>
    %592 = vector.extract_strided_slice %574 {offsets = [16, 0], sizes = [8, 2], strides = [1, 1]} : vector<24x2xf32> to vector<8x2xf32>
    %593 = arith.mulf %582, %592 : vector<8x2xf32>
    %594 = arith.addf %591, %593 : vector<8x2xf32>
    %595 = math.tanh %594 : vector<8x2xf32>
    %cst_79 = arith.constant 1.000000e+00 : f32
    %596 = vector.broadcast %cst_79 : f32 to vector<8x2xf32>
    %597 = arith.subf %596, %590 : vector<8x2xf32>
    %598 = arith.mulf %597, %595 : vector<8x2xf32>
    %599 = arith.mulf %590, %572 : vector<8x2xf32>
    %600 = arith.addf %598, %599 : vector<8x2xf32>
    %601 = vector.extract_strided_slice %568 {offsets = [8, 0], sizes = [8, 2], strides = [1, 1]} : vector<16x2xf32> to vector<8x2xf32>
    %602 = vector.extract_strided_slice %571 {offsets = [48, 0], sizes = [24, 2], strides = [1, 1]} : vector<72x2xf32> to vector<24x2xf32>
    %603 = vector.extract_strided_slice %571 {offsets = [24, 0], sizes = [24, 2], strides = [1, 1]} : vector<72x2xf32> to vector<24x2xf32>
    %604 = vector.extract_strided_slice %602 {offsets = [0, 0], sizes = [8, 2], strides = [1, 1]} : vector<24x2xf32> to vector<8x2xf32>
    %605 = vector.extract_strided_slice %603 {offsets = [0, 0], sizes = [8, 2], strides = [1, 1]} : vector<24x2xf32> to vector<8x2xf32>
    %606 = arith.addf %604, %605 : vector<8x2xf32>
    %607 = arith.negf %606 : vector<8x2xf32>
    %608 = math.exp %607 : vector<8x2xf32>
    %cst_80 = arith.constant 1.000000e+00 : f32
    %609 = vector.broadcast %cst_80 : f32 to vector<8x2xf32>
    %610 = arith.addf %609, %608 : vector<8x2xf32>
    %611 = arith.divf %609, %610 : vector<8x2xf32>
    %612 = vector.extract_strided_slice %602 {offsets = [8, 0], sizes = [8, 2], strides = [1, 1]} : vector<24x2xf32> to vector<8x2xf32>
    %613 = vector.extract_strided_slice %603 {offsets = [8, 0], sizes = [8, 2], strides = [1, 1]} : vector<24x2xf32> to vector<8x2xf32>
    %614 = arith.addf %612, %613 : vector<8x2xf32>
    %615 = arith.negf %614 : vector<8x2xf32>
    %616 = math.exp %615 : vector<8x2xf32>
    %cst_81 = arith.constant 1.000000e+00 : f32
    %617 = vector.broadcast %cst_81 : f32 to vector<8x2xf32>
    %618 = arith.addf %617, %616 : vector<8x2xf32>
    %619 = arith.divf %617, %618 : vector<8x2xf32>
    %620 = vector.extract_strided_slice %602 {offsets = [16, 0], sizes = [8, 2], strides = [1, 1]} : vector<24x2xf32> to vector<8x2xf32>
    %621 = vector.extract_strided_slice %603 {offsets = [16, 0], sizes = [8, 2], strides = [1, 1]} : vector<24x2xf32> to vector<8x2xf32>
    %622 = arith.mulf %611, %621 : vector<8x2xf32>
    %623 = arith.addf %620, %622 : vector<8x2xf32>
    %624 = math.tanh %623 : vector<8x2xf32>
    %cst_82 = arith.constant 1.000000e+00 : f32
    %625 = vector.broadcast %cst_82 : f32 to vector<8x2xf32>
    %626 = arith.subf %625, %619 : vector<8x2xf32>
    %627 = arith.mulf %626, %624 : vector<8x2xf32>
    %628 = arith.mulf %619, %601 : vector<8x2xf32>
    %629 = arith.addf %627, %628 : vector<8x2xf32>
    %630 = tpu.concatenate %600, %629 in 0 : vector<8x2xf32>, vector<8x2xf32> -> vector<16x2xf32>
    %cst_83 = arith.constant dense<0.000000e+00> : vector<72x2xf32>
    %631 = tpu.matmul %36, %630, %cst_83 {dimension_numbers = #tpu.dot_dimension_numbers<[1], [0], [0], [1], [0, 0, 1, 1], [], []>} : vector<72x16xf32>, vector<16x2xf32>, vector<72x2xf32> -> vector<72x2xf32>
    %632 = vector.broadcast %37 : vector<72x1xf32> to vector<72x2xf32>
    %633 = arith.addf %631, %632 : vector<72x2xf32>
    %634 = vector.extract_strided_slice %630 {offsets = [0, 0], sizes = [8, 2], strides = [1, 1]} : vector<16x2xf32> to vector<8x2xf32>
    %635 = vector.extract_strided_slice %35 {offsets = [0, 20], sizes = [24, 2], strides = [1, 1]} : vector<24x32xf32> to vector<24x2xf32>
    %636 = vector.extract_strided_slice %633 {offsets = [0, 0], sizes = [24, 2], strides = [1, 1]} : vector<72x2xf32> to vector<24x2xf32>
    %637 = vector.extract_strided_slice %635 {offsets = [0, 0], sizes = [8, 2], strides = [1, 1]} : vector<24x2xf32> to vector<8x2xf32>
    %638 = vector.extract_strided_slice %636 {offsets = [0, 0], sizes = [8, 2], strides = [1, 1]} : vector<24x2xf32> to vector<8x2xf32>
    %639 = arith.addf %637, %638 : vector<8x2xf32>
    %640 = arith.negf %639 : vector<8x2xf32>
    %641 = math.exp %640 : vector<8x2xf32>
    %cst_84 = arith.constant 1.000000e+00 : f32
    %642 = vector.broadcast %cst_84 : f32 to vector<8x2xf32>
    %643 = arith.addf %642, %641 : vector<8x2xf32>
    %644 = arith.divf %642, %643 : vector<8x2xf32>
    %645 = vector.extract_strided_slice %635 {offsets = [8, 0], sizes = [8, 2], strides = [1, 1]} : vector<24x2xf32> to vector<8x2xf32>
    %646 = vector.extract_strided_slice %636 {offsets = [8, 0], sizes = [8, 2], strides = [1, 1]} : vector<24x2xf32> to vector<8x2xf32>
    %647 = arith.addf %645, %646 : vector<8x2xf32>
    %648 = arith.negf %647 : vector<8x2xf32>
    %649 = math.exp %648 : vector<8x2xf32>
    %cst_85 = arith.constant 1.000000e+00 : f32
    %650 = vector.broadcast %cst_85 : f32 to vector<8x2xf32>
    %651 = arith.addf %650, %649 : vector<8x2xf32>
    %652 = arith.divf %650, %651 : vector<8x2xf32>
    %653 = vector.extract_strided_slice %635 {offsets = [16, 0], sizes = [8, 2], strides = [1, 1]} : vector<24x2xf32> to vector<8x2xf32>
    %654 = vector.extract_strided_slice %636 {offsets = [16, 0], sizes = [8, 2], strides = [1, 1]} : vector<24x2xf32> to vector<8x2xf32>
    %655 = arith.mulf %644, %654 : vector<8x2xf32>
    %656 = arith.addf %653, %655 : vector<8x2xf32>
    %657 = math.tanh %656 : vector<8x2xf32>
    %cst_86 = arith.constant 1.000000e+00 : f32
    %658 = vector.broadcast %cst_86 : f32 to vector<8x2xf32>
    %659 = arith.subf %658, %652 : vector<8x2xf32>
    %660 = arith.mulf %659, %657 : vector<8x2xf32>
    %661 = arith.mulf %652, %634 : vector<8x2xf32>
    %662 = arith.addf %660, %661 : vector<8x2xf32>
    %663 = vector.extract_strided_slice %630 {offsets = [8, 0], sizes = [8, 2], strides = [1, 1]} : vector<16x2xf32> to vector<8x2xf32>
    %664 = vector.extract_strided_slice %633 {offsets = [48, 0], sizes = [24, 2], strides = [1, 1]} : vector<72x2xf32> to vector<24x2xf32>
    %665 = vector.extract_strided_slice %633 {offsets = [24, 0], sizes = [24, 2], strides = [1, 1]} : vector<72x2xf32> to vector<24x2xf32>
    %666 = vector.extract_strided_slice %664 {offsets = [0, 0], sizes = [8, 2], strides = [1, 1]} : vector<24x2xf32> to vector<8x2xf32>
    %667 = vector.extract_strided_slice %665 {offsets = [0, 0], sizes = [8, 2], strides = [1, 1]} : vector<24x2xf32> to vector<8x2xf32>
    %668 = arith.addf %666, %667 : vector<8x2xf32>
    %669 = arith.negf %668 : vector<8x2xf32>
    %670 = math.exp %669 : vector<8x2xf32>
    %cst_87 = arith.constant 1.000000e+00 : f32
    %671 = vector.broadcast %cst_87 : f32 to vector<8x2xf32>
    %672 = arith.addf %671, %670 : vector<8x2xf32>
    %673 = arith.divf %671, %672 : vector<8x2xf32>
    %674 = vector.extract_strided_slice %664 {offsets = [8, 0], sizes = [8, 2], strides = [1, 1]} : vector<24x2xf32> to vector<8x2xf32>
    %675 = vector.extract_strided_slice %665 {offsets = [8, 0], sizes = [8, 2], strides = [1, 1]} : vector<24x2xf32> to vector<8x2xf32>
    %676 = arith.addf %674, %675 : vector<8x2xf32>
    %677 = arith.negf %676 : vector<8x2xf32>
    %678 = math.exp %677 : vector<8x2xf32>
    %cst_88 = arith.constant 1.000000e+00 : f32
    %679 = vector.broadcast %cst_88 : f32 to vector<8x2xf32>
    %680 = arith.addf %679, %678 : vector<8x2xf32>
    %681 = arith.divf %679, %680 : vector<8x2xf32>
    %682 = vector.extract_strided_slice %664 {offsets = [16, 0], sizes = [8, 2], strides = [1, 1]} : vector<24x2xf32> to vector<8x2xf32>
    %683 = vector.extract_strided_slice %665 {offsets = [16, 0], sizes = [8, 2], strides = [1, 1]} : vector<24x2xf32> to vector<8x2xf32>
    %684 = arith.mulf %673, %683 : vector<8x2xf32>
    %685 = arith.addf %682, %684 : vector<8x2xf32>
    %686 = math.tanh %685 : vector<8x2xf32>
    %cst_89 = arith.constant 1.000000e+00 : f32
    %687 = vector.broadcast %cst_89 : f32 to vector<8x2xf32>
    %688 = arith.subf %687, %681 : vector<8x2xf32>
    %689 = arith.mulf %688, %686 : vector<8x2xf32>
    %690 = arith.mulf %681, %663 : vector<8x2xf32>
    %691 = arith.addf %689, %690 : vector<8x2xf32>
    %692 = tpu.concatenate %662, %691 in 0 : vector<8x2xf32>, vector<8x2xf32> -> vector<16x2xf32>
    %cst_90 = arith.constant dense<0.000000e+00> : vector<72x2xf32>
    %693 = tpu.matmul %36, %692, %cst_90 {dimension_numbers = #tpu.dot_dimension_numbers<[1], [0], [0], [1], [0, 0, 1, 1], [], []>} : vector<72x16xf32>, vector<16x2xf32>, vector<72x2xf32> -> vector<72x2xf32>
    %694 = vector.broadcast %37 : vector<72x1xf32> to vector<72x2xf32>
    %695 = arith.addf %693, %694 : vector<72x2xf32>
    %696 = vector.extract_strided_slice %692 {offsets = [0, 0], sizes = [8, 2], strides = [1, 1]} : vector<16x2xf32> to vector<8x2xf32>
    %697 = vector.extract_strided_slice %35 {offsets = [0, 22], sizes = [24, 2], strides = [1, 1]} : vector<24x32xf32> to vector<24x2xf32>
    %698 = vector.extract_strided_slice %695 {offsets = [0, 0], sizes = [24, 2], strides = [1, 1]} : vector<72x2xf32> to vector<24x2xf32>
    %699 = vector.extract_strided_slice %697 {offsets = [0, 0], sizes = [8, 2], strides = [1, 1]} : vector<24x2xf32> to vector<8x2xf32>
    %700 = vector.extract_strided_slice %698 {offsets = [0, 0], sizes = [8, 2], strides = [1, 1]} : vector<24x2xf32> to vector<8x2xf32>
    %701 = arith.addf %699, %700 : vector<8x2xf32>
    %702 = arith.negf %701 : vector<8x2xf32>
    %703 = math.exp %702 : vector<8x2xf32>
    %cst_91 = arith.constant 1.000000e+00 : f32
    %704 = vector.broadcast %cst_91 : f32 to vector<8x2xf32>
    %705 = arith.addf %704, %703 : vector<8x2xf32>
    %706 = arith.divf %704, %705 : vector<8x2xf32>
    %707 = vector.extract_strided_slice %697 {offsets = [8, 0], sizes = [8, 2], strides = [1, 1]} : vector<24x2xf32> to vector<8x2xf32>
    %708 = vector.extract_strided_slice %698 {offsets = [8, 0], sizes = [8, 2], strides = [1, 1]} : vector<24x2xf32> to vector<8x2xf32>
    %709 = arith.addf %707, %708 : vector<8x2xf32>
    %710 = arith.negf %709 : vector<8x2xf32>
    %711 = math.exp %710 : vector<8x2xf32>
    %cst_92 = arith.constant 1.000000e+00 : f32
    %712 = vector.broadcast %cst_92 : f32 to vector<8x2xf32>
    %713 = arith.addf %712, %711 : vector<8x2xf32>
    %714 = arith.divf %712, %713 : vector<8x2xf32>
    %715 = vector.extract_strided_slice %697 {offsets = [16, 0], sizes = [8, 2], strides = [1, 1]} : vector<24x2xf32> to vector<8x2xf32>
    %716 = vector.extract_strided_slice %698 {offsets = [16, 0], sizes = [8, 2], strides = [1, 1]} : vector<24x2xf32> to vector<8x2xf32>
    %717 = arith.mulf %706, %716 : vector<8x2xf32>
    %718 = arith.addf %715, %717 : vector<8x2xf32>
    %719 = math.tanh %718 : vector<8x2xf32>
    %cst_93 = arith.constant 1.000000e+00 : f32
    %720 = vector.broadcast %cst_93 : f32 to vector<8x2xf32>
    %721 = arith.subf %720, %714 : vector<8x2xf32>
    %722 = arith.mulf %721, %719 : vector<8x2xf32>
    %723 = arith.mulf %714, %696 : vector<8x2xf32>
    %724 = arith.addf %722, %723 : vector<8x2xf32>
    %725 = vector.extract_strided_slice %692 {offsets = [8, 0], sizes = [8, 2], strides = [1, 1]} : vector<16x2xf32> to vector<8x2xf32>
    %726 = vector.extract_strided_slice %695 {offsets = [48, 0], sizes = [24, 2], strides = [1, 1]} : vector<72x2xf32> to vector<24x2xf32>
    %727 = vector.extract_strided_slice %695 {offsets = [24, 0], sizes = [24, 2], strides = [1, 1]} : vector<72x2xf32> to vector<24x2xf32>
    %728 = vector.extract_strided_slice %726 {offsets = [0, 0], sizes = [8, 2], strides = [1, 1]} : vector<24x2xf32> to vector<8x2xf32>
    %729 = vector.extract_strided_slice %727 {offsets = [0, 0], sizes = [8, 2], strides = [1, 1]} : vector<24x2xf32> to vector<8x2xf32>
    %730 = arith.addf %728, %729 : vector<8x2xf32>
    %731 = arith.negf %730 : vector<8x2xf32>
    %732 = math.exp %731 : vector<8x2xf32>
    %cst_94 = arith.constant 1.000000e+00 : f32
    %733 = vector.broadcast %cst_94 : f32 to vector<8x2xf32>
    %734 = arith.addf %733, %732 : vector<8x2xf32>
    %735 = arith.divf %733, %734 : vector<8x2xf32>
    %736 = vector.extract_strided_slice %726 {offsets = [8, 0], sizes = [8, 2], strides = [1, 1]} : vector<24x2xf32> to vector<8x2xf32>
    %737 = vector.extract_strided_slice %727 {offsets = [8, 0], sizes = [8, 2], strides = [1, 1]} : vector<24x2xf32> to vector<8x2xf32>
    %738 = arith.addf %736, %737 : vector<8x2xf32>
    %739 = arith.negf %738 : vector<8x2xf32>
    %740 = math.exp %739 : vector<8x2xf32>
    %cst_95 = arith.constant 1.000000e+00 : f32
    %741 = vector.broadcast %cst_95 : f32 to vector<8x2xf32>
    %742 = arith.addf %741, %740 : vector<8x2xf32>
    %743 = arith.divf %741, %742 : vector<8x2xf32>
    %744 = vector.extract_strided_slice %726 {offsets = [16, 0], sizes = [8, 2], strides = [1, 1]} : vector<24x2xf32> to vector<8x2xf32>
    %745 = vector.extract_strided_slice %727 {offsets = [16, 0], sizes = [8, 2], strides = [1, 1]} : vector<24x2xf32> to vector<8x2xf32>
    %746 = arith.mulf %735, %745 : vector<8x2xf32>
    %747 = arith.addf %744, %746 : vector<8x2xf32>
    %748 = math.tanh %747 : vector<8x2xf32>
    %cst_96 = arith.constant 1.000000e+00 : f32
    %749 = vector.broadcast %cst_96 : f32 to vector<8x2xf32>
    %750 = arith.subf %749, %743 : vector<8x2xf32>
    %751 = arith.mulf %750, %748 : vector<8x2xf32>
    %752 = arith.mulf %743, %725 : vector<8x2xf32>
    %753 = arith.addf %751, %752 : vector<8x2xf32>
    %754 = tpu.concatenate %724, %753 in 0 : vector<8x2xf32>, vector<8x2xf32> -> vector<16x2xf32>
    %cst_97 = arith.constant dense<0.000000e+00> : vector<72x2xf32>
    %755 = tpu.matmul %36, %754, %cst_97 {dimension_numbers = #tpu.dot_dimension_numbers<[1], [0], [0], [1], [0, 0, 1, 1], [], []>} : vector<72x16xf32>, vector<16x2xf32>, vector<72x2xf32> -> vector<72x2xf32>
    %756 = vector.broadcast %37 : vector<72x1xf32> to vector<72x2xf32>
    %757 = arith.addf %755, %756 : vector<72x2xf32>
    %758 = vector.extract_strided_slice %754 {offsets = [0, 0], sizes = [8, 2], strides = [1, 1]} : vector<16x2xf32> to vector<8x2xf32>
    %759 = vector.extract_strided_slice %35 {offsets = [0, 24], sizes = [24, 2], strides = [1, 1]} : vector<24x32xf32> to vector<24x2xf32>
    %760 = vector.extract_strided_slice %757 {offsets = [0, 0], sizes = [24, 2], strides = [1, 1]} : vector<72x2xf32> to vector<24x2xf32>
    %761 = vector.extract_strided_slice %759 {offsets = [0, 0], sizes = [8, 2], strides = [1, 1]} : vector<24x2xf32> to vector<8x2xf32>
    %762 = vector.extract_strided_slice %760 {offsets = [0, 0], sizes = [8, 2], strides = [1, 1]} : vector<24x2xf32> to vector<8x2xf32>
    %763 = arith.addf %761, %762 : vector<8x2xf32>
    %764 = arith.negf %763 : vector<8x2xf32>
    %765 = math.exp %764 : vector<8x2xf32>
    %cst_98 = arith.constant 1.000000e+00 : f32
    %766 = vector.broadcast %cst_98 : f32 to vector<8x2xf32>
    %767 = arith.addf %766, %765 : vector<8x2xf32>
    %768 = arith.divf %766, %767 : vector<8x2xf32>
    %769 = vector.extract_strided_slice %759 {offsets = [8, 0], sizes = [8, 2], strides = [1, 1]} : vector<24x2xf32> to vector<8x2xf32>
    %770 = vector.extract_strided_slice %760 {offsets = [8, 0], sizes = [8, 2], strides = [1, 1]} : vector<24x2xf32> to vector<8x2xf32>
    %771 = arith.addf %769, %770 : vector<8x2xf32>
    %772 = arith.negf %771 : vector<8x2xf32>
    %773 = math.exp %772 : vector<8x2xf32>
    %cst_99 = arith.constant 1.000000e+00 : f32
    %774 = vector.broadcast %cst_99 : f32 to vector<8x2xf32>
    %775 = arith.addf %774, %773 : vector<8x2xf32>
    %776 = arith.divf %774, %775 : vector<8x2xf32>
    %777 = vector.extract_strided_slice %759 {offsets = [16, 0], sizes = [8, 2], strides = [1, 1]} : vector<24x2xf32> to vector<8x2xf32>
    %778 = vector.extract_strided_slice %760 {offsets = [16, 0], sizes = [8, 2], strides = [1, 1]} : vector<24x2xf32> to vector<8x2xf32>
    %779 = arith.mulf %768, %778 : vector<8x2xf32>
    %780 = arith.addf %777, %779 : vector<8x2xf32>
    %781 = math.tanh %780 : vector<8x2xf32>
    %cst_100 = arith.constant 1.000000e+00 : f32
    %782 = vector.broadcast %cst_100 : f32 to vector<8x2xf32>
    %783 = arith.subf %782, %776 : vector<8x2xf32>
    %784 = arith.mulf %783, %781 : vector<8x2xf32>
    %785 = arith.mulf %776, %758 : vector<8x2xf32>
    %786 = arith.addf %784, %785 : vector<8x2xf32>
    %787 = vector.extract_strided_slice %754 {offsets = [8, 0], sizes = [8, 2], strides = [1, 1]} : vector<16x2xf32> to vector<8x2xf32>
    %788 = vector.extract_strided_slice %757 {offsets = [48, 0], sizes = [24, 2], strides = [1, 1]} : vector<72x2xf32> to vector<24x2xf32>
    %789 = vector.extract_strided_slice %757 {offsets = [24, 0], sizes = [24, 2], strides = [1, 1]} : vector<72x2xf32> to vector<24x2xf32>
    %790 = vector.extract_strided_slice %788 {offsets = [0, 0], sizes = [8, 2], strides = [1, 1]} : vector<24x2xf32> to vector<8x2xf32>
    %791 = vector.extract_strided_slice %789 {offsets = [0, 0], sizes = [8, 2], strides = [1, 1]} : vector<24x2xf32> to vector<8x2xf32>
    %792 = arith.addf %790, %791 : vector<8x2xf32>
    %793 = arith.negf %792 : vector<8x2xf32>
    %794 = math.exp %793 : vector<8x2xf32>
    %cst_101 = arith.constant 1.000000e+00 : f32
    %795 = vector.broadcast %cst_101 : f32 to vector<8x2xf32>
    %796 = arith.addf %795, %794 : vector<8x2xf32>
    %797 = arith.divf %795, %796 : vector<8x2xf32>
    %798 = vector.extract_strided_slice %788 {offsets = [8, 0], sizes = [8, 2], strides = [1, 1]} : vector<24x2xf32> to vector<8x2xf32>
    %799 = vector.extract_strided_slice %789 {offsets = [8, 0], sizes = [8, 2], strides = [1, 1]} : vector<24x2xf32> to vector<8x2xf32>
    %800 = arith.addf %798, %799 : vector<8x2xf32>
    %801 = arith.negf %800 : vector<8x2xf32>
    %802 = math.exp %801 : vector<8x2xf32>
    %cst_102 = arith.constant 1.000000e+00 : f32
    %803 = vector.broadcast %cst_102 : f32 to vector<8x2xf32>
    %804 = arith.addf %803, %802 : vector<8x2xf32>
    %805 = arith.divf %803, %804 : vector<8x2xf32>
    %806 = vector.extract_strided_slice %788 {offsets = [16, 0], sizes = [8, 2], strides = [1, 1]} : vector<24x2xf32> to vector<8x2xf32>
    %807 = vector.extract_strided_slice %789 {offsets = [16, 0], sizes = [8, 2], strides = [1, 1]} : vector<24x2xf32> to vector<8x2xf32>
    %808 = arith.mulf %797, %807 : vector<8x2xf32>
    %809 = arith.addf %806, %808 : vector<8x2xf32>
    %810 = math.tanh %809 : vector<8x2xf32>
    %cst_103 = arith.constant 1.000000e+00 : f32
    %811 = vector.broadcast %cst_103 : f32 to vector<8x2xf32>
    %812 = arith.subf %811, %805 : vector<8x2xf32>
    %813 = arith.mulf %812, %810 : vector<8x2xf32>
    %814 = arith.mulf %805, %787 : vector<8x2xf32>
    %815 = arith.addf %813, %814 : vector<8x2xf32>
    %816 = tpu.concatenate %786, %815 in 0 : vector<8x2xf32>, vector<8x2xf32> -> vector<16x2xf32>
    %cst_104 = arith.constant dense<0.000000e+00> : vector<72x2xf32>
    %817 = tpu.matmul %36, %816, %cst_104 {dimension_numbers = #tpu.dot_dimension_numbers<[1], [0], [0], [1], [0, 0, 1, 1], [], []>} : vector<72x16xf32>, vector<16x2xf32>, vector<72x2xf32> -> vector<72x2xf32>
    %818 = vector.broadcast %37 : vector<72x1xf32> to vector<72x2xf32>
    %819 = arith.addf %817, %818 : vector<72x2xf32>
    %820 = vector.extract_strided_slice %816 {offsets = [0, 0], sizes = [8, 2], strides = [1, 1]} : vector<16x2xf32> to vector<8x2xf32>
    %821 = vector.extract_strided_slice %35 {offsets = [0, 26], sizes = [24, 2], strides = [1, 1]} : vector<24x32xf32> to vector<24x2xf32>
    %822 = vector.extract_strided_slice %819 {offsets = [0, 0], sizes = [24, 2], strides = [1, 1]} : vector<72x2xf32> to vector<24x2xf32>
    %823 = vector.extract_strided_slice %821 {offsets = [0, 0], sizes = [8, 2], strides = [1, 1]} : vector<24x2xf32> to vector<8x2xf32>
    %824 = vector.extract_strided_slice %822 {offsets = [0, 0], sizes = [8, 2], strides = [1, 1]} : vector<24x2xf32> to vector<8x2xf32>
    %825 = arith.addf %823, %824 : vector<8x2xf32>
    %826 = arith.negf %825 : vector<8x2xf32>
    %827 = math.exp %826 : vector<8x2xf32>
    %cst_105 = arith.constant 1.000000e+00 : f32
    %828 = vector.broadcast %cst_105 : f32 to vector<8x2xf32>
    %829 = arith.addf %828, %827 : vector<8x2xf32>
    %830 = arith.divf %828, %829 : vector<8x2xf32>
    %831 = vector.extract_strided_slice %821 {offsets = [8, 0], sizes = [8, 2], strides = [1, 1]} : vector<24x2xf32> to vector<8x2xf32>
    %832 = vector.extract_strided_slice %822 {offsets = [8, 0], sizes = [8, 2], strides = [1, 1]} : vector<24x2xf32> to vector<8x2xf32>
    %833 = arith.addf %831, %832 : vector<8x2xf32>
    %834 = arith.negf %833 : vector<8x2xf32>
    %835 = math.exp %834 : vector<8x2xf32>
    %cst_106 = arith.constant 1.000000e+00 : f32
    %836 = vector.broadcast %cst_106 : f32 to vector<8x2xf32>
    %837 = arith.addf %836, %835 : vector<8x2xf32>
    %838 = arith.divf %836, %837 : vector<8x2xf32>
    %839 = vector.extract_strided_slice %821 {offsets = [16, 0], sizes = [8, 2], strides = [1, 1]} : vector<24x2xf32> to vector<8x2xf32>
    %840 = vector.extract_strided_slice %822 {offsets = [16, 0], sizes = [8, 2], strides = [1, 1]} : vector<24x2xf32> to vector<8x2xf32>
    %841 = arith.mulf %830, %840 : vector<8x2xf32>
    %842 = arith.addf %839, %841 : vector<8x2xf32>
    %843 = math.tanh %842 : vector<8x2xf32>
    %cst_107 = arith.constant 1.000000e+00 : f32
    %844 = vector.broadcast %cst_107 : f32 to vector<8x2xf32>
    %845 = arith.subf %844, %838 : vector<8x2xf32>
    %846 = arith.mulf %845, %843 : vector<8x2xf32>
    %847 = arith.mulf %838, %820 : vector<8x2xf32>
    %848 = arith.addf %846, %847 : vector<8x2xf32>
    %849 = vector.extract_strided_slice %816 {offsets = [8, 0], sizes = [8, 2], strides = [1, 1]} : vector<16x2xf32> to vector<8x2xf32>
    %850 = vector.extract_strided_slice %819 {offsets = [48, 0], sizes = [24, 2], strides = [1, 1]} : vector<72x2xf32> to vector<24x2xf32>
    %851 = vector.extract_strided_slice %819 {offsets = [24, 0], sizes = [24, 2], strides = [1, 1]} : vector<72x2xf32> to vector<24x2xf32>
    %852 = vector.extract_strided_slice %850 {offsets = [0, 0], sizes = [8, 2], strides = [1, 1]} : vector<24x2xf32> to vector<8x2xf32>
    %853 = vector.extract_strided_slice %851 {offsets = [0, 0], sizes = [8, 2], strides = [1, 1]} : vector<24x2xf32> to vector<8x2xf32>
    %854 = arith.addf %852, %853 : vector<8x2xf32>
    %855 = arith.negf %854 : vector<8x2xf32>
    %856 = math.exp %855 : vector<8x2xf32>
    %cst_108 = arith.constant 1.000000e+00 : f32
    %857 = vector.broadcast %cst_108 : f32 to vector<8x2xf32>
    %858 = arith.addf %857, %856 : vector<8x2xf32>
    %859 = arith.divf %857, %858 : vector<8x2xf32>
    %860 = vector.extract_strided_slice %850 {offsets = [8, 0], sizes = [8, 2], strides = [1, 1]} : vector<24x2xf32> to vector<8x2xf32>
    %861 = vector.extract_strided_slice %851 {offsets = [8, 0], sizes = [8, 2], strides = [1, 1]} : vector<24x2xf32> to vector<8x2xf32>
    %862 = arith.addf %860, %861 : vector<8x2xf32>
    %863 = arith.negf %862 : vector<8x2xf32>
    %864 = math.exp %863 : vector<8x2xf32>
    %cst_109 = arith.constant 1.000000e+00 : f32
    %865 = vector.broadcast %cst_109 : f32 to vector<8x2xf32>
    %866 = arith.addf %865, %864 : vector<8x2xf32>
    %867 = arith.divf %865, %866 : vector<8x2xf32>
    %868 = vector.extract_strided_slice %850 {offsets = [16, 0], sizes = [8, 2], strides = [1, 1]} : vector<24x2xf32> to vector<8x2xf32>
    %869 = vector.extract_strided_slice %851 {offsets = [16, 0], sizes = [8, 2], strides = [1, 1]} : vector<24x2xf32> to vector<8x2xf32>
    %870 = arith.mulf %859, %869 : vector<8x2xf32>
    %871 = arith.addf %868, %870 : vector<8x2xf32>
    %872 = math.tanh %871 : vector<8x2xf32>
    %cst_110 = arith.constant 1.000000e+00 : f32
    %873 = vector.broadcast %cst_110 : f32 to vector<8x2xf32>
    %874 = arith.subf %873, %867 : vector<8x2xf32>
    %875 = arith.mulf %874, %872 : vector<8x2xf32>
    %876 = arith.mulf %867, %849 : vector<8x2xf32>
    %877 = arith.addf %875, %876 : vector<8x2xf32>
    %878 = tpu.concatenate %848, %877 in 0 : vector<8x2xf32>, vector<8x2xf32> -> vector<16x2xf32>
    %cst_111 = arith.constant dense<0.000000e+00> : vector<72x2xf32>
    %879 = tpu.matmul %36, %878, %cst_111 {dimension_numbers = #tpu.dot_dimension_numbers<[1], [0], [0], [1], [0, 0, 1, 1], [], []>} : vector<72x16xf32>, vector<16x2xf32>, vector<72x2xf32> -> vector<72x2xf32>
    %880 = vector.broadcast %37 : vector<72x1xf32> to vector<72x2xf32>
    %881 = arith.addf %879, %880 : vector<72x2xf32>
    %882 = vector.extract_strided_slice %878 {offsets = [0, 0], sizes = [8, 2], strides = [1, 1]} : vector<16x2xf32> to vector<8x2xf32>
    %883 = vector.extract_strided_slice %35 {offsets = [0, 28], sizes = [24, 2], strides = [1, 1]} : vector<24x32xf32> to vector<24x2xf32>
    %884 = vector.extract_strided_slice %881 {offsets = [0, 0], sizes = [24, 2], strides = [1, 1]} : vector<72x2xf32> to vector<24x2xf32>
    %885 = vector.extract_strided_slice %883 {offsets = [0, 0], sizes = [8, 2], strides = [1, 1]} : vector<24x2xf32> to vector<8x2xf32>
    %886 = vector.extract_strided_slice %884 {offsets = [0, 0], sizes = [8, 2], strides = [1, 1]} : vector<24x2xf32> to vector<8x2xf32>
    %887 = arith.addf %885, %886 : vector<8x2xf32>
    %888 = arith.negf %887 : vector<8x2xf32>
    %889 = math.exp %888 : vector<8x2xf32>
    %cst_112 = arith.constant 1.000000e+00 : f32
    %890 = vector.broadcast %cst_112 : f32 to vector<8x2xf32>
    %891 = arith.addf %890, %889 : vector<8x2xf32>
    %892 = arith.divf %890, %891 : vector<8x2xf32>
    %893 = vector.extract_strided_slice %883 {offsets = [8, 0], sizes = [8, 2], strides = [1, 1]} : vector<24x2xf32> to vector<8x2xf32>
    %894 = vector.extract_strided_slice %884 {offsets = [8, 0], sizes = [8, 2], strides = [1, 1]} : vector<24x2xf32> to vector<8x2xf32>
    %895 = arith.addf %893, %894 : vector<8x2xf32>
    %896 = arith.negf %895 : vector<8x2xf32>
    %897 = math.exp %896 : vector<8x2xf32>
    %cst_113 = arith.constant 1.000000e+00 : f32
    %898 = vector.broadcast %cst_113 : f32 to vector<8x2xf32>
    %899 = arith.addf %898, %897 : vector<8x2xf32>
    %900 = arith.divf %898, %899 : vector<8x2xf32>
    %901 = vector.extract_strided_slice %883 {offsets = [16, 0], sizes = [8, 2], strides = [1, 1]} : vector<24x2xf32> to vector<8x2xf32>
    %902 = vector.extract_strided_slice %884 {offsets = [16, 0], sizes = [8, 2], strides = [1, 1]} : vector<24x2xf32> to vector<8x2xf32>
    %903 = arith.mulf %892, %902 : vector<8x2xf32>
    %904 = arith.addf %901, %903 : vector<8x2xf32>
    %905 = math.tanh %904 : vector<8x2xf32>
    %cst_114 = arith.constant 1.000000e+00 : f32
    %906 = vector.broadcast %cst_114 : f32 to vector<8x2xf32>
    %907 = arith.subf %906, %900 : vector<8x2xf32>
    %908 = arith.mulf %907, %905 : vector<8x2xf32>
    %909 = arith.mulf %900, %882 : vector<8x2xf32>
    %910 = arith.addf %908, %909 : vector<8x2xf32>
    %911 = vector.extract_strided_slice %878 {offsets = [8, 0], sizes = [8, 2], strides = [1, 1]} : vector<16x2xf32> to vector<8x2xf32>
    %912 = vector.extract_strided_slice %881 {offsets = [48, 0], sizes = [24, 2], strides = [1, 1]} : vector<72x2xf32> to vector<24x2xf32>
    %913 = vector.extract_strided_slice %881 {offsets = [24, 0], sizes = [24, 2], strides = [1, 1]} : vector<72x2xf32> to vector<24x2xf32>
    %914 = vector.extract_strided_slice %912 {offsets = [0, 0], sizes = [8, 2], strides = [1, 1]} : vector<24x2xf32> to vector<8x2xf32>
    %915 = vector.extract_strided_slice %913 {offsets = [0, 0], sizes = [8, 2], strides = [1, 1]} : vector<24x2xf32> to vector<8x2xf32>
    %916 = arith.addf %914, %915 : vector<8x2xf32>
    %917 = arith.negf %916 : vector<8x2xf32>
    %918 = math.exp %917 : vector<8x2xf32>
    %cst_115 = arith.constant 1.000000e+00 : f32
    %919 = vector.broadcast %cst_115 : f32 to vector<8x2xf32>
    %920 = arith.addf %919, %918 : vector<8x2xf32>
    %921 = arith.divf %919, %920 : vector<8x2xf32>
    %922 = vector.extract_strided_slice %912 {offsets = [8, 0], sizes = [8, 2], strides = [1, 1]} : vector<24x2xf32> to vector<8x2xf32>
    %923 = vector.extract_strided_slice %913 {offsets = [8, 0], sizes = [8, 2], strides = [1, 1]} : vector<24x2xf32> to vector<8x2xf32>
    %924 = arith.addf %922, %923 : vector<8x2xf32>
    %925 = arith.negf %924 : vector<8x2xf32>
    %926 = math.exp %925 : vector<8x2xf32>
    %cst_116 = arith.constant 1.000000e+00 : f32
    %927 = vector.broadcast %cst_116 : f32 to vector<8x2xf32>
    %928 = arith.addf %927, %926 : vector<8x2xf32>
    %929 = arith.divf %927, %928 : vector<8x2xf32>
    %930 = vector.extract_strided_slice %912 {offsets = [16, 0], sizes = [8, 2], strides = [1, 1]} : vector<24x2xf32> to vector<8x2xf32>
    %931 = vector.extract_strided_slice %913 {offsets = [16, 0], sizes = [8, 2], strides = [1, 1]} : vector<24x2xf32> to vector<8x2xf32>
    %932 = arith.mulf %921, %931 : vector<8x2xf32>
    %933 = arith.addf %930, %932 : vector<8x2xf32>
    %934 = math.tanh %933 : vector<8x2xf32>
    %cst_117 = arith.constant 1.000000e+00 : f32
    %935 = vector.broadcast %cst_117 : f32 to vector<8x2xf32>
    %936 = arith.subf %935, %929 : vector<8x2xf32>
    %937 = arith.mulf %936, %934 : vector<8x2xf32>
    %938 = arith.mulf %929, %911 : vector<8x2xf32>
    %939 = arith.addf %937, %938 : vector<8x2xf32>
    %940 = tpu.concatenate %910, %939 in 0 : vector<8x2xf32>, vector<8x2xf32> -> vector<16x2xf32>
    %cst_118 = arith.constant dense<0.000000e+00> : vector<72x2xf32>
    %941 = tpu.matmul %36, %940, %cst_118 {dimension_numbers = #tpu.dot_dimension_numbers<[1], [0], [0], [1], [0, 0, 1, 1], [], []>} : vector<72x16xf32>, vector<16x2xf32>, vector<72x2xf32> -> vector<72x2xf32>
    %942 = vector.broadcast %37 : vector<72x1xf32> to vector<72x2xf32>
    %943 = arith.addf %941, %942 : vector<72x2xf32>
    %944 = vector.extract_strided_slice %940 {offsets = [0, 0], sizes = [8, 2], strides = [1, 1]} : vector<16x2xf32> to vector<8x2xf32>
    %945 = vector.extract_strided_slice %35 {offsets = [0, 30], sizes = [24, 2], strides = [1, 1]} : vector<24x32xf32> to vector<24x2xf32>
    %946 = vector.extract_strided_slice %943 {offsets = [0, 0], sizes = [24, 2], strides = [1, 1]} : vector<72x2xf32> to vector<24x2xf32>
    %947 = vector.extract_strided_slice %945 {offsets = [0, 0], sizes = [8, 2], strides = [1, 1]} : vector<24x2xf32> to vector<8x2xf32>
    %948 = vector.extract_strided_slice %946 {offsets = [0, 0], sizes = [8, 2], strides = [1, 1]} : vector<24x2xf32> to vector<8x2xf32>
    %949 = arith.addf %947, %948 : vector<8x2xf32>
    %950 = arith.negf %949 : vector<8x2xf32>
    %951 = math.exp %950 : vector<8x2xf32>
    %cst_119 = arith.constant 1.000000e+00 : f32
    %952 = vector.broadcast %cst_119 : f32 to vector<8x2xf32>
    %953 = arith.addf %952, %951 : vector<8x2xf32>
    %954 = arith.divf %952, %953 : vector<8x2xf32>
    %955 = vector.extract_strided_slice %945 {offsets = [8, 0], sizes = [8, 2], strides = [1, 1]} : vector<24x2xf32> to vector<8x2xf32>
    %956 = vector.extract_strided_slice %946 {offsets = [8, 0], sizes = [8, 2], strides = [1, 1]} : vector<24x2xf32> to vector<8x2xf32>
    %957 = arith.addf %955, %956 : vector<8x2xf32>
    %958 = arith.negf %957 : vector<8x2xf32>
    %959 = math.exp %958 : vector<8x2xf32>
    %cst_120 = arith.constant 1.000000e+00 : f32
    %960 = vector.broadcast %cst_120 : f32 to vector<8x2xf32>
    %961 = arith.addf %960, %959 : vector<8x2xf32>
    %962 = arith.divf %960, %961 : vector<8x2xf32>
    %963 = vector.extract_strided_slice %945 {offsets = [16, 0], sizes = [8, 2], strides = [1, 1]} : vector<24x2xf32> to vector<8x2xf32>
    %964 = vector.extract_strided_slice %946 {offsets = [16, 0], sizes = [8, 2], strides = [1, 1]} : vector<24x2xf32> to vector<8x2xf32>
    %965 = arith.mulf %954, %964 : vector<8x2xf32>
    %966 = arith.addf %963, %965 : vector<8x2xf32>
    %967 = math.tanh %966 : vector<8x2xf32>
    %cst_121 = arith.constant 1.000000e+00 : f32
    %968 = vector.broadcast %cst_121 : f32 to vector<8x2xf32>
    %969 = arith.subf %968, %962 : vector<8x2xf32>
    %970 = arith.mulf %969, %967 : vector<8x2xf32>
    %971 = arith.mulf %962, %944 : vector<8x2xf32>
    %972 = arith.addf %970, %971 : vector<8x2xf32>
    %973 = vector.extract_strided_slice %940 {offsets = [8, 0], sizes = [8, 2], strides = [1, 1]} : vector<16x2xf32> to vector<8x2xf32>
    %974 = vector.extract_strided_slice %943 {offsets = [48, 0], sizes = [24, 2], strides = [1, 1]} : vector<72x2xf32> to vector<24x2xf32>
    %975 = vector.extract_strided_slice %943 {offsets = [24, 0], sizes = [24, 2], strides = [1, 1]} : vector<72x2xf32> to vector<24x2xf32>
    %976 = vector.extract_strided_slice %974 {offsets = [0, 0], sizes = [8, 2], strides = [1, 1]} : vector<24x2xf32> to vector<8x2xf32>
    %977 = vector.extract_strided_slice %975 {offsets = [0, 0], sizes = [8, 2], strides = [1, 1]} : vector<24x2xf32> to vector<8x2xf32>
    %978 = arith.addf %976, %977 : vector<8x2xf32>
    %979 = arith.negf %978 : vector<8x2xf32>
    %980 = math.exp %979 : vector<8x2xf32>
    %cst_122 = arith.constant 1.000000e+00 : f32
    %981 = vector.broadcast %cst_122 : f32 to vector<8x2xf32>
    %982 = arith.addf %981, %980 : vector<8x2xf32>
    %983 = arith.divf %981, %982 : vector<8x2xf32>
    %984 = vector.extract_strided_slice %974 {offsets = [8, 0], sizes = [8, 2], strides = [1, 1]} : vector<24x2xf32> to vector<8x2xf32>
    %985 = vector.extract_strided_slice %975 {offsets = [8, 0], sizes = [8, 2], strides = [1, 1]} : vector<24x2xf32> to vector<8x2xf32>
    %986 = arith.addf %984, %985 : vector<8x2xf32>
    %987 = arith.negf %986 : vector<8x2xf32>
    %988 = math.exp %987 : vector<8x2xf32>
    %cst_123 = arith.constant 1.000000e+00 : f32
    %989 = vector.broadcast %cst_123 : f32 to vector<8x2xf32>
    %990 = arith.addf %989, %988 : vector<8x2xf32>
    %991 = arith.divf %989, %990 : vector<8x2xf32>
    %992 = vector.extract_strided_slice %974 {offsets = [16, 0], sizes = [8, 2], strides = [1, 1]} : vector<24x2xf32> to vector<8x2xf32>
    %993 = vector.extract_strided_slice %975 {offsets = [16, 0], sizes = [8, 2], strides = [1, 1]} : vector<24x2xf32> to vector<8x2xf32>
    %994 = arith.mulf %983, %993 : vector<8x2xf32>
    %995 = arith.addf %992, %994 : vector<8x2xf32>
    %996 = math.tanh %995 : vector<8x2xf32>
    %cst_124 = arith.constant 1.000000e+00 : f32
    %997 = vector.broadcast %cst_124 : f32 to vector<8x2xf32>
    %998 = arith.subf %997, %991 : vector<8x2xf32>
    %999 = arith.mulf %998, %996 : vector<8x2xf32>
    %1000 = arith.mulf %991, %973 : vector<8x2xf32>
    %1001 = arith.addf %999, %1000 : vector<8x2xf32>
    %1002 = tpu.concatenate %972, %1001 in 0 : vector<8x2xf32>, vector<8x2xf32> -> vector<16x2xf32>
    %cst_125 = arith.constant dense<0.000000e+00> : vector<72x2xf32>
    %1003 = tpu.matmul %36, %1002, %cst_125 {dimension_numbers = #tpu.dot_dimension_numbers<[1], [0], [0], [1], [0, 0, 1, 1], [], []>} : vector<72x16xf32>, vector<16x2xf32>, vector<72x2xf32> -> vector<72x2xf32>
    %1004 = vector.broadcast %37 : vector<72x1xf32> to vector<72x2xf32>
    %1005 = arith.addf %1003, %1004 : vector<72x2xf32>
    %1006 = vector.extract_strided_slice %1002 {offsets = [0, 0], sizes = [8, 2], strides = [1, 1]} : vector<16x2xf32> to vector<8x2xf32>
    %1007 = vector.extract_strided_slice %1002 {offsets = [8, 0], sizes = [8, 2], strides = [1, 1]} : vector<16x2xf32> to vector<8x2xf32>
    %1008 = vector.extract_strided_slice %1005 {offsets = [48, 0], sizes = [24, 2], strides = [1, 1]} : vector<72x2xf32> to vector<24x2xf32>
    %1009 = vector.extract_strided_slice %1005 {offsets = [24, 0], sizes = [24, 2], strides = [1, 1]} : vector<72x2xf32> to vector<24x2xf32>
    %1010 = vector.extract_strided_slice %1008 {offsets = [0, 0], sizes = [8, 2], strides = [1, 1]} : vector<24x2xf32> to vector<8x2xf32>
    %1011 = vector.extract_strided_slice %1009 {offsets = [0, 0], sizes = [8, 2], strides = [1, 1]} : vector<24x2xf32> to vector<8x2xf32>
    %1012 = arith.addf %1010, %1011 : vector<8x2xf32>
    %1013 = arith.negf %1012 : vector<8x2xf32>
    %1014 = math.exp %1013 : vector<8x2xf32>
    %cst_126 = arith.constant 1.000000e+00 : f32
    %1015 = vector.broadcast %cst_126 : f32 to vector<8x2xf32>
    %1016 = arith.addf %1015, %1014 : vector<8x2xf32>
    %1017 = arith.divf %1015, %1016 : vector<8x2xf32>
    %1018 = vector.extract_strided_slice %1008 {offsets = [8, 0], sizes = [8, 2], strides = [1, 1]} : vector<24x2xf32> to vector<8x2xf32>
    %1019 = vector.extract_strided_slice %1009 {offsets = [8, 0], sizes = [8, 2], strides = [1, 1]} : vector<24x2xf32> to vector<8x2xf32>
    %1020 = arith.addf %1018, %1019 : vector<8x2xf32>
    %1021 = arith.negf %1020 : vector<8x2xf32>
    %1022 = math.exp %1021 : vector<8x2xf32>
    %cst_127 = arith.constant 1.000000e+00 : f32
    %1023 = vector.broadcast %cst_127 : f32 to vector<8x2xf32>
    %1024 = arith.addf %1023, %1022 : vector<8x2xf32>
    %1025 = arith.divf %1023, %1024 : vector<8x2xf32>
    %1026 = vector.extract_strided_slice %1008 {offsets = [16, 0], sizes = [8, 2], strides = [1, 1]} : vector<24x2xf32> to vector<8x2xf32>
    %1027 = vector.extract_strided_slice %1009 {offsets = [16, 0], sizes = [8, 2], strides = [1, 1]} : vector<24x2xf32> to vector<8x2xf32>
    %1028 = arith.mulf %1017, %1027 : vector<8x2xf32>
    %1029 = arith.addf %1026, %1028 : vector<8x2xf32>
    %1030 = math.tanh %1029 : vector<8x2xf32>
    %cst_128 = arith.constant 1.000000e+00 : f32
    %1031 = vector.broadcast %cst_128 : f32 to vector<8x2xf32>
    %1032 = arith.subf %1031, %1025 : vector<8x2xf32>
    %1033 = arith.mulf %1032, %1030 : vector<8x2xf32>
    %1034 = arith.mulf %1025, %1007 : vector<8x2xf32>
    %1035 = arith.addf %1033, %1034 : vector<8x2xf32>
    %1036 = tpu.concatenate %1006, %1035 in 0 : vector<8x2xf32>, vector<8x2xf32> -> vector<16x2xf32>
    %c256 = arith.constant 256 : index
    %c0_129 = arith.constant 0 : index
    %1037 = vector.load %arg1[%c256, %c0_129] : memref<304x112xf32, #tpu.memory_space<vmem>>, vector<16x8xf32>
    %c272 = arith.constant 272 : index
    %c0_130 = arith.constant 0 : index
    %1038 = vector.load %arg1[%c272, %c0_130] : memref<304x112xf32, #tpu.memory_space<vmem>>, vector<2x8xf32>
    %cst_131 = arith.constant 0.000000e+00 : f32
    %1039 = vector.broadcast %cst_131 : f32 to vector<16x8xf32>
    %c280 = arith.constant 280 : index
    %c0_132 = arith.constant 0 : index
    %1040 = vector.load %arg1[%c280, %c0_132] : memref<304x112xf32, #tpu.memory_space<vmem>>, vector<1x8xf32>
    %1041 = vector.broadcast %1040 : vector<1x8xf32> to vector<16x8xf32>
    %1042 = arith.addf %1039, %1041 : vector<16x8xf32>
    %1043 = vector.extract_strided_slice %29 {offsets = [0, 0], sizes = [8, 12], strides = [1, 1]} : vector<16x32xf32> to vector<8x12xf32>
    %1044 = vector.extract_strided_slice %29 {offsets = [0, 16], sizes = [8, 12], strides = [1, 1]} : vector<16x32xf32> to vector<8x12xf32>
    %1045 = tpu.concatenate %1043, %1044 in 0 : vector<8x12xf32>, vector<8x12xf32> -> vector<16x12xf32>
    %1046 = vector.extract_strided_slice %1037 {offsets = [0, 0], sizes = [12, 8], strides = [1, 1]} : vector<16x8xf32> to vector<12x8xf32>
    %cst_133 = arith.constant dense<0.000000e+00> : vector<16x8xf32>
    %1047 = tpu.matmul %1045, %1046, %cst_133 {dimension_numbers = #tpu.dot_dimension_numbers<[1], [0], [0], [1], [0, 0, 1, 1], [], []>} : vector<16x12xf32>, vector<12x8xf32>, vector<16x8xf32> -> vector<16x8xf32>
    %1048 = arith.addf %1042, %1047 : vector<16x8xf32>
    %1049 = vector.extract_strided_slice %29 {offsets = [8, 0], sizes = [8, 4], strides = [1, 1]} : vector<16x32xf32> to vector<8x4xf32>
    %1050 = vector.extract_strided_slice %29 {offsets = [8, 16], sizes = [8, 4], strides = [1, 1]} : vector<16x32xf32> to vector<8x4xf32>
    %1051 = tpu.concatenate %1049, %1050 in 0 : vector<8x4xf32>, vector<8x4xf32> -> vector<16x4xf32>
    %1052 = vector.extract_strided_slice %1037 {offsets = [12, 0], sizes = [4, 8], strides = [1, 1]} : vector<16x8xf32> to vector<4x8xf32>
    %cst_134 = arith.constant dense<0.000000e+00> : vector<16x8xf32>
    %1053 = tpu.matmul %1051, %1052, %cst_134 {dimension_numbers = #tpu.dot_dimension_numbers<[1], [0], [0], [1], [0, 0, 1, 1], [], []>} : vector<16x4xf32>, vector<4x8xf32>, vector<16x8xf32> -> vector<16x8xf32>
    %1054 = arith.addf %1048, %1053 : vector<16x8xf32>
    %1055 = vector.extract_strided_slice %1036 {offsets = [0, 0], sizes = [8, 1], strides = [1, 1]} : vector<16x2xf32> to vector<8x1xf32>
    %1056 = vector.extract_strided_slice %1036 {offsets = [0, 1], sizes = [8, 1], strides = [1, 1]} : vector<16x2xf32> to vector<8x1xf32>
    %1057 = tpu.concatenate %1055, %1056 in 0 : vector<8x1xf32>, vector<8x1xf32> -> vector<16x1xf32>
    %1058 = vector.extract_strided_slice %1038 {offsets = [0, 0], sizes = [1, 8], strides = [1, 1]} : vector<2x8xf32> to vector<1x8xf32>
    %1059 = vector.broadcast %1057 : vector<16x1xf32> to vector<16x8xf32>
    %1060 = vector.broadcast %1058 : vector<1x8xf32> to vector<16x8xf32>
    %1061 = arith.mulf %1059, %1060 : vector<16x8xf32>
    %1062 = arith.addf %1054, %1061 : vector<16x8xf32>
    %1063 = vector.extract_strided_slice %1036 {offsets = [8, 0], sizes = [8, 1], strides = [1, 1]} : vector<16x2xf32> to vector<8x1xf32>
    %1064 = vector.extract_strided_slice %1036 {offsets = [8, 1], sizes = [8, 1], strides = [1, 1]} : vector<16x2xf32> to vector<8x1xf32>
    %1065 = tpu.concatenate %1063, %1064 in 0 : vector<8x1xf32>, vector<8x1xf32> -> vector<16x1xf32>
    %1066 = vector.extract_strided_slice %1038 {offsets = [1, 0], sizes = [1, 8], strides = [1, 1]} : vector<2x8xf32> to vector<1x8xf32>
    %1067 = vector.broadcast %1065 : vector<16x1xf32> to vector<16x8xf32>
    %1068 = vector.broadcast %1066 : vector<1x8xf32> to vector<16x8xf32>
    %1069 = arith.mulf %1067, %1068 : vector<16x8xf32>
    %1070 = arith.addf %1062, %1069 : vector<16x8xf32>
    %cst_135 = arith.constant dense<0.000000e+00> : vector<16xf32>
    %1071 = vector.multi_reduction <add>, %1070, %cst_135 [1] : vector<16x8xf32> to vector<16xf32>
    %1072 = vector.shape_cast %1071 : vector<16xf32> to vector<16x1xf32>
    %1073 = vector.extract_strided_slice %1072 {offsets = [0, 0], sizes = [8, 1], strides = [1, 1]} : vector<16x1xf32> to vector<8x1xf32>
    %1074 = vector.extract_strided_slice %1072 {offsets = [8, 0], sizes = [8, 1], strides = [1, 1]} : vector<16x1xf32> to vector<8x1xf32>
    %1075 = arith.addf %1073, %1074 : vector<8x1xf32>
    %cst_136 = arith.constant 6.250000e-02 : f32
    %1076 = vector.broadcast %cst_136 : f32 to vector<8x1xf32>
    %1077 = arith.mulf %1075, %1076 : vector<8x1xf32>
    %1078 = tpu.concatenate %1077, %1077 in 0 : vector<8x1xf32>, vector<8x1xf32> -> vector<16x1xf32>
    %1079 = vector.broadcast %1078 : vector<16x1xf32> to vector<16x8xf32>
    %1080 = arith.subf %1070, %1079 : vector<16x8xf32>
    %1081 = arith.mulf %1080, %1080 : vector<16x8xf32>
    %cst_137 = arith.constant dense<0.000000e+00> : vector<16xf32>
    %1082 = vector.multi_reduction <add>, %1081, %cst_137 [1] : vector<16x8xf32> to vector<16xf32>
    %1083 = vector.shape_cast %1082 : vector<16xf32> to vector<16x1xf32>
    %1084 = vector.extract_strided_slice %1083 {offsets = [0, 0], sizes = [8, 1], strides = [1, 1]} : vector<16x1xf32> to vector<8x1xf32>
    %1085 = vector.extract_strided_slice %1083 {offsets = [8, 0], sizes = [8, 1], strides = [1, 1]} : vector<16x1xf32> to vector<8x1xf32>
    %1086 = arith.addf %1084, %1085 : vector<8x1xf32>
    %cst_138 = arith.constant 6.250000e-02 : f32
    %1087 = vector.broadcast %cst_138 : f32 to vector<8x1xf32>
    %1088 = arith.mulf %1086, %1087 : vector<8x1xf32>
    %cst_139 = arith.constant 9.99999974E-6 : f32
    %1089 = vector.broadcast %cst_139 : f32 to vector<8x1xf32>
    %1090 = arith.addf %1088, %1089 : vector<8x1xf32>
    %1091 = math.rsqrt %1090 : vector<8x1xf32>
    %c288 = arith.constant 288 : index
    %c0_140 = arith.constant 0 : index
    %1092 = vector.load %arg1[%c288, %c0_140] : memref<304x112xf32, #tpu.memory_space<vmem>>, vector<8x1xf32>
    %1093 = arith.mulf %1091, %1092 : vector<8x1xf32>
    %1094 = tpu.concatenate %1093, %1093 in 0 : vector<8x1xf32>, vector<8x1xf32> -> vector<16x1xf32>
    %c296 = arith.constant 296 : index
    %c0_141 = arith.constant 0 : index
    %1095 = vector.load %arg1[%c296, %c0_141] : memref<304x112xf32, #tpu.memory_space<vmem>>, vector<8x1xf32>
    %1096 = tpu.concatenate %1095, %1095 in 0 : vector<8x1xf32>, vector<8x1xf32> -> vector<16x1xf32>
    %1097 = vector.broadcast %1094 : vector<16x1xf32> to vector<16x8xf32>
    %1098 = arith.mulf %1080, %1097 : vector<16x8xf32>
    %1099 = vector.broadcast %1096 : vector<16x1xf32> to vector<16x8xf32>
    %1100 = arith.addf %1098, %1099 : vector<16x8xf32>
    %c0_142 = arith.constant 0 : index
    %c0_143 = arith.constant 0 : index
    %1101 = vector.load %arg2[%c0_142, %c0_143] : memref<16x8xf32, #tpu.memory_space<vmem>>, vector<16x8xf32>
    tpu.vector_store %arg2[%c0_142, %c0_143], %1100 {strides = array<i32>} : memref<16x8xf32, #tpu.memory_space<vmem>>, vector<16x8xf32>,
    return
  }
}

</mosaic_0001>

<bundles_post_ra>
// kernel: _forward.1
= control target key start
LH: loop header
LB: loop body
LE: loop exit
PB: predicated region body
PF: predicated region fallthrough
CT: control target
= control target key end

     0   :  { %vm30_vm0 = vcmask 261120   ;;  %v5170_v7 = vmov 0   ;;  %s6476_s0 = inlined_call_operand.vmem [shape: f32[40,40], index: 0, kind: input, shape index: {}]   ;;  %s6477_s1 = inlined_call_operand.vmem [shape: f32[304,112], index: 1, kind: input, shape index: {}]   ;;  %s6478_s2 = inlined_call_operand.hbm [shape: f32[16,8], index: 2, kind: output, shape index: {}]  }
   0x1   :  { %v12_v0 = vld [vmem:[%s6476_s0] sm:$0xff]  ;;  %v13_v1 = vld [vmem:[%s6476_s0 + $0x8] sm:$0xff]  ;;  %v14_v2 = vld [vmem:[%s6476_s0 + $0x10] sm:$0xff]  ;;  %4801 = vset.pattern.permute.xlu1 %v5170_v7  ;;  %4800 = vset.pattern.permute.xlu0 %v5170_v7 }
   0x2   :  { %v4539_v3 = vpack.c.bf16 %v13_v1, %v12_v0  ;;  %v15_v4 = vld [vmem:[%s6476_s0 + $0x18] sm:$0xff]  ;;  %v16_v5 = vld [vmem:[%s6477_s1] sm:$0xff]  ;;  %v17_v12 = vld [vmem:[%s6477_s1 + $0x8] sm:$0xff] }
   0x3   :  { %v4543_v6 = vpack.c.bf16 %v15_v4, %v14_v2  ;;  %3988 = vmatprep.mubr.msk.f32.mxu0 %vm30_vm0, %v16_v5  ;;  %v253_v8 = vld [vmem:[%s6477_s1 + $0x60] sm:$0xff]  ;;  %v252_v9 = vld [vmem:[%s6477_s1 + $0x58] sm:$0xff] }
   0x4   :  { %4540 = vmatprep.subr.bf16.mxu0 %v4539_v3  ;;  %262 = vperm.xlu1 %4801, %v253_v8   ;;  %v374_v10 = vld [vmem:[%s6477_s1 + $0xc0] sm:$0xff]  ;;  %v373_v11 = vld [vmem:[%s6477_s1 + $0xb8] sm:$0xff] }
   0x5   :  { %4542 = vmatpush3.bf16.msra.mxu0 %v4539_v3  ;;  %257 = vperm.xlu0 %4800, %v252_v9  }
   0x6   :  { %4544 = vmatprep.subr.bf16.mxu0 %v4543_v6 }
   0x8   :  { %389 = vperm.xlu1 %4801, %v374_v10  }
   0x9   :  { %4546 = vmatpush3.bf16.msra.mxu0 %v4543_v6 }
   0xa   :  { %7 = vsyncpa [#allocation3], 0  ;;  %v5171_v13 = vmov 0.0   ;;  %v248_v14 = vld [vmem:[%s6476_s0 + $0x20] sm:$0xf]  ;;  %vm280_vm1 = vcmask 1043456   ;;  %384 = vperm.xlu0 %4800, %v373_v11  }
   0xb   :  { %4022 = vmatprep.subr.mxu0 %v5171_v13  ;;  %v375_v15 = vld [vmem:[%s6477_s1 + $0xc8] sm:$0xff]  ;;  %vm5172_vm2 = vmmov 0   ;;  %v249_v17 = vld [vmem:[%s6477_s1 + $0x40] sm:$0xff]  ;;  %vm270_vm3 = vcmask 31744   ;;  %v376_v19 = vld [vmem:[%s6477_s1 + $0xd0] sm:$0xff]  ;;  %vm451_vm4 = vcmask 130048  }
   0xc   :  { %v254_v16 = vld [vmem:[%s6477_s1 + $0x68] sm:$0xff]  ;;  %3989 = vmatmul.mubr.msk.f32.vlgmr.msra.gmra.mrb[0].mxu0 %vm30_vm0, %v17_v12  ;;  %394 = vperm.xlu1 %4801, %v375_v15   ;;  %v380_v21 = vld [vmem:[%s6477_s1 + $0xf0] sm:$0xff]  ;;  %v377_v22 = vld [vmem:[%s6477_s1 + $0xd8] sm:$0xff]  ;;  %s5173_s30 = smov 2   ;;  %s5174_s5 = smov 127   ;;  %vm166_vm5 = vcmask 916480  }
   0xd   :  { %4023 = vmatpush3.msk.msra.mxu0 %vm280_vm1, %v248_v14  ;;  %4024 = vmatprep.mubr.msk.f32.mxu0 %vm5172_vm2, %v5171_v13  ;;  %v379_v18 = vld [vmem:[%s6477_s1 + $0xe8] sm:$0xff]  ;;  %v251_v23 = vld [vmem:[%s6477_s1 + $0x50] sm:$0xff]  ;;  %v381_v24 = vld [vmem:[%s6477_s1 + $0xf8] sm:$0xff]  ;;  %s5175_s0 = smov 125   ;;  %s5176_s14 = smov 123   ;;  %vm5209_vm6 = vmmov 1  }
   0xe   :  { %267 = vperm.xlu0 %4800, %v254_v16   ;;  %4033 = vmatprep.subr.mxu0 %v5171_v13  ;;  %v250_v20 = vld [vmem:[%s6477_s1 + $0x48] sm:$0xff]  ;;  %v378_v25 = vld [vmem:[%s6477_s1 + $0xe0] sm:$0xff]  ;;  %v18_v26 = vld [vmem:[%s6477_s1 + $0x10] sm:$0xff]  ;;  %s5177_s17 = smov 121   ;;  %s5178_s22 = smov 126   ;;  %vm3278_vm8 = vcmask 97280  }
   0xf   :  { %v19_v27 = vld [vmem:[%s6477_s1 + $0x18] sm:$0xff]  ;;  %v5344_v3 = vld [vmem:[%s6477_s1 + $0x70] sm:$0xff]  ;;  %v5367_v9 = vld [vmem:[%s6477_s1 + $0x80] sm:$0xff]  ;;  %s5179_s23 = smov 124   ;;  %s5180_s24 = smov 122   ;;  %vm3486_vm9 = vcmask 64512  }
  0x10   :  { %4025 = vmatmul.mubr.msk.f32.vlgmr.msra.gmra.mrb[2].mxu0 %vm270_vm3, %v249_v17  ;;  %414 = vperm.xlu1 %4801, %v379_v18   ;;  %v5356_v5 = vld [vmem:[%s6477_s1 + $0x78] sm:$0xff]  ;;  %v5379_v11 = vld [vmem:[%s6477_s1 + $0x88] sm:$0xff]  ;;  %v5390_v12 = vld [vmem:[%s6477_s1 + $0x90] sm:$0xff]  ;;  %s5181_s25 = smov 120   ;;  %s5183_s3 = smov 4  }
  0x11   :  { %4027 = vmatprep.mubr.msk.f32.mxu0 %vm5172_vm2, %v5171_v13  ;;  %v5400_v14 = vld [vmem:[%s6477_s1 + $0x98] sm:$0xff]  ;;  %v5410_v15 = vld [vmem:[%s6477_s1 + $0xa0] sm:$0xff]  ;;  %v5420_v16 = vld [vmem:[%s6477_s1 + $0xa8] sm:$0xff]  ;;  %s5184_s4 = smov 6   ;;  %s5185_s6 = smov 8  }
  0x12   :  { %399 = vperm.xlu0 %4800, %v376_v19   ;;  %v5429_v17 = vld [vmem:[%s6477_s1 + $0xb0] sm:$0xff]  ;;  %s5186_s7 = smov 10   ;;  %s5188_s26 = smov 12   ;;  %vm4621_vm7 = vmpackc.low %vm280_vm1, %vm5209_vm6 }
  0x13   :  { %s5189_s27 = smov 116   ;;  %s5190_s28 = smov 14  }
  0x14   :  { %4028 = vmatmul.mubr.msk.f32.gmra.mrb[4].mxu0 %vm270_vm3, %v250_v20  ;;  %419 = vperm.xlu1 %4801, %v380_v21   ;;  %s5191_s29 = smov 114   ;;  %s5196_s8 = smov 20  }
  0x15   :  { %4030 = vmatprep.mubr.msk.f32.mxu0 %vm5172_vm2, %v5171_v13  ;;  %s5197_s9 = smov 108   ;;  %s5198_s10 = smov 22  }
  0x16   :  { %404 = vperm.xlu0 %4800, %v377_v22   ;;  %s5199_s11 = smov 106  }
  0x18   :  { %4031 = vmatmul.mubr.msk.f32.gmra.mrb[6].mxu0 %vm270_vm3, %v251_v23  ;;  %424 = vperm.xlu1 %4801, %v381_v24  }
  0x19   :  { %4035 = vmatprep.mubr.msk.f32.mxu0 %vm5172_vm2, %v5171_v13 }
  0x1a   :  { %409 = vperm.xlu0 %4800, %v378_v25  }
  0x1c   :  { %22 = vperm.xlu1 %4801, %v18_v26  }
  0x20   :  { %27 = vperm.xlu1 %4801, %v19_v27  }
  0x83   :  { %v263_v31 = vpop.permute.xlu1 %262 }
  0x84   :  { %v258_v28 = vpop.permute.xlu0 %257 }
  0x87   :  { %v5325_v41 = vpop.permute.xlu1 %389 }
  0x89   :  { %v5319_v35 = vpop.permute.xlu0 %384 }
  0x8b   :  { %v5329_v48 = vpop.permute.xlu1 %394 }
  0x8d   :  { %v268_v53 = vpop.permute.xlu0 %267 }
  0x8f   :  { %v5331_v51 = vpop.permute.xlu1 %414 }
  0x93   :  { %v5337_v57 = vpop.permute.xlu1 %419 }
  0x97   :  { %v5339_v59 = vpop.permute.xlu1 %424 }
  0x9b   :  { %v23_v0 = vpop.permute.xlu1 %22 }
  0x9f   :  { %v28_v6 = vpop.permute.xlu1 %27 }
  0xdf   :  { %v3990_v29 = vpop.f32.mrb[0].mxu0 }
  0xe0   :  { %v103_v30 = vpop.f32.mrb[1].mxu0  ;;  %v109_v8 = vadd.f32 %v3990_v29, %v28_v6 }
  0xe1   :  { %v104_v1 = vadd.f32 %v103_v30, %v23_v0  ;;  %v400_v30 = vpop.permute.xlu0 %399 }
  0xe2   :  { %v5372_v10 = vmax.f32 %v109_v8, 0.0 }
  0xe3   :  { %v350_v32 = vpop.f32.mrb[2].mxu0  ;;  %v5349_v4 = vmax.f32 %v104_v1, 0.0 }
  0xe4   :  { %v5317_v33 = vadd.f32 %v350_v32, %v258_v28  ;;  %v4026_v34 = vpop.f32.mrb[3].mxu0 }
  0xe5   :  { %v5445_v34 = vadd.f32 %v5331_v51, %v400_v30 }
  0xe6   :  { %v430_v36 = vadd.f32 %v5319_v35, %v5317_v33 }
  0xe7   :  { %v355_v37 = vpop.f32.mrb[4].mxu0 }
  0xe8   :  { %v5323_v38 = vadd.f32 %v355_v37, %v263_v31  ;;  %v4029_v39 = vpop.f32.mrb[5].mxu0  ;;  %v3557_v40 = vmul.f32 -1.442695, %v430_v36 }
  0xea   :  { %4806 = vpow2.f32 %v3557_v40  ;;  %v437_v42 = vadd.f32 %v5325_v41, %v5323_v38  ;;  %v405_v40 = vpop.permute.xlu0 %404 }
  0xeb   :  { %v360_v43 = vpop.f32.mrb[6].mxu0 }
  0xec   :  { %v4032_v44 = vpop.f32.mrb[7].mxu0  ;;  %v3558_v45 = vmul.f32 -1.442695, %v437_v42  ;;  %v5333_v54 = vadd.f32 %v360_v43, %v268_v53  ;;  %v5449_v42 = vadd.f32 %v5337_v57, %v405_v40 }
  0xee   :  { %4808 = vpow2.f32 %v3558_v45 }
  0xf4   :  { %v4807_v46 = vpop.eup %4806 }
  0xf5   :  { %v434_v47 = vadd.f32 1.0, %v4807_v46 }
  0xf7   :  { %4810 = vrcp.f32 %v434_v47 }
  0xf8   :  { %v4809_v49 = vpop.eup %4808 }
  0xf9   :  { %v441_v50 = vadd.f32 1.0, %v4809_v49 }
  0xfb   :  { %4812 = vrcp.f32 %v441_v50 }
 0x101   :  { %v4811_v52 = vpop.eup %4810 }
 0x102   :  { %v444_v55 = vmul.f32 %v4811_v52, %v5329_v48 }
 0x104   :  { %v445_v56 = vadd.f32 %v444_v55, %v5333_v54 }
 0x105   :  { %v4813_v58 = vpop.eup %4812 }
 0x106   :  { %4814 = vtanh.f32 %v445_v56  ;;  %v447_v60 = vsub.f32 1.0, %v4813_v58  ;;  %v449_v63 = vmul.f32 0.0, %v4813_v58  ;;  %v5452_v56 = vpop.permute.xlu0 %409 }
 0x110   :  { %v4815_v61 = vpop.eup %4814 }
 0x111   :  { %v448_v62 = vmul.f32 %v4815_v61, %v447_v60 }
 0x113   :  { %v450_v2 = vadd.f32 %v449_v63, %v448_v62 }
 0x115   :  { %621 = vrot.lane.b32.xlu1 %v450_v2, %s5173_s30  ;;  %4034 = vmatpush3.msra.mxu0 %v450_v2 }
 0x116   :  { %4036 = vmatmul.mubr.msk.f32.vlgmr.msra.gmra.mrb[8].mxu0 %vm451_vm4, %v5344_v3 }
 0x117   :  { %4038 = vmatprep.mubr.msk.f32.mxu0 %vm5172_vm2, %v5171_v13 }
 0x119   :  { %115 = vrot.lane.b32.xlu1 %v5349_v4, %s5174_s5 }
 0x11a   :  { %4039 = vmatmul.mubr.msk.f32.gmra.mrb[10].mxu0 %vm451_vm4, %v5356_v5 }
 0x11b   :  { %4041 = vmatprep.mubr.msk.f32.mxu0 %vm5172_vm2, %v5171_v13 }
 0x11d   :  { %121 = vrot.lane.b32.xlu1 %v5349_v4, %s5175_s0 }
 0x11e   :  { %4042 = vmatmul.mubr.msk.f32.gmra.mrb[12].mxu0 %vm451_vm4, %v5367_v9 }
 0x11f   :  { %4044 = vmatprep.mubr.msk.f32.mxu0 %vm5172_vm2, %v5171_v13 }
 0x121   :  { %128 = vrot.lane.b32.xlu1 %v5372_v10, %s5174_s5 }
 0x122   :  { %4045 = vmatmul.mubr.msk.f32.gmra.mrb[14].mxu0 %vm451_vm4, %v5379_v11 }
 0x123   :  { %4047 = vmatprep.mubr.msk.f32.mxu0 %vm5172_vm2, %v5171_v13 }
 0x125   :  { %134 = vrot.lane.b32.xlu1 %v5372_v10, %s5175_s0  ;;  %s5187_s0 = smov 118  }
 0x126   :  { %4048 = vmatmul.mubr.msk.f32.gmra.mrb[16].mxu0 %vm451_vm4, %v5390_v12 }
 0x127   :  { %4050 = vmatprep.mubr.msk.f32.mxu0 %vm5172_vm2, %v5171_v13 }
 0x129   :  { %140 = vrot.lane.b32.xlu1 %v5372_v10, %s5176_s14 }
 0x12a   :  { %4051 = vmatmul.mubr.msk.f32.gmra.mrb[18].mxu0 %vm451_vm4, %v5400_v14 }
 0x12b   :  { %4053 = vmatprep.mubr.msk.f32.mxu0 %vm5172_vm2, %v5171_v13 }
 0x12d   :  { %146 = vrot.lane.b32.xlu1 %v5372_v10, %s5177_s17 }
 0x12e   :  { %4054 = vmatmul.mubr.msk.f32.gmra.mrb[14].mxu0 %vm451_vm4, %v5410_v15 }
 0x12f   :  { %4056 = vmatprep.mubr.msk.f32.mxu0 %vm5172_vm2, %v5171_v13 }
 0x132   :  { %4057 = vmatmul.mubr.msk.f32.gmra.mrb[16].mxu0 %vm451_vm4, %v5420_v16 }
 0x133   :  { %4059 = vmatprep.mubr.msk.f32.mxu0 %vm5172_vm2, %v5171_v13 }
 0x136   :  { %4060 = vmatmul.mubr.msk.f32.gmra.mrb[20].mxu0 %vm451_vm4, %v5429_v17 }
 0x137   :  { %4097 = vmatprep.mubr.msk.f32.mxu0 %vm5172_vm2, %v5171_v13 }
 0x187   :  { %v5435_v18 = vpop.permute.xlu1 %621 }
 0x18b   :  { %v116_v19 = vpop.permute.xlu1 %115 }
 0x18c   :  { %v4547_v20 = vpack.c.bf16 %v116_v19, %v5349_v4 }
 0x18e   :  { %4548 = vmatprep.subr.bf16.mxu1 %v4547_v20 }
 0x18f   :  { %4550 = vmatpush3.bf16.msra.mxu1 %v4547_v20 }
 0x1e9   :  { %v545_v21 = vpop.f32.mrb[8].mxu0 }
 0x1ea   :  { %v546_v22 = vadd.f32 %v545_v21, %v5319_v35  ;;  %v4037_v23 = vpop.f32.mrb[9].mxu0 }
 0x1ec   :  { %590 = vrot.lane.b32.xlu0 %v546_v22, %s5173_s30 }
 0x1ed   :  { %v550_v24 = vpop.f32.mrb[10].mxu0 }
 0x1ee   :  { %v551_v25 = vadd.f32 %v550_v24, %v5325_v41  ;;  %v4040_v26 = vpop.f32.mrb[11].mxu0 }
 0x1f0   :  { %601 = vrot.lane.b32.xlu0 %v551_v25, %s5173_s30 }
 0x1f1   :  { %v555_v27 = vpop.f32.mrb[12].mxu0 }
 0x1f2   :  { %v556_v28 = vadd.f32 %v555_v27, %v5329_v48  ;;  %v4043_v29 = vpop.f32.mrb[13].mxu0 }
 0x1f4   :  { %612 = vrot.lane.b32.xlu0 %v556_v28, %s5173_s30 }
 0x1fd   :  { %v570_v31 = vpop.f32.mrb[18].mxu0 }
 0x1fe   :  { %v4052_v32 = vpop.f32.mrb[19].mxu0  ;;  %v571_v57 = vadd.f32 %v570_v31, %v5452_v56 }
 0x1ff   :  { %v152_v32 = vld [vmem:[%s6477_s1 + $0x20] sm:$0xff] }
 0x200   :  { %4019 = vmatprep.mubr.msk.f32.mxu1 %vm166_vm5, %v152_v32 }
 0x201   :  { %v575_v36 = vpop.f32.mrb[14].mxu0 }
 0x202   :  { %v4627_v37 = vadd.f32 %v5445_v34, %v575_v36  ;;  %v4055_v39 = vpop.f32.mrb[15].mxu0 }
 0x204   :  { %v3570_v43 = vmul.f32 -1.442695, %v4627_v37 }
 0x205   :  { %v580_v44 = vpop.f32.mrb[16].mxu0 }
 0x206   :  { %4816 = vpow2.f32 %v3570_v43  ;;  %v4629_v45 = vadd.f32 %v5449_v42, %v580_v44  ;;  %v4058_v46 = vpop.f32.mrb[17].mxu0 }
 0x207   :  { %v122_v46 = vpop.permute.xlu1 %121 }
 0x208   :  { %v3571_v47 = vmul.f32 -1.442695, %v4629_v45  ;;  %v5182_v45 = vmov 0.0|0.0  }
 0x209   :  { %v585_v49 = vpop.f32.mrb[20].mxu0  ;;  %4578 = vmatprep.subr.bf16.mxu0 %v5182_v45 }
 0x20a   :  { %v4061_v50 = vpop.f32.mrb[21].mxu0  ;;  %4818 = vpow2.f32 %v3571_v47  ;;  %v586_v60 = vadd.f32 %v585_v49, %v5339_v59 }
 0x210   :  { %v4817_v51 = vpop.eup %4816 }
 0x211   :  { %v630_v52 = vadd.f32 1.0, %v4817_v51  ;;  %v129_v51 = vpop.permute.xlu1 %128 }
 0x213   :  { %4820 = vrcp.f32 %v630_v52 }
 0x214   :  { %v4819_v53 = vpop.eup %4818 }
 0x215   :  { %v637_v55 = vadd.f32 1.0, %v4819_v53  ;;  %v135_v53 = vpop.permute.xlu1 %134 }
 0x217   :  { %4822 = vrcp.f32 %v637_v55 }
 0x21d   :  { %v4821_v58 = vpop.eup %4820 }
 0x21e   :  { %v640_v61 = vmul.f32 %v4821_v58, %v571_v57 }
 0x220   :  { %v641_v62 = vadd.f32 %v640_v61, %v586_v60  ;;  %v141_v61 = vpop.permute.xlu1 %140 }
 0x221   :  { %v4823_v63 = vpop.eup %4822 }
 0x222   :  { %4824 = vtanh.f32 %v641_v62  ;;  %v643_v0 = vsub.f32 1.0, %v4823_v63  ;;  %v645_v6 = vmul.f32 0.0, %v4823_v63 }
 0x22c   :  { %v4825_v1 = vpop.eup %4824 }
 0x22d   :  { %v644_v2 = vmul.f32 %v4825_v1, %v643_v0  ;;  %v147_v0 = vpop.permute.xlu1 %146 }
 0x22f   :  { %v646_v8 = vadd.f32 %v645_v6, %v644_v2 }
 0x231   :  { %648 = vrot.lane.b32.xlu0 %v646_v8, %s5173_s30 }
 0x235   :  { %118 = vrot.lane.b32.xlu0 %v5349_v4, %s5178_s22 }
 0x239   :  { %124 = vrot.lane.b32.xlu0 %v5349_v4, %s5179_s23 }
 0x23d   :  { %131 = vrot.lane.b32.xlu0 %v5372_v10, %s5178_s22 }
 0x241   :  { %137 = vrot.lane.b32.xlu0 %v5372_v10, %s5179_s23 }
 0x245   :  { %143 = vrot.lane.b32.xlu0 %v5372_v10, %s5180_s24 }
 0x249   :  { %149 = vrot.lane.b32.xlu0 %v5372_v10, %s5181_s25 }
 0x25e   :  { %v591_v19 = vpop.permute.xlu0 %590 }
 0x25f   :  { %v593_v20 = vadd.f32 %v591_v19, %v5317_v33 }
 0x261   :  { %v3568_v21 = vmul.f32 -1.442695, %v593_v20 }
 0x262   :  { %v602_v22 = vpop.permute.xlu0 %601 }
 0x263   :  { %4826 = vpow2.f32 %v3568_v21  ;;  %v604_v4 = vadd.f32 %v602_v22, %v5323_v38 }
 0x265   :  { %v3569_v23 = vmul.f32 -1.442695, %v604_v4 }
 0x266   :  { %v613_v29 = vpop.permute.xlu0 %612 }
 0x267   :  { %4828 = vpow2.f32 %v3569_v23 }
 0x26d   :  { %v4827_v24 = vpop.eup %4826 }
 0x26e   :  { %v597_v25 = vadd.f32 1.0, %v4827_v24 }
 0x270   :  { %4830 = vrcp.f32 %v597_v25 }
 0x271   :  { %v4829_v26 = vpop.eup %4828 }
 0x272   :  { %v608_v27 = vadd.f32 1.0, %v4829_v26 }
 0x274   :  { %4832 = vrcp.f32 %v608_v27 }
 0x27a   :  { %v4831_v28 = vpop.eup %4830 }
 0x27b   :  { %v615_v30 = vmul.f32 %v4831_v28, %v613_v29 }
 0x27d   :  { %v616_v31 = vadd.f32 %v615_v30, %v5333_v54 }
 0x27e   :  { %v4833_v36 = vpop.eup %4832 }
 0x27f   :  { %4834 = vtanh.f32 %v616_v31  ;;  %v618_v37 = vsub.f32 1.0, %v4833_v36  ;;  %v624_v43 = vmul.f32 %v4833_v36, %v5435_v18 }
 0x289   :  { %v4835_v39 = vpop.eup %4834 }
 0x28a   :  { %v619_v40 = vmul.f32 %v4835_v39, %v618_v37 }
 0x28c   :  { %v5477_v44 = vadd.f32 %v624_v43, %v619_v40 }
 0x28e   :  { %651 = vrot.lane.b32.xlu1 %v5477_v44, %s5178_s22 }
 0x2a3   :  { %v649_v47 = vpop.permute.xlu0 %648 }
 0x2a4   :  { %653 = vrot.lane.b32.xlu0 %v649_v47, %s5178_s22 }
 0x2a7   :  { %v119_v49 = vpop.permute.xlu0 %118 }
 0x2a8   :  { %v4551_v50 = vpack.c.bf16 %v122_v46, %v119_v49 }
 0x2aa   :  { %4552 = vmatprep.subr.bf16.mxu1 %v4551_v50 }
 0x2ab   :  { %v125_v52 = vpop.permute.xlu0 %124  ;;  %4554 = vmatpush3.bf16.msra.mxu1 %v4551_v50 }
 0x2ac   :  { %v4555_v18 = vpack.c.bf16 %v5372_v10, %v125_v52  ;;  %v153_v10 = vld [vmem:[%s6477_s1 + $0x28] sm:$0xff] }
 0x2ae   :  { %4556 = vmatprep.subr.bf16.mxu1 %v4555_v18 }
 0x2af   :  { %v132_v55 = vpop.permute.xlu0 %131  ;;  %4558 = vmatpush3.bf16.msra.mxu1 %v4555_v18 }
 0x2b0   :  { %v4559_v57 = vpack.c.bf16 %v132_v55, %v129_v51 }
 0x2b2   :  { %4560 = vmatprep.subr.bf16.mxu1 %v4559_v57 }
 0x2b3   :  { %v138_v58 = vpop.permute.xlu0 %137  ;;  %4562 = vmatpush3.bf16.msra.mxu1 %v4559_v57 }
 0x2b4   :  { %v4563_v60 = vpack.c.bf16 %v138_v58, %v135_v53 }
 0x2b6   :  { %4564 = vmatprep.subr.bf16.mxu1 %v4563_v60 }
 0x2b7   :  { %v144_v62 = vpop.permute.xlu0 %143  ;;  %4566 = vmatpush3.bf16.msra.mxu1 %v4563_v60 }
 0x2b8   :  { %v4567_v63 = vpack.c.bf16 %v144_v62, %v141_v61 }
 0x2ba   :  { %4568 = vmatprep.subr.bf16.mxu1 %v4567_v63 }
 0x2bb   :  { %v150_v1 = vpop.permute.xlu0 %149  ;;  %4570 = vmatpush3.bf16.msra.mxu1 %v4567_v63 }
 0x2bc   :  { %v4571_v2 = vpack.c.bf16 %v150_v1, %v147_v0 }
 0x2be   :  { %4572 = vmatprep.subr.bf16.mxu1 %v4571_v2 }
 0x2bf   :  { %4574 = vmatpush3.bf16.msra.mxu1 %v4571_v2 }
 0x2c0   :  { %4575 = vmatprep.subr.bf16.mxu1 %v5182_v45 }
 0x2c2   :  { %4020 = vmatmul.mubr.msk.f32.vlgmr.msra.gmra.mrb[0].mxu1 %vm166_vm5, %v153_v10 }
 0x2c3   :  { %4066 = vmatprep.mubr.msk.f32.mxu1 %vm5172_vm2, %v5171_v13 }
 0x300   :  { %v652_v6 = vpop.permute.xlu1 %651 }
 0x316   :  { %v5491_v8 = vpop.permute.xlu0 %653 }
 0x317   :  { %v4576_v19 = vpack.c.bf16 %v5491_v8, %v652_v6 }
 0x319   :  { %4577 = vmatpush3.bf16.msra.mxu1 %v4576_v19 }
 0x31a   :  { %4581 = vmatprep.subr.bf16.mxu1 %v5182_v45 }
 0x31c   :  { %4067 = vmatmul.mubr.msk.f32.vlgmr.msra.gmra.mrb[2].mxu1 %vm451_vm4, %v5344_v3 }
 0x31d   :  { %4069 = vmatprep.mubr.msk.f32.mxu1 %vm5172_vm2, %v5171_v13 }
 0x320   :  { %4070 = vmatmul.mubr.msk.f32.gmra.mrb[4].mxu1 %vm451_vm4, %v5356_v5 }
 0x321   :  { %4072 = vmatprep.mubr.msk.f32.mxu1 %vm5172_vm2, %v5171_v13 }
 0x324   :  { %4073 = vmatmul.mubr.msk.f32.gmra.mrb[6].mxu1 %vm451_vm4, %v5367_v9 }
 0x325   :  { %4075 = vmatprep.mubr.msk.f32.mxu1 %vm5172_vm2, %v5171_v13 }
 0x328   :  { %4076 = vmatmul.mubr.msk.f32.gmra.mrb[8].mxu1 %vm451_vm4, %v5379_v11 }
 0x329   :  { %4078 = vmatprep.mubr.msk.f32.mxu1 %vm5172_vm2, %v5171_v13 }
 0x32c   :  { %4079 = vmatmul.mubr.msk.f32.gmra.mrb[10].mxu1 %vm451_vm4, %v5390_v12 }
 0x32d   :  { %4081 = vmatprep.mubr.msk.f32.mxu1 %vm5172_vm2, %v5171_v13 }
 0x330   :  { %4082 = vmatmul.mubr.msk.f32.gmra.mrb[12].mxu1 %vm451_vm4, %v5400_v14 }
 0x331   :  { %4084 = vmatprep.mubr.msk.f32.mxu1 %vm5172_vm2, %v5171_v13 }
 0x334   :  { %4085 = vmatmul.mubr.msk.f32.gmra.mrb[8].mxu1 %vm451_vm4, %v5410_v15 }
 0x335   :  { %4087 = vmatprep.mubr.msk.f32.mxu1 %vm5172_vm2, %v5171_v13 }
 0x338   :  { %4088 = vmatmul.mubr.msk.f32.gmra.mrb[10].mxu1 %vm451_vm4, %v5420_v16 }
 0x339   :  { %4090 = vmatprep.mubr.msk.f32.mxu1 %vm5172_vm2, %v5171_v13 }
 0x33c   :  { %4091 = vmatmul.mubr.msk.f32.gmra.mrb[14].mxu1 %vm451_vm4, %v5429_v17 }
 0x33d   :  { %4128 = vmatprep.mubr.msk.f32.mxu1 %vm5172_vm2, %v5171_v13 }
 0x395   :  { %v5531_v20 = vpop.f32.mrb[0].mxu1 }
 0x396   :  { %v5533_v21 = vpop.f32.mrb[1].mxu1 }
 0x3ef   :  { %v723_v22 = vpop.f32.mrb[2].mxu1 }
 0x3f0   :  { %v724_v4 = vadd.f32 %v723_v22, %v5319_v35  ;;  %v4068_v23 = vpop.f32.mrb[3].mxu1 }
 0x3f2   :  { %768 = vrot.lane.b32.xlu1 %v724_v4, %s5183_s3 }
 0x3f3   :  { %v728_v24 = vpop.f32.mrb[4].mxu1 }
 0x3f4   :  { %v729_v25 = vadd.f32 %v728_v24, %v5325_v41  ;;  %v4071_v26 = vpop.f32.mrb[5].mxu1 }
 0x3f6   :  { %779 = vrot.lane.b32.xlu0 %v729_v25, %s5183_s3 }
 0x3f7   :  { %v733_v27 = vpop.f32.mrb[6].mxu1 }
 0x3f8   :  { %v734_v28 = vadd.f32 %v733_v27, %v5329_v48  ;;  %v4074_v29 = vpop.f32.mrb[7].mxu1 }
 0x3fa   :  { %798 = vrot.lane.b32.xlu0 %v5477_v44, %s5173_s30  ;;  %790 = vrot.lane.b32.xlu1 %v734_v28, %s5183_s3 }
 0x403   :  { %v748_v30 = vpop.f32.mrb[12].mxu1 }
 0x404   :  { %v4083_v31 = vpop.f32.mrb[13].mxu1  ;;  %v749_v53 = vadd.f32 %v748_v30, %v5452_v56 }
 0x407   :  { %v753_v32 = vpop.f32.mrb[8].mxu1 }
 0x408   :  { %v4631_v36 = vadd.f32 %v5445_v34, %v753_v32  ;;  %v4086_v37 = vpop.f32.mrb[9].mxu1 }
 0x40a   :  { %v3583_v39 = vmul.f32 -1.442695, %v4631_v36 }
 0x40b   :  { %v758_v40 = vpop.f32.mrb[10].mxu1 }
 0x40c   :  { %4836 = vpow2.f32 %v3583_v39  ;;  %v4633_v43 = vadd.f32 %v5449_v42, %v758_v40  ;;  %v4089_v46 = vpop.f32.mrb[11].mxu1 }
 0x40e   :  { %v3584_v47 = vmul.f32 -1.442695, %v4633_v43 }
 0x40f   :  { %v763_v49 = vpop.f32.mrb[14].mxu1 }
 0x410   :  { %v4092_v50 = vpop.f32.mrb[15].mxu1  ;;  %4838 = vpow2.f32 %v3584_v47  ;;  %v764_v57 = vadd.f32 %v763_v49, %v5339_v59 }
 0x416   :  { %v4837_v51 = vpop.eup %4836 }
 0x417   :  { %v807_v44 = vadd.f32 1.0, %v4837_v51 }
 0x419   :  { %4840 = vrcp.f32 %v807_v44 }
 0x41a   :  { %v4839_v52 = vpop.eup %4838 }
 0x41b   :  { %v814_v18 = vadd.f32 1.0, %v4839_v52 }
 0x41d   :  { %4842 = vrcp.f32 %v814_v18 }
 0x423   :  { %v4841_v55 = vpop.eup %4840 }
 0x424   :  { %v817_v58 = vmul.f32 %v4841_v55, %v749_v53 }
 0x426   :  { %v818_v60 = vadd.f32 %v817_v58, %v764_v57 }
 0x427   :  { %v4843_v61 = vpop.eup %4842 }
 0x428   :  { %4844 = vtanh.f32 %v818_v60  ;;  %v820_v62 = vsub.f32 1.0, %v4843_v61  ;;  %v822_v1 = vmul.f32 %v4843_v61, %v5491_v8 }
 0x432   :  { %v4845_v63 = vpop.eup %4844 }
 0x433   :  { %v821_v0 = vmul.f32 %v4845_v63, %v820_v62 }
 0x435   :  { %v823_v2 = vadd.f32 %v822_v1, %v821_v0 }
 0x437   :  { %825 = vrot.lane.b32.xlu1 %v823_v2, %s5183_s3  ;;  %s5192_s3 = smov 16  }
 0x464   :  { %v769_v10 = vpop.permute.xlu1 %768 }
 0x465   :  { %v771_v6 = vadd.f32 %v769_v10, %v5317_v33 }
 0x467   :  { %v3581_v19 = vmul.f32 -1.442695, %v771_v6 }
 0x468   :  { %v780_v22 = vpop.permute.xlu0 %779 }
 0x469   :  { %4846 = vpow2.f32 %v3581_v19  ;;  %v782_v4 = vadd.f32 %v780_v22, %v5323_v38 }
 0x46b   :  { %v3582_v23 = vmul.f32 -1.442695, %v782_v4 }
 0x46c   :  { %v791_v8 = vpop.permute.xlu1 %790  ;;  %v799_v37 = vpop.permute.xlu0 %798 }
 0x46d   :  { %4848 = vpow2.f32 %v3582_v23 }
 0x473   :  { %v4847_v24 = vpop.eup %4846 }
 0x474   :  { %v775_v25 = vadd.f32 1.0, %v4847_v24 }
 0x476   :  { %4850 = vrcp.f32 %v775_v25 }
 0x477   :  { %v4849_v26 = vpop.eup %4848 }
 0x478   :  { %v786_v27 = vadd.f32 1.0, %v4849_v26 }
 0x47a   :  { %4852 = vrcp.f32 %v786_v27 }
 0x480   :  { %v4851_v28 = vpop.eup %4850 }
 0x481   :  { %v793_v29 = vmul.f32 %v4851_v28, %v791_v8 }
 0x483   :  { %v794_v30 = vadd.f32 %v793_v29, %v5333_v54 }
 0x484   :  { %v4853_v31 = vpop.eup %4852 }
 0x485   :  { %4854 = vtanh.f32 %v794_v30  ;;  %v796_v32 = vsub.f32 1.0, %v4853_v31  ;;  %v801_v39 = vmul.f32 %v4853_v31, %v799_v37 }
 0x48f   :  { %v4855_v36 = vpop.eup %4854 }
 0x490   :  { %v797_v40 = vmul.f32 %v4855_v36, %v796_v32 }
 0x492   :  { %v802_v43 = vadd.f32 %v801_v39, %v797_v40 }
 0x494   :  { %828 = vrot.lane.b32.xlu0 %v802_v43, %s5179_s23 }
 0x4a9   :  { %v826_v46 = vpop.permute.xlu1 %825 }
 0x4aa   :  { %830 = vrot.lane.b32.xlu1 %v826_v46, %s5179_s23 }
 0x506   :  { %v829_v47 = vpop.permute.xlu0 %828 }
 0x51c   :  { %v5554_v49 = vpop.permute.xlu1 %830 }
 0x51d   :  { %v4579_v50 = vpack.c.bf16 %v5554_v49, %v829_v47 }
 0x51f   :  { %4580 = vmatpush3.bf16.msra.mxu0 %v4579_v50 }
 0x520   :  { %4584 = vmatprep.subr.bf16.mxu0 %v5182_v45 }
 0x522   :  { %4098 = vmatmul.mubr.msk.f32.vlgmr.msra.gmra.mrb[22].mxu0 %vm451_vm4, %v5344_v3 }
 0x523   :  { %4100 = vmatprep.mubr.msk.f32.mxu0 %vm5172_vm2, %v5171_v13 }
 0x526   :  { %4101 = vmatmul.mubr.msk.f32.gmra.mrb[24].mxu0 %vm451_vm4, %v5356_v5 }
 0x527   :  { %4103 = vmatprep.mubr.msk.f32.mxu0 %vm5172_vm2, %v5171_v13 }
 0x52a   :  { %4104 = vmatmul.mubr.msk.f32.gmra.mrb[26].mxu0 %vm451_vm4, %v5367_v9 }
 0x52b   :  { %4106 = vmatprep.mubr.msk.f32.mxu0 %vm5172_vm2, %v5171_v13 }
 0x52e   :  { %4107 = vmatmul.mubr.msk.f32.gmra.mrb[28].mxu0 %vm451_vm4, %v5379_v11 }
 0x52f   :  { %4109 = vmatprep.mubr.msk.f32.mxu0 %vm5172_vm2, %v5171_v13 }
 0x532   :  { %4110 = vmatmul.mubr.msk.f32.gmra.mrb[30].mxu0 %vm451_vm4, %v5390_v12 }
 0x533   :  { %4112 = vmatprep.mubr.msk.f32.mxu0 %vm5172_vm2, %v5171_v13 }
 0x536   :  { %4113 = vmatmul.mubr.msk.f32.gmra.mrb[32].mxu0 %vm451_vm4, %v5400_v14 }
 0x537   :  { %4115 = vmatprep.mubr.msk.f32.mxu0 %vm5172_vm2, %v5171_v13 }
 0x53a   :  { %4116 = vmatmul.mubr.msk.f32.gmra.mrb[28].mxu0 %vm451_vm4, %v5410_v15 }
 0x53b   :  { %4118 = vmatprep.mubr.msk.f32.mxu0 %vm5172_vm2, %v5171_v13 }
 0x53e   :  { %4119 = vmatmul.mubr.msk.f32.gmra.mrb[30].mxu0 %vm451_vm4, %v5420_v16 }
 0x53f   :  { %4121 = vmatprep.mubr.msk.f32.mxu0 %vm5172_vm2, %v5171_v13 }
 0x542   :  { %4122 = vmatmul.mubr.msk.f32.gmra.mrb[34].mxu0 %vm451_vm4, %v5429_v17 }
 0x543   :  { %4159 = vmatprep.mubr.msk.f32.mxu0 %vm5172_vm2, %v5171_v13 }
 0x5f5   :  { %v900_v51 = vpop.f32.mrb[22].mxu0 }
 0x5f6   :  { %v901_v44 = vadd.f32 %v900_v51, %v5319_v35  ;;  %v4099_v52 = vpop.f32.mrb[23].mxu0 }
 0x5f8   :  { %945 = vrot.lane.b32.xlu0 %v901_v44, %s5184_s4 }
 0x5f9   :  { %v905_v18 = vpop.f32.mrb[24].mxu0 }
 0x5fa   :  { %v906_v53 = vadd.f32 %v905_v18, %v5325_v41  ;;  %v4102_v55 = vpop.f32.mrb[25].mxu0 }
 0x5fc   :  { %956 = vrot.lane.b32.xlu1 %v906_v53, %s5184_s4 }
 0x5fd   :  { %v910_v57 = vpop.f32.mrb[26].mxu0 }
 0x5fe   :  { %v911_v58 = vadd.f32 %v910_v57, %v5329_v48  ;;  %v4105_v60 = vpop.f32.mrb[27].mxu0 }
 0x600   :  { %975 = vrot.lane.b32.xlu1 %v802_v43, %s5173_s30  ;;  %967 = vrot.lane.b32.xlu0 %v911_v58, %s5184_s4 }
 0x609   :  { %v925_v61 = vpop.f32.mrb[32].mxu0 }
 0x60a   :  { %v4114_v62 = vpop.f32.mrb[33].mxu0  ;;  %v926_v28 = vadd.f32 %v925_v61, %v5452_v56 }
 0x60d   :  { %v930_v63 = vpop.f32.mrb[28].mxu0 }
 0x60e   :  { %v4635_v0 = vadd.f32 %v5445_v34, %v930_v63  ;;  %v4117_v1 = vpop.f32.mrb[29].mxu0 }
 0x610   :  { %v3596_v2 = vmul.f32 -1.442695, %v4635_v0 }
 0x611   :  { %v935_v10 = vpop.f32.mrb[30].mxu0 }
 0x612   :  { %4856 = vpow2.f32 %v3596_v2  ;;  %v4637_v6 = vadd.f32 %v5449_v42, %v935_v10  ;;  %v4120_v19 = vpop.f32.mrb[31].mxu0 }
 0x614   :  { %v3597_v22 = vmul.f32 -1.442695, %v4637_v6 }
 0x615   :  { %v940_v4 = vpop.f32.mrb[34].mxu0 }
 0x616   :  { %v4123_v23 = vpop.f32.mrb[35].mxu0  ;;  %4858 = vpow2.f32 %v3597_v22  ;;  %v941_v29 = vadd.f32 %v940_v4, %v5339_v59 }
 0x61c   :  { %v4857_v24 = vpop.eup %4856 }
 0x61d   :  { %v984_v25 = vadd.f32 1.0, %v4857_v24 }
 0x61f   :  { %4860 = vrcp.f32 %v984_v25 }
 0x620   :  { %v4859_v26 = vpop.eup %4858 }
 0x621   :  { %v991_v27 = vadd.f32 1.0, %v4859_v26 }
 0x623   :  { %4862 = vrcp.f32 %v991_v27 }
 0x629   :  { %v4861_v8 = vpop.eup %4860 }
 0x62a   :  { %v994_v30 = vmul.f32 %v4861_v8, %v926_v28 }
 0x62c   :  { %v995_v31 = vadd.f32 %v994_v30, %v941_v29 }
 0x62d   :  { %v4863_v32 = vpop.eup %4862 }
 0x62e   :  { %4864 = vtanh.f32 %v995_v31  ;;  %v997_v36 = vsub.f32 1.0, %v4863_v32  ;;  %v999_v40 = vmul.f32 %v4863_v32, %v5554_v49 }
 0x638   :  { %v4865_v37 = vpop.eup %4864 }
 0x639   :  { %v998_v39 = vmul.f32 %v4865_v37, %v997_v36 }
 0x63b   :  { %v1000_v43 = vadd.f32 %v999_v40, %v998_v39 }
 0x63d   :  { %1002 = vrot.lane.b32.xlu0 %v1000_v43, %s5184_s4  ;;  %s5193_s4 = smov 112  }
 0x66a   :  { %v946_v46 = vpop.permute.xlu0 %945 }
 0x66b   :  { %v948_v47 = vadd.f32 %v946_v46, %v5317_v33 }
 0x66d   :  { %v3594_v50 = vmul.f32 -1.442695, %v948_v47 }
 0x66e   :  { %v957_v51 = vpop.permute.xlu1 %956 }
 0x66f   :  { %4866 = vpow2.f32 %v3594_v50  ;;  %v959_v44 = vadd.f32 %v957_v51, %v5323_v38 }
 0x671   :  { %v3595_v52 = vmul.f32 -1.442695, %v959_v44 }
 0x672   :  { %v968_v49 = vpop.permute.xlu0 %967  ;;  %v976_v1 = vpop.permute.xlu1 %975 }
 0x673   :  { %4868 = vpow2.f32 %v3595_v52 }
 0x679   :  { %v4867_v18 = vpop.eup %4866 }
 0x67a   :  { %v952_v53 = vadd.f32 1.0, %v4867_v18 }
 0x67c   :  { %4870 = vrcp.f32 %v952_v53 }
 0x67d   :  { %v4869_v55 = vpop.eup %4868 }
 0x67e   :  { %v963_v57 = vadd.f32 1.0, %v4869_v55 }
 0x680   :  { %4872 = vrcp.f32 %v963_v57 }
 0x686   :  { %v4871_v58 = vpop.eup %4870 }
 0x687   :  { %v970_v60 = vmul.f32 %v4871_v58, %v968_v49 }
 0x689   :  { %v971_v61 = vadd.f32 %v970_v60, %v5333_v54 }
 0x68a   :  { %v4873_v62 = vpop.eup %4872 }
 0x68b   :  { %4874 = vtanh.f32 %v971_v61  ;;  %v973_v63 = vsub.f32 1.0, %v4873_v62  ;;  %v978_v2 = vmul.f32 %v4873_v62, %v976_v1 }
 0x695   :  { %v4875_v0 = vpop.eup %4874 }
 0x696   :  { %v974_v10 = vmul.f32 %v4875_v0, %v973_v63 }
 0x698   :  { %v979_v6 = vadd.f32 %v978_v2, %v974_v10 }
 0x69a   :  { %1005 = vrot.lane.b32.xlu1 %v979_v6, %s5180_s24 }
 0x6af   :  { %v1003_v19 = vpop.permute.xlu0 %1002 }
 0x6b0   :  { %1007 = vrot.lane.b32.xlu0 %v1003_v19, %s5180_s24 }
 0x70c   :  { %v1006_v22 = vpop.permute.xlu1 %1005 }
 0x722   :  { %v5612_v4 = vpop.permute.xlu0 %1007 }
 0x723   :  { %v4582_v23 = vpack.c.bf16 %v5612_v4, %v1006_v22 }
 0x725   :  { %4583 = vmatpush3.bf16.msra.mxu1 %v4582_v23 }
 0x726   :  { %4587 = vmatprep.subr.bf16.mxu1 %v5182_v45 }
 0x728   :  { %4129 = vmatmul.mubr.msk.f32.vlgmr.msra.gmra.mrb[16].mxu1 %vm451_vm4, %v5344_v3 }
 0x729   :  { %4131 = vmatprep.mubr.msk.f32.mxu1 %vm5172_vm2, %v5171_v13 }
 0x72c   :  { %4132 = vmatmul.mubr.msk.f32.gmra.mrb[18].mxu1 %vm451_vm4, %v5356_v5 }
 0x72d   :  { %4134 = vmatprep.mubr.msk.f32.mxu1 %vm5172_vm2, %v5171_v13 }
 0x730   :  { %4135 = vmatmul.mubr.msk.f32.gmra.mrb[20].mxu1 %vm451_vm4, %v5367_v9 }
 0x731   :  { %4137 = vmatprep.mubr.msk.f32.mxu1 %vm5172_vm2, %v5171_v13 }
 0x734   :  { %4138 = vmatmul.mubr.msk.f32.gmra.mrb[22].mxu1 %vm451_vm4, %v5379_v11 }
 0x735   :  { %4140 = vmatprep.mubr.msk.f32.mxu1 %vm5172_vm2, %v5171_v13 }
 0x738   :  { %4141 = vmatmul.mubr.msk.f32.gmra.mrb[24].mxu1 %vm451_vm4, %v5390_v12 }
 0x739   :  { %4143 = vmatprep.mubr.msk.f32.mxu1 %vm5172_vm2, %v5171_v13 }
 0x73c   :  { %4144 = vmatmul.mubr.msk.f32.gmra.mrb[26].mxu1 %vm451_vm4, %v5400_v14 }
 0x73d   :  { %4146 = vmatprep.mubr.msk.f32.mxu1 %vm5172_vm2, %v5171_v13 }
 0x740   :  { %4147 = vmatmul.mubr.msk.f32.gmra.mrb[22].mxu1 %vm451_vm4, %v5410_v15 }
 0x741   :  { %4149 = vmatprep.mubr.msk.f32.mxu1 %vm5172_vm2, %v5171_v13 }
 0x744   :  { %4150 = vmatmul.mubr.msk.f32.gmra.mrb[24].mxu1 %vm451_vm4, %v5420_v16 }
 0x745   :  { %4152 = vmatprep.mubr.msk.f32.mxu1 %vm5172_vm2, %v5171_v13 }
 0x748   :  { %4153 = vmatmul.mubr.msk.f32.gmra.mrb[28].mxu1 %vm451_vm4, %v5429_v17 }
 0x749   :  { %4190 = vmatprep.mubr.msk.f32.mxu1 %vm5172_vm2, %v5171_v13 }
 0x7fb   :  { %v1077_v24 = vpop.f32.mrb[16].mxu1 }
 0x7fc   :  { %v1078_v25 = vadd.f32 %v1077_v24, %v5319_v35  ;;  %v4130_v26 = vpop.f32.mrb[17].mxu1 }
 0x7fe   :  { %1122 = vrot.lane.b32.xlu1 %v1078_v25, %s5185_s6 }
 0x7ff   :  { %v1082_v27 = vpop.f32.mrb[18].mxu1 }
 0x800   :  { %v1083_v28 = vadd.f32 %v1082_v27, %v5325_v41  ;;  %v4133_v8 = vpop.f32.mrb[19].mxu1 }
 0x802   :  { %1133 = vrot.lane.b32.xlu0 %v1083_v28, %s5185_s6 }
 0x803   :  { %v1087_v29 = vpop.f32.mrb[20].mxu1 }
 0x804   :  { %v1088_v30 = vadd.f32 %v1087_v29, %v5329_v48  ;;  %v4136_v31 = vpop.f32.mrb[21].mxu1 }
 0x806   :  { %1152 = vrot.lane.b32.xlu0 %v979_v6, %s5173_s30  ;;  %1144 = vrot.lane.b32.xlu1 %v1088_v30, %s5185_s6 }
 0x80f   :  { %v1102_v32 = vpop.f32.mrb[26].mxu1 }
 0x810   :  { %v4145_v36 = vpop.f32.mrb[27].mxu1  ;;  %v1103_v58 = vadd.f32 %v1102_v32, %v5452_v56 }
 0x813   :  { %v1107_v37 = vpop.f32.mrb[22].mxu1 }
 0x814   :  { %v4639_v39 = vadd.f32 %v5445_v34, %v1107_v37  ;;  %v4148_v40 = vpop.f32.mrb[23].mxu1 }
 0x816   :  { %v3609_v43 = vmul.f32 -1.442695, %v4639_v39 }
 0x817   :  { %v1112_v46 = vpop.f32.mrb[24].mxu1 }
 0x818   :  { %4876 = vpow2.f32 %v3609_v43  ;;  %v4641_v47 = vadd.f32 %v5449_v42, %v1112_v46  ;;  %v4151_v50 = vpop.f32.mrb[25].mxu1 }
 0x81a   :  { %v3610_v51 = vmul.f32 -1.442695, %v4641_v47 }
 0x81b   :  { %v1117_v44 = vpop.f32.mrb[28].mxu1 }
 0x81c   :  { %v4154_v52 = vpop.f32.mrb[29].mxu1  ;;  %4878 = vpow2.f32 %v3610_v51  ;;  %v1118_v60 = vadd.f32 %v1117_v44, %v5339_v59 }
 0x822   :  { %v4877_v18 = vpop.eup %4876 }
 0x823   :  { %v1161_v53 = vadd.f32 1.0, %v4877_v18 }
 0x825   :  { %4880 = vrcp.f32 %v1161_v53 }
 0x826   :  { %v4879_v55 = vpop.eup %4878 }
 0x827   :  { %v1168_v57 = vadd.f32 1.0, %v4879_v55 }
 0x829   :  { %4882 = vrcp.f32 %v1168_v57 }
 0x82f   :  { %v4881_v49 = vpop.eup %4880 }
 0x830   :  { %v1171_v61 = vmul.f32 %v4881_v49, %v1103_v58 }
 0x832   :  { %v1172_v62 = vadd.f32 %v1171_v61, %v1118_v60 }
 0x833   :  { %v4883_v63 = vpop.eup %4882 }
 0x834   :  { %4884 = vtanh.f32 %v1172_v62  ;;  %v1174_v0 = vsub.f32 1.0, %v4883_v63  ;;  %v1176_v10 = vmul.f32 %v4883_v63, %v5612_v4 }
 0x83e   :  { %v4885_v1 = vpop.eup %4884 }
 0x83f   :  { %v1175_v2 = vmul.f32 %v4885_v1, %v1174_v0 }
 0x841   :  { %v1177_v6 = vadd.f32 %v1176_v10, %v1175_v2 }
 0x843   :  { %1179 = vrot.lane.b32.xlu1 %v1177_v6, %s5185_s6 }
 0x870   :  { %v1123_v19 = vpop.permute.xlu1 %1122 }
 0x871   :  { %v1125_v22 = vadd.f32 %v1123_v19, %v5317_v33 }
 0x873   :  { %v3607_v23 = vmul.f32 -1.442695, %v1125_v22 }
 0x874   :  { %v1134_v24 = vpop.permute.xlu0 %1133 }
 0x875   :  { %4886 = vpow2.f32 %v3607_v23  ;;  %v1136_v25 = vadd.f32 %v1134_v24, %v5323_v38 }
 0x877   :  { %v3608_v26 = vmul.f32 -1.442695, %v1136_v25 }
 0x878   :  { %v1145_v4 = vpop.permute.xlu1 %1144  ;;  %v1153_v40 = vpop.permute.xlu0 %1152 }
 0x879   :  { %4888 = vpow2.f32 %v3608_v26 }
 0x87f   :  { %v4887_v27 = vpop.eup %4886 }
 0x880   :  { %v1129_v28 = vadd.f32 1.0, %v4887_v27 }
 0x882   :  { %4890 = vrcp.f32 %v1129_v28 }
 0x883   :  { %v4889_v8 = vpop.eup %4888 }
 0x884   :  { %v1140_v29 = vadd.f32 1.0, %v4889_v8 }
 0x886   :  { %4892 = vrcp.f32 %v1140_v29 }
 0x88c   :  { %v4891_v30 = vpop.eup %4890 }
 0x88d   :  { %v1147_v31 = vmul.f32 %v4891_v30, %v1145_v4 }
 0x88f   :  { %v1148_v32 = vadd.f32 %v1147_v31, %v5333_v54 }
 0x890   :  { %v4893_v36 = vpop.eup %4892 }
 0x891   :  { %4894 = vtanh.f32 %v1148_v32  ;;  %v1150_v37 = vsub.f32 1.0, %v4893_v36  ;;  %v1155_v43 = vmul.f32 %v4893_v36, %v1153_v40 }
 0x89b   :  { %v4895_v39 = vpop.eup %4894 }
 0x89c   :  { %v1151_v46 = vmul.f32 %v4895_v39, %v1150_v37 }
 0x89e   :  { %v1156_v47 = vadd.f32 %v1155_v43, %v1151_v46 }
 0x8a0   :  { %1182 = vrot.lane.b32.xlu0 %v1156_v47, %s5181_s25 }
 0x8b5   :  { %v1180_v50 = vpop.permute.xlu1 %1179 }
 0x8b6   :  { %1184 = vrot.lane.b32.xlu1 %v1180_v50, %s5181_s25 }
 0x912   :  { %v1183_v51 = vpop.permute.xlu0 %1182 }
 0x928   :  { %v5670_v44 = vpop.permute.xlu1 %1184 }
 0x929   :  { %v4585_v52 = vpack.c.bf16 %v5670_v44, %v1183_v51 }
 0x92b   :  { %4586 = vmatpush3.bf16.msra.mxu0 %v4585_v52 }
 0x92c   :  { %4590 = vmatprep.subr.bf16.mxu0 %v5182_v45 }
 0x92e   :  { %4160 = vmatmul.mubr.msk.f32.vlgmr.msra.gmra.mrb[36].mxu0 %vm451_vm4, %v5344_v3 }
 0x92f   :  { %4162 = vmatprep.mubr.msk.f32.mxu0 %vm5172_vm2, %v5171_v13 }
 0x932   :  { %4163 = vmatmul.mubr.msk.f32.gmra.mrb[38].mxu0 %vm451_vm4, %v5356_v5 }
 0x933   :  { %4165 = vmatprep.mubr.msk.f32.mxu0 %vm5172_vm2, %v5171_v13 }
 0x936   :  { %4166 = vmatmul.mubr.msk.f32.gmra.mrb[40].mxu0 %vm451_vm4, %v5367_v9 }
 0x937   :  { %4168 = vmatprep.mubr.msk.f32.mxu0 %vm5172_vm2, %v5171_v13 }
 0x93a   :  { %4169 = vmatmul.mubr.msk.f32.gmra.mrb[42].mxu0 %vm451_vm4, %v5379_v11 }
 0x93b   :  { %4171 = vmatprep.mubr.msk.f32.mxu0 %vm5172_vm2, %v5171_v13 }
 0x93e   :  { %4172 = vmatmul.mubr.msk.f32.gmra.mrb[44].mxu0 %vm451_vm4, %v5390_v12 }
 0x93f   :  { %4174 = vmatprep.mubr.msk.f32.mxu0 %vm5172_vm2, %v5171_v13 }
 0x942   :  { %4175 = vmatmul.mubr.msk.f32.gmra.mrb[46].mxu0 %vm451_vm4, %v5400_v14 }
 0x943   :  { %4177 = vmatprep.mubr.msk.f32.mxu0 %vm5172_vm2, %v5171_v13 }
 0x946   :  { %4178 = vmatmul.mubr.msk.f32.gmra.mrb[42].mxu0 %vm451_vm4, %v5410_v15 }
 0x947   :  { %4180 = vmatprep.mubr.msk.f32.mxu0 %vm5172_vm2, %v5171_v13 }
 0x94a   :  { %4181 = vmatmul.mubr.msk.f32.gmra.mrb[44].mxu0 %vm451_vm4, %v5420_v16 }
 0x94b   :  { %4183 = vmatprep.mubr.msk.f32.mxu0 %vm5172_vm2, %v5171_v13 }
 0x94e   :  { %4184 = vmatmul.mubr.msk.f32.gmra.mrb[48].mxu0 %vm451_vm4, %v5429_v17 }
 0x94f   :  { %4221 = vmatprep.mubr.msk.f32.mxu0 %vm5172_vm2, %v5171_v13 }
 0xa01   :  { %v1254_v3 = vpop.f32.mrb[36].mxu0 }
 0xa02   :  { %v1255_v5 = vadd.f32 %v1254_v3, %v5319_v35  ;;  %v4161_v9 = vpop.f32.mrb[37].mxu0 }
 0xa04   :  { %1299 = vrot.lane.b32.xlu0 %v1255_v5, %s5186_s7 }
 0xa05   :  { %v1259_v11 = vpop.f32.mrb[38].mxu0 }
 0xa06   :  { %v1260_v12 = vadd.f32 %v1259_v11, %v5325_v41  ;;  %v4164_v14 = vpop.f32.mrb[39].mxu0 }
 0xa08   :  { %1310 = vrot.lane.b32.xlu1 %v1260_v12, %s5186_s7 }
 0xa09   :  { %v1264_v15 = vpop.f32.mrb[40].mxu0 }
 0xa0a   :  { %v1265_v16 = vadd.f32 %v1264_v15, %v5329_v48  ;;  %v4167_v17 = vpop.f32.mrb[41].mxu0 }
 0xa0c   :  { %1329 = vrot.lane.b32.xlu1 %v1156_v47, %s5173_s30  ;;  %1321 = vrot.lane.b32.xlu0 %v1265_v16, %s5186_s7 }
 0xa15   :  { %v1279_v18 = vpop.f32.mrb[46].mxu0 }
 0xa16   :  { %v4176_v53 = vpop.f32.mrb[47].mxu0  ;;  %v1280_v22 = vadd.f32 %v1279_v18, %v5452_v56 }
 0xa19   :  { %v1284_v55 = vpop.f32.mrb[42].mxu0 }
 0xa1a   :  { %v4643_v57 = vadd.f32 %v5445_v34, %v1284_v55  ;;  %v4179_v58 = vpop.f32.mrb[43].mxu0 }
 0xa1b   :  { %v5742_v58 = vld [vmem:[%s6477_s1 + $0x78] sm:$0xff] }
 0xa1c   :  { %v3622_v49 = vmul.f32 -1.442695, %v4643_v57  ;;  %v5733_v57 = vld [vmem:[%s6477_s1 + $0x70] sm:$0xff] }
 0xa1d   :  { %v1289_v60 = vpop.f32.mrb[44].mxu0 }
 0xa1e   :  { %4896 = vpow2.f32 %v3622_v49  ;;  %v4645_v61 = vadd.f32 %v5449_v42, %v1289_v60  ;;  %v4182_v62 = vpop.f32.mrb[45].mxu0  ;;  %v5751_v49 = vld [vmem:[%s6477_s1 + $0x80] sm:$0xff]  ;;  %v5760_v60 = vld [vmem:[%s6477_s1 + $0x88] sm:$0xff] }
 0xa1f   :  { %v5778_v62 = vld [vmem:[%s6477_s1 + $0x98] sm:$0xff] }
 0xa20   :  { %v3623_v63 = vmul.f32 -1.442695, %v4645_v61  ;;  %v5769_v61 = vld [vmem:[%s6477_s1 + $0x90] sm:$0xff] }
 0xa21   :  { %v1294_v0 = vpop.f32.mrb[48].mxu0 }
 0xa22   :  { %v4185_v1 = vpop.f32.mrb[49].mxu0  ;;  %4898 = vpow2.f32 %v3623_v63  ;;  %v1295_v24 = vadd.f32 %v1294_v0, %v5339_v59  ;;  %v5787_v63 = vld [vmem:[%s6477_s1 + $0xa0] sm:$0xff]  ;;  %v5796_v0 = vld [vmem:[%s6477_s1 + $0xa8] sm:$0xff] }
 0xa23   :  { %v5805_v1 = vld [vmem:[%s6477_s1 + $0xb0] sm:$0xff] }
 0xa28   :  { %v4897_v2 = vpop.eup %4896 }
 0xa29   :  { %v1338_v10 = vadd.f32 1.0, %v4897_v2 }
 0xa2b   :  { %4900 = vrcp.f32 %v1338_v10 }
 0xa2c   :  { %v4899_v6 = vpop.eup %4898 }
 0xa2d   :  { %v1345_v19 = vadd.f32 1.0, %v4899_v6 }
 0xa2f   :  { %4902 = vrcp.f32 %v1345_v19 }
 0xa35   :  { %v4901_v23 = vpop.eup %4900 }
 0xa36   :  { %v1348_v25 = vmul.f32 %v4901_v23, %v1280_v22 }
 0xa38   :  { %v1349_v26 = vadd.f32 %v1348_v25, %v1295_v24 }
 0xa39   :  { %v4903_v27 = vpop.eup %4902 }
 0xa3a   :  { %4904 = vtanh.f32 %v1349_v26  ;;  %v1351_v28 = vsub.f32 1.0, %v4903_v27  ;;  %v1353_v30 = vmul.f32 %v4903_v27, %v5670_v44 }
 0xa44   :  { %v4905_v8 = vpop.eup %4904 }
 0xa45   :  { %v1352_v29 = vmul.f32 %v4905_v8, %v1351_v28 }
 0xa47   :  { %v1354_v4 = vadd.f32 %v1353_v30, %v1352_v29 }
 0xa49   :  { %1356 = vrot.lane.b32.xlu0 %v1354_v4, %s5186_s7  ;;  %s5194_s7 = smov 18  }
 0xa76   :  { %v1300_v31 = vpop.permute.xlu0 %1299 }
 0xa77   :  { %v1302_v32 = vadd.f32 %v1300_v31, %v5317_v33 }
 0xa79   :  { %v3620_v36 = vmul.f32 -1.442695, %v1302_v32 }
 0xa7a   :  { %v1311_v37 = vpop.permute.xlu1 %1310 }
 0xa7b   :  { %4906 = vpow2.f32 %v3620_v36  ;;  %v1313_v39 = vadd.f32 %v1311_v37, %v5323_v38 }
 0xa7d   :  { %v3621_v40 = vmul.f32 -1.442695, %v1313_v39 }
 0xa7e   :  { %v1322_v44 = vpop.permute.xlu0 %1321  ;;  %v1330_v12 = vpop.permute.xlu1 %1329 }
 0xa7f   :  { %4908 = vpow2.f32 %v3621_v40 }
 0xa85   :  { %v4907_v43 = vpop.eup %4906 }
 0xa86   :  { %v1306_v46 = vadd.f32 1.0, %v4907_v43 }
 0xa88   :  { %4910 = vrcp.f32 %v1306_v46 }
 0xa89   :  { %v4909_v47 = vpop.eup %4908 }
 0xa8a   :  { %v1317_v50 = vadd.f32 1.0, %v4909_v47 }
 0xa8c   :  { %4912 = vrcp.f32 %v1317_v50 }
 0xa92   :  { %v4911_v51 = vpop.eup %4910 }
 0xa93   :  { %v1324_v52 = vmul.f32 %v4911_v51, %v1322_v44 }
 0xa95   :  { %v1325_v3 = vadd.f32 %v1324_v52, %v5333_v54 }
 0xa96   :  { %v4913_v5 = vpop.eup %4912 }
 0xa97   :  { %4914 = vtanh.f32 %v1325_v3  ;;  %v1327_v9 = vsub.f32 1.0, %v4913_v5  ;;  %v1332_v14 = vmul.f32 %v4913_v5, %v1330_v12 }
 0xaa1   :  { %v4915_v11 = vpop.eup %4914 }
 0xaa2   :  { %v1328_v15 = vmul.f32 %v4915_v11, %v1327_v9 }
 0xaa4   :  { %v1333_v16 = vadd.f32 %v1332_v14, %v1328_v15 }
 0xaa6   :  { %1359 = vrot.lane.b32.xlu1 %v1333_v16, %s5187_s0 }
 0xabb   :  { %v1357_v17 = vpop.permute.xlu0 %1356 }
 0xabc   :  { %1361 = vrot.lane.b32.xlu0 %v1357_v17, %s5187_s0  ;;  %s5195_s0 = smov 110  }
 0xb18   :  { %v1360_v18 = vpop.permute.xlu1 %1359 }
 0xb2e   :  { %v5726_v53 = vpop.permute.xlu0 %1361 }
 0xb2f   :  { %v4588_v55 = vpack.c.bf16 %v5726_v53, %v1360_v18 }
 0xb31   :  { %4589 = vmatpush3.bf16.msra.mxu1 %v4588_v55 }
 0xb32   :  { %4593 = vmatprep.subr.bf16.mxu1 %v5182_v45 }
 0xb34   :  { %4191 = vmatmul.mubr.msk.f32.vlgmr.msra.gmra.mrb[30].mxu1 %vm451_vm4, %v5733_v57 }
 0xb35   :  { %4193 = vmatprep.mubr.msk.f32.mxu1 %vm5172_vm2, %v5171_v13 }
 0xb38   :  { %4194 = vmatmul.mubr.msk.f32.gmra.mrb[32].mxu1 %vm451_vm4, %v5742_v58 }
 0xb39   :  { %4196 = vmatprep.mubr.msk.f32.mxu1 %vm5172_vm2, %v5171_v13 }
 0xb3c   :  { %4197 = vmatmul.mubr.msk.f32.gmra.mrb[34].mxu1 %vm451_vm4, %v5751_v49 }
 0xb3d   :  { %4199 = vmatprep.mubr.msk.f32.mxu1 %vm5172_vm2, %v5171_v13 }
 0xb40   :  { %4200 = vmatmul.mubr.msk.f32.gmra.mrb[36].mxu1 %vm451_vm4, %v5760_v60 }
 0xb41   :  { %4202 = vmatprep.mubr.msk.f32.mxu1 %vm5172_vm2, %v5171_v13 }
 0xb44   :  { %4203 = vmatmul.mubr.msk.f32.gmra.mrb[38].mxu1 %vm451_vm4, %v5769_v61 }
 0xb45   :  { %4205 = vmatprep.mubr.msk.f32.mxu1 %vm5172_vm2, %v5171_v13 }
 0xb48   :  { %4206 = vmatmul.mubr.msk.f32.gmra.mrb[40].mxu1 %vm451_vm4, %v5778_v62 }
 0xb49   :  { %4208 = vmatprep.mubr.msk.f32.mxu1 %vm5172_vm2, %v5171_v13 }
 0xb4c   :  { %4209 = vmatmul.mubr.msk.f32.gmra.mrb[36].mxu1 %vm451_vm4, %v5787_v63 }
 0xb4d   :  { %4211 = vmatprep.mubr.msk.f32.mxu1 %vm5172_vm2, %v5171_v13 }
 0xb50   :  { %4212 = vmatmul.mubr.msk.f32.gmra.mrb[38].mxu1 %vm451_vm4, %v5796_v0 }
 0xb51   :  { %4214 = vmatprep.mubr.msk.f32.mxu1 %vm5172_vm2, %v5171_v13 }
 0xb54   :  { %4215 = vmatmul.mubr.msk.f32.gmra.mrb[42].mxu1 %vm451_vm4, %v5805_v1 }
 0xb55   :  { %4252 = vmatprep.mubr.msk.f32.mxu1 %vm5172_vm2, %v5171_v13 }
 0xc07   :  { %v1431_v2 = vpop.f32.mrb[30].mxu1 }
 0xc08   :  { %v1432_v10 = vadd.f32 %v1431_v2, %v5319_v35  ;;  %v4192_v6 = vpop.f32.mrb[31].mxu1 }
 0xc0a   :  { %1476 = vrot.lane.b32.xlu1 %v1432_v10, %s5188_s26 }
 0xc0b   :  { %v1436_v19 = vpop.f32.mrb[32].mxu1 }
 0xc0c   :  { %v1437_v22 = vadd.f32 %v1436_v19, %v5325_v41  ;;  %v4195_v23 = vpop.f32.mrb[33].mxu1 }
 0xc0e   :  { %1487 = vrot.lane.b32.xlu0 %v1437_v22, %s5188_s26 }
 0xc0f   :  { %v1441_v24 = vpop.f32.mrb[34].mxu1 }
 0xc10   :  { %v1442_v25 = vadd.f32 %v1441_v24, %v5329_v48  ;;  %v4198_v26 = vpop.f32.mrb[35].mxu1 }
 0xc12   :  { %1506 = vrot.lane.b32.xlu0 %v1333_v16, %s5173_s30  ;;  %1498 = vrot.lane.b32.xlu1 %v1442_v25, %s5188_s26 }
 0xc1b   :  { %v1456_v27 = vpop.f32.mrb[40].mxu1 }
 0xc1c   :  { %v4207_v28 = vpop.f32.mrb[41].mxu1  ;;  %v1457_v51 = vadd.f32 %v1456_v27, %v5452_v56 }
 0xc1f   :  { %v1461_v8 = vpop.f32.mrb[36].mxu1 }
 0xc20   :  { %v4647_v29 = vadd.f32 %v5445_v34, %v1461_v8  ;;  %v4210_v30 = vpop.f32.mrb[37].mxu1 }
 0xc22   :  { %v3635_v4 = vmul.f32 -1.442695, %v4647_v29 }
 0xc23   :  { %v1466_v31 = vpop.f32.mrb[38].mxu1 }
 0xc24   :  { %4916 = vpow2.f32 %v3635_v4  ;;  %v4649_v32 = vadd.f32 %v5449_v42, %v1466_v31  ;;  %v4213_v36 = vpop.f32.mrb[39].mxu1 }
 0xc26   :  { %v3636_v37 = vmul.f32 -1.442695, %v4649_v32 }
 0xc27   :  { %v1471_v39 = vpop.f32.mrb[42].mxu1 }
 0xc28   :  { %v4216_v40 = vpop.f32.mrb[43].mxu1  ;;  %4918 = vpow2.f32 %v3636_v37  ;;  %v1472_v52 = vadd.f32 %v1471_v39, %v5339_v59 }
 0xc2e   :  { %v4917_v43 = vpop.eup %4916 }
 0xc2f   :  { %v1515_v46 = vadd.f32 1.0, %v4917_v43 }
 0xc31   :  { %4920 = vrcp.f32 %v1515_v46 }
 0xc32   :  { %v4919_v47 = vpop.eup %4918 }
 0xc33   :  { %v1522_v50 = vadd.f32 1.0, %v4919_v47 }
 0xc35   :  { %4922 = vrcp.f32 %v1522_v50 }
 0xc3b   :  { %v4921_v44 = vpop.eup %4920 }
 0xc3c   :  { %v1525_v3 = vmul.f32 %v4921_v44, %v1457_v51 }
 0xc3e   :  { %v1526_v5 = vadd.f32 %v1525_v3, %v1472_v52 }
 0xc3f   :  { %v4923_v9 = vpop.eup %4922 }
 0xc40   :  { %4924 = vtanh.f32 %v1526_v5  ;;  %v1528_v11 = vsub.f32 1.0, %v4923_v9  ;;  %v1530_v15 = vmul.f32 %v4923_v9, %v5726_v53 }
 0xc4a   :  { %v4925_v12 = vpop.eup %4924 }
 0xc4b   :  { %v1529_v14 = vmul.f32 %v4925_v12, %v1528_v11 }
 0xc4d   :  { %v1531_v16 = vadd.f32 %v1530_v15, %v1529_v14 }
 0xc4f   :  { %1533 = vrot.lane.b32.xlu1 %v1531_v16, %s5188_s26  ;;  %s5210_s26 = smov [#allocation2]  }
 0xc7c   :  { %v1477_v17 = vpop.permute.xlu1 %1476 }
 0xc7d   :  { %v1479_v18 = vadd.f32 %v1477_v17, %v5317_v33 }
 0xc7f   :  { %v3633_v55 = vmul.f32 -1.442695, %v1479_v18 }
 0xc80   :  { %v1488_v2 = vpop.permute.xlu0 %1487 }
 0xc81   :  { %4926 = vpow2.f32 %v3633_v55  ;;  %v1490_v10 = vadd.f32 %v1488_v2, %v5323_v38 }
 0xc83   :  { %v3634_v6 = vmul.f32 -1.442695, %v1490_v10 }
 0xc84   :  { %v1499_v53 = vpop.permute.xlu1 %1498  ;;  %v1507_v30 = vpop.permute.xlu0 %1506 }
 0xc85   :  { %4928 = vpow2.f32 %v3634_v6 }
 0xc8b   :  { %v4927_v19 = vpop.eup %4926 }
 0xc8c   :  { %v1483_v22 = vadd.f32 1.0, %v4927_v19 }
 0xc8e   :  { %4930 = vrcp.f32 %v1483_v22 }
 0xc8f   :  { %v4929_v23 = vpop.eup %4928 }
 0xc90   :  { %v1494_v24 = vadd.f32 1.0, %v4929_v23 }
 0xc92   :  { %4932 = vrcp.f32 %v1494_v24 }
 0xc98   :  { %v4931_v25 = vpop.eup %4930 }
 0xc99   :  { %v1501_v26 = vmul.f32 %v4931_v25, %v1499_v53 }
 0xc9b   :  { %v1502_v27 = vadd.f32 %v1501_v26, %v5333_v54 }
 0xc9c   :  { %v4933_v28 = vpop.eup %4932 }
 0xc9d   :  { %4934 = vtanh.f32 %v1502_v27  ;;  %v1504_v8 = vsub.f32 1.0, %v4933_v28  ;;  %v1509_v4 = vmul.f32 %v4933_v28, %v1507_v30 }
 0xca7   :  { %v4935_v29 = vpop.eup %4934 }
 0xca8   :  { %v1505_v31 = vmul.f32 %v4935_v29, %v1504_v8 }
 0xcaa   :  { %v1510_v32 = vadd.f32 %v1509_v4, %v1505_v31 }
 0xcac   :  { %1536 = vrot.lane.b32.xlu0 %v1510_v32, %s5189_s27 }
 0xcc1   :  { %v1534_v36 = vpop.permute.xlu1 %1533 }
 0xcc2   :  { %1538 = vrot.lane.b32.xlu1 %v1534_v36, %s5189_s27  ;;  %s3538_s27 = sshll.u32 %s5210_s26, 4  ;;  %s3539_s27 = int_to_ptr.vmem [resolvable:$true] %s3538_s27 }
 0xcc3   :  { %p5151_p1 = scmp.lt.s32.totalorder %s3539_s27, %s3539_s27 }
 0xd1e   :  { %v1537_v37 = vpop.permute.xlu0 %1536 }
 0xd34   :  { %v5827_v39 = vpop.permute.xlu1 %1538 }
 0xd35   :  { %v4591_v40 = vpack.c.bf16 %v5827_v39, %v1537_v37 }
 0xd37   :  { %4592 = vmatpush3.bf16.msra.mxu0 %v4591_v40 }
 0xd38   :  { %4596 = vmatprep.subr.bf16.mxu0 %v5182_v45 }
 0xd3a   :  { %4222 = vmatmul.mubr.msk.f32.vlgmr.msra.gmra.mrb[50].mxu0 %vm451_vm4, %v5733_v57 }
 0xd3b   :  { %4224 = vmatprep.mubr.msk.f32.mxu0 %vm5172_vm2, %v5171_v13 }
 0xd3e   :  { %4225 = vmatmul.mubr.msk.f32.gmra.mrb[52].mxu0 %vm451_vm4, %v5742_v58 }
 0xd3f   :  { %4227 = vmatprep.mubr.msk.f32.mxu0 %vm5172_vm2, %v5171_v13 }
 0xd42   :  { %4228 = vmatmul.mubr.msk.f32.gmra.mrb[54].mxu0 %vm451_vm4, %v5751_v49 }
 0xd43   :  { %4230 = vmatprep.mubr.msk.f32.mxu0 %vm5172_vm2, %v5171_v13 }
 0xd46   :  { %4231 = vmatmul.mubr.msk.f32.gmra.mrb[56].mxu0 %vm451_vm4, %v5760_v60 }
 0xd47   :  { %4233 = vmatprep.mubr.msk.f32.mxu0 %vm5172_vm2, %v5171_v13 }
 0xd4a   :  { %4234 = vmatmul.mubr.msk.f32.gmra.mrb[58].mxu0 %vm451_vm4, %v5769_v61 }
 0xd4b   :  { %4236 = vmatprep.mubr.msk.f32.mxu0 %vm5172_vm2, %v5171_v13 }
 0xd4e   :  { %4237 = vmatmul.mubr.msk.f32.gmra.mrb[60].mxu0 %vm451_vm4, %v5778_v62 }
 0xd4f   :  { %4239 = vmatprep.mubr.msk.f32.mxu0 %vm5172_vm2, %v5171_v13 }
 0xd52   :  { %4240 = vmatmul.mubr.msk.f32.gmra.mrb[56].mxu0 %vm451_vm4, %v5787_v63 }
 0xd53   :  { %4242 = vmatprep.mubr.msk.f32.mxu0 %vm5172_vm2, %v5171_v13 }
 0xd56   :  { %4243 = vmatmul.mubr.msk.f32.gmra.mrb[58].mxu0 %vm451_vm4, %v5796_v0 }
 0xd57   :  { %4245 = vmatprep.mubr.msk.f32.mxu0 %vm5172_vm2, %v5171_v13 }
 0xd5a   :  { %4246 = vmatmul.mubr.msk.f32.gmra.mrb[62].mxu0 %vm451_vm4, %v5805_v1 }
 0xd5b   :  { %4283 = vmatprep.mubr.msk.f32.mxu0 %vm5172_vm2, %v5171_v13 }
 0xe0d   :  { %v1608_v43 = vpop.f32.mrb[50].mxu0 }
 0xe0e   :  { %v1609_v46 = vadd.f32 %v1608_v43, %v5319_v35  ;;  %v4223_v47 = vpop.f32.mrb[51].mxu0 }
 0xe10   :  { %1653 = vrot.lane.b32.xlu0 %v1609_v46, %s5190_s28 }
 0xe11   :  { %v1613_v50 = vpop.f32.mrb[52].mxu0 }
 0xe12   :  { %v1614_v51 = vadd.f32 %v1613_v50, %v5325_v41  ;;  %v4226_v44 = vpop.f32.mrb[53].mxu0 }
 0xe14   :  { %1664 = vrot.lane.b32.xlu1 %v1614_v51, %s5190_s28 }
 0xe15   :  { %v1618_v52 = vpop.f32.mrb[54].mxu0 }
 0xe16   :  { %v1619_v3 = vadd.f32 %v1618_v52, %v5329_v48  ;;  %v4229_v5 = vpop.f32.mrb[55].mxu0 }
 0xe18   :  { %1683 = vrot.lane.b32.xlu1 %v1510_v32, %s5173_s30  ;;  %1675 = vrot.lane.b32.xlu0 %v1619_v3, %s5190_s28 }
 0xe21   :  { %v1633_v9 = vpop.f32.mrb[60].mxu0 }
 0xe22   :  { %v4238_v11 = vpop.f32.mrb[61].mxu0  ;;  %v1634_v25 = vadd.f32 %v1633_v9, %v5452_v56 }
 0xe25   :  { %v1638_v12 = vpop.f32.mrb[56].mxu0 }
 0xe26   :  { %v4651_v14 = vadd.f32 %v5445_v34, %v1638_v12  ;;  %v4241_v15 = vpop.f32.mrb[57].mxu0 }
 0xe28   :  { %v3648_v16 = vmul.f32 -1.442695, %v4651_v14 }
 0xe29   :  { %v1643_v17 = vpop.f32.mrb[58].mxu0 }
 0xe2a   :  { %4936 = vpow2.f32 %v3648_v16  ;;  %v4653_v18 = vadd.f32 %v5449_v42, %v1643_v17  ;;  %v4244_v55 = vpop.f32.mrb[59].mxu0 }
 0xe2c   :  { %v3649_v2 = vmul.f32 -1.442695, %v4653_v18 }
 0xe2d   :  { %v1648_v10 = vpop.f32.mrb[62].mxu0 }
 0xe2e   :  { %v4247_v6 = vpop.f32.mrb[63].mxu0  ;;  %4938 = vpow2.f32 %v3649_v2  ;;  %v1649_v26 = vadd.f32 %v1648_v10, %v5339_v59 }
 0xe34   :  { %v4937_v19 = vpop.eup %4936 }
 0xe35   :  { %v1692_v22 = vadd.f32 1.0, %v4937_v19 }
 0xe37   :  { %4940 = vrcp.f32 %v1692_v22 }
 0xe38   :  { %v4939_v23 = vpop.eup %4938 }
 0xe39   :  { %v1699_v24 = vadd.f32 1.0, %v4939_v23 }
 0xe3b   :  { %4942 = vrcp.f32 %v1699_v24 }
 0xe41   :  { %v4941_v53 = vpop.eup %4940 }
 0xe42   :  { %v1702_v27 = vmul.f32 %v4941_v53, %v1634_v25 }
 0xe44   :  { %v1703_v28 = vadd.f32 %v1702_v27, %v1649_v26 }
 0xe45   :  { %v4943_v8 = vpop.eup %4942 }
 0xe46   :  { %4944 = vtanh.f32 %v1703_v28  ;;  %v1705_v29 = vsub.f32 1.0, %v4943_v8  ;;  %v1707_v31 = vmul.f32 %v4943_v8, %v5827_v39 }
 0xe50   :  { %v4945_v30 = vpop.eup %4944 }
 0xe51   :  { %v1706_v4 = vmul.f32 %v4945_v30, %v1705_v29 }
 0xe53   :  { %v1708_v32 = vadd.f32 %v1707_v31, %v1706_v4 }
 0xe55   :  { %1710 = vrot.lane.b32.xlu0 %v1708_v32, %s5190_s28  ;;  %s5146_s28 = scalar_lea.vmem %s3539_s27, 256 }
 0xe56   :  { %p5147_p0 = scmp.ne.s32.totalorder %s3539_s27, %s5146_s28  ;;  %p5152_p2 = scmp.lt.s32.totalorder %s5146_s28, %s5146_s28 }
 0xe58   :  { %p5153_p3 = por %p5152_p2, %p5151_p1 }
 0xe5a   :  { %p5154_p4 = pnand %p5153_p3, %p5147_p0 }
 0xe82   :  { %v1654_v36 = vpop.permute.xlu0 %1653 }
 0xe83   :  { %v1656_v37 = vadd.f32 %v1654_v36, %v5317_v33 }
 0xe85   :  { %v3646_v40 = vmul.f32 -1.442695, %v1656_v37 }
 0xe86   :  { %v1665_v43 = vpop.permute.xlu1 %1664 }
 0xe87   :  { %4946 = vpow2.f32 %v3646_v40  ;;  %v1667_v46 = vadd.f32 %v1665_v43, %v5323_v38 }
 0xe89   :  { %v3647_v47 = vmul.f32 -1.442695, %v1667_v46 }
 0xe8a   :  { %v1676_v39 = vpop.permute.xlu0 %1675  ;;  %v1684_v15 = vpop.permute.xlu1 %1683 }
 0xe8b   :  { %4948 = vpow2.f32 %v3647_v47 }
 0xe91   :  { %v4947_v50 = vpop.eup %4946 }
 0xe92   :  { %v1660_v51 = vadd.f32 1.0, %v4947_v50 }
 0xe94   :  { %4950 = vrcp.f32 %v1660_v51 }
 0xe95   :  { %v4949_v44 = vpop.eup %4948 }
 0xe96   :  { %v1671_v52 = vadd.f32 1.0, %v4949_v44 }
 0xe98   :  { %4952 = vrcp.f32 %v1671_v52 }
 0xe9e   :  { %v4951_v3 = vpop.eup %4950 }
 0xe9f   :  { %v1678_v5 = vmul.f32 %v4951_v3, %v1676_v39 }
 0xea1   :  { %v1679_v9 = vadd.f32 %v1678_v5, %v5333_v54 }
 0xea2   :  { %v4953_v11 = vpop.eup %4952 }
 0xea3   :  { %4954 = vtanh.f32 %v1679_v9  ;;  %v1681_v12 = vsub.f32 1.0, %v4953_v11  ;;  %v1686_v16 = vmul.f32 %v4953_v11, %v1684_v15 }
 0xead   :  { %v4955_v14 = vpop.eup %4954 }
 0xeae   :  { %v1682_v17 = vmul.f32 %v4955_v14, %v1681_v12 }
 0xeb0   :  { %v1687_v18 = vadd.f32 %v1686_v16, %v1682_v17 }
 0xeb2   :  { %1713 = vrot.lane.b32.xlu1 %v1687_v18, %s5191_s29 }
 0xec7   :  { %v1711_v55 = vpop.permute.xlu0 %1710 }
 0xec8   :  { %1715 = vrot.lane.b32.xlu0 %v1711_v55, %s5191_s29 }
 0xf24   :  { %v1714_v2 = vpop.permute.xlu1 %1713 }
 0xf3a   :  { %v5883_v10 = vpop.permute.xlu0 %1715 }
 0xf3b   :  { %v4594_v6 = vpack.c.bf16 %v5883_v10, %v1714_v2 }
 0xf3d   :  { %4595 = vmatpush3.bf16.msra.mxu1 %v4594_v6 }
 0xf3e   :  { %4599 = vmatprep.subr.bf16.mxu1 %v5182_v45 }
 0xf40   :  { %4253 = vmatmul.mubr.msk.f32.vlgmr.msra.gmra.mrb[44].mxu1 %vm451_vm4, %v5733_v57 }
 0xf41   :  { %4255 = vmatprep.mubr.msk.f32.mxu1 %vm5172_vm2, %v5171_v13 }
 0xf44   :  { %4256 = vmatmul.mubr.msk.f32.gmra.mrb[46].mxu1 %vm451_vm4, %v5742_v58 }
 0xf45   :  { %4258 = vmatprep.mubr.msk.f32.mxu1 %vm5172_vm2, %v5171_v13 }
 0xf48   :  { %4259 = vmatmul.mubr.msk.f32.gmra.mrb[48].mxu1 %vm451_vm4, %v5751_v49 }
 0xf49   :  { %4261 = vmatprep.mubr.msk.f32.mxu1 %vm5172_vm2, %v5171_v13 }
 0xf4c   :  { %4262 = vmatmul.mubr.msk.f32.gmra.mrb[50].mxu1 %vm451_vm4, %v5760_v60 }
 0xf4d   :  { %4264 = vmatprep.mubr.msk.f32.mxu1 %vm5172_vm2, %v5171_v13 }
 0xf50   :  { %4265 = vmatmul.mubr.msk.f32.gmra.mrb[52].mxu1 %vm451_vm4, %v5769_v61 }
 0xf51   :  { %4267 = vmatprep.mubr.msk.f32.mxu1 %vm5172_vm2, %v5171_v13 }
 0xf54   :  { %4268 = vmatmul.mubr.msk.f32.gmra.mrb[54].mxu1 %vm451_vm4, %v5778_v62 }
 0xf55   :  { %4270 = vmatprep.mubr.msk.f32.mxu1 %vm5172_vm2, %v5171_v13 }
 0xf58   :  { %4271 = vmatmul.mubr.msk.f32.gmra.mrb[50].mxu1 %vm451_vm4, %v5787_v63 }
 0xf59   :  { %4273 = vmatprep.mubr.msk.f32.mxu1 %vm5172_vm2, %v5171_v13 }
 0xf5c   :  { %4274 = vmatmul.mubr.msk.f32.gmra.mrb[52].mxu1 %vm451_vm4, %v5796_v0 }
 0xf5d   :  { %4276 = vmatprep.mubr.msk.f32.mxu1 %vm5172_vm2, %v5171_v13 }
 0xf60   :  { %4277 = vmatmul.mubr.msk.f32.gmra.mrb[56].mxu1 %vm451_vm4, %v5805_v1 }
 0xf61   :  { %4314 = vmatprep.mubr.msk.f32.mxu1 %vm5172_vm2, %v5171_v13 }
0x1013   :  { %v1785_v19 = vpop.f32.mrb[44].mxu1 }
0x1014   :  { %v1786_v22 = vadd.f32 %v1785_v19, %v5319_v35  ;;  %v4254_v23 = vpop.f32.mrb[45].mxu1 }
0x1016   :  { %1830 = vrot.lane.b32.xlu1 %v1786_v22, %s5192_s3 }
0x1017   :  { %v1790_v24 = vpop.f32.mrb[46].mxu1 }
0x1018   :  { %v1791_v25 = vadd.f32 %v1790_v24, %v5325_v41  ;;  %v4257_v53 = vpop.f32.mrb[47].mxu1 }
0x101a   :  { %1841 = vrot.lane.b32.xlu0 %v1791_v25, %s5192_s3 }
0x101b   :  { %v1795_v26 = vpop.f32.mrb[48].mxu1 }
0x101c   :  { %v1796_v27 = vadd.f32 %v1795_v26, %v5329_v48  ;;  %v4260_v28 = vpop.f32.mrb[49].mxu1 }
0x101e   :  { %1860 = vrot.lane.b32.xlu0 %v1687_v18, %s5173_s30  ;;  %1852 = vrot.lane.b32.xlu1 %v1796_v27, %s5192_s3 }
0x1027   :  { %v1810_v8 = vpop.f32.mrb[54].mxu1 }
0x1028   :  { %v4269_v29 = vpop.f32.mrb[55].mxu1  ;;  %v1811_v3 = vadd.f32 %v1810_v8, %v5452_v56 }
0x102b   :  { %v1815_v30 = vpop.f32.mrb[50].mxu1 }
0x102c   :  { %v4655_v4 = vadd.f32 %v5445_v34, %v1815_v30  ;;  %v4272_v31 = vpop.f32.mrb[51].mxu1 }
0x102e   :  { %v3661_v32 = vmul.f32 -1.442695, %v4655_v4 }
0x102f   :  { %v1820_v36 = vpop.f32.mrb[52].mxu1 }
0x1030   :  { %4956 = vpow2.f32 %v3661_v32  ;;  %v4657_v37 = vadd.f32 %v5449_v42, %v1820_v36  ;;  %v4275_v40 = vpop.f32.mrb[53].mxu1 }
0x1032   :  { %v3662_v43 = vmul.f32 -1.442695, %v4657_v37 }
0x1033   :  { %v1825_v46 = vpop.f32.mrb[56].mxu1 }
0x1034   :  { %v4278_v47 = vpop.f32.mrb[57].mxu1  ;;  %4958 = vpow2.f32 %v3662_v43  ;;  %v1826_v5 = vadd.f32 %v1825_v46, %v5339_v59 }
0x103a   :  { %v4957_v50 = vpop.eup %4956 }
0x103b   :  { %v1869_v51 = vadd.f32 1.0, %v4957_v50 }
0x103d   :  { %4960 = vrcp.f32 %v1869_v51 }
0x103e   :  { %v4959_v44 = vpop.eup %4958 }
0x103f   :  { %v1876_v52 = vadd.f32 1.0, %v4959_v44 }
0x1041   :  { %4962 = vrcp.f32 %v1876_v52 }
0x1047   :  { %v4961_v39 = vpop.eup %4960 }
0x1048   :  { %v1879_v9 = vmul.f32 %v4961_v39, %v1811_v3 }
0x104a   :  { %v1880_v11 = vadd.f32 %v1879_v9, %v1826_v5 }
0x104b   :  { %v4963_v12 = vpop.eup %4962 }
0x104c   :  { %4964 = vtanh.f32 %v1880_v11  ;;  %v1882_v14 = vsub.f32 1.0, %v4963_v12  ;;  %v1884_v17 = vmul.f32 %v4963_v12, %v5883_v10 }
0x1056   :  { %v4965_v15 = vpop.eup %4964 }
0x1057   :  { %v1883_v16 = vmul.f32 %v4965_v15, %v1882_v14 }
0x1059   :  { %v1885_v18 = vadd.f32 %v1884_v17, %v1883_v16 }
0x105b   :  { %1887 = vrot.lane.b32.xlu1 %v1885_v18, %s5192_s3  ;;  %s5200_s3 = smov 24  }
0x1088   :  { %v1831_v55 = vpop.permute.xlu1 %1830 }
0x1089   :  { %v1833_v2 = vadd.f32 %v1831_v55, %v5317_v33 }
0x108b   :  { %v3659_v6 = vmul.f32 -1.442695, %v1833_v2 }
0x108c   :  { %v1842_v19 = vpop.permute.xlu0 %1841 }
0x108d   :  { %4966 = vpow2.f32 %v3659_v6  ;;  %v1844_v22 = vadd.f32 %v1842_v19, %v5323_v38 }
0x108f   :  { %v3660_v23 = vmul.f32 -1.442695, %v1844_v22 }
0x1090   :  { %v1853_v10 = vpop.permute.xlu1 %1852  ;;  %v1861_v31 = vpop.permute.xlu0 %1860 }
0x1091   :  { %4968 = vpow2.f32 %v3660_v23 }
0x1097   :  { %v4967_v24 = vpop.eup %4966 }
0x1098   :  { %v1837_v25 = vadd.f32 1.0, %v4967_v24 }
0x109a   :  { %4970 = vrcp.f32 %v1837_v25 }
0x109b   :  { %v4969_v53 = vpop.eup %4968 }
0x109c   :  { %v1848_v26 = vadd.f32 1.0, %v4969_v53 }
0x109e   :  { %4972 = vrcp.f32 %v1848_v26 }
0x10a4   :  { %v4971_v27 = vpop.eup %4970 }
0x10a5   :  { %v1855_v28 = vmul.f32 %v4971_v27, %v1853_v10 }
0x10a7   :  { %v1856_v8 = vadd.f32 %v1855_v28, %v5333_v54 }
0x10a8   :  { %v4973_v29 = vpop.eup %4972 }
0x10a9   :  { %4974 = vtanh.f32 %v1856_v8  ;;  %v1858_v30 = vsub.f32 1.0, %v4973_v29  ;;  %v1863_v32 = vmul.f32 %v4973_v29, %v1861_v31 }
0x10b3   :  { %v4975_v4 = vpop.eup %4974 }
0x10b4   :  { %v1859_v36 = vmul.f32 %v4975_v4, %v1858_v30 }
0x10b6   :  { %v1864_v37 = vadd.f32 %v1863_v32, %v1859_v36 }
0x10b8   :  { %1890 = vrot.lane.b32.xlu0 %v1864_v37, %s5193_s4 }
0x10cd   :  { %v1888_v40 = vpop.permute.xlu1 %1887 }
0x10ce   :  { %1892 = vrot.lane.b32.xlu1 %v1888_v40, %s5193_s4 }
0x112a   :  { %v1891_v43 = vpop.permute.xlu0 %1890 }
0x1140   :  { %v5941_v46 = vpop.permute.xlu1 %1892 }
0x1141   :  { %v4597_v47 = vpack.c.bf16 %v5941_v46, %v1891_v43 }
0x1143   :  { %4598 = vmatpush3.bf16.msra.mxu0 %v4597_v47 }
0x1144   :  { %4602 = vmatprep.subr.bf16.mxu0 %v5182_v45 }
0x1146   :  { %4284 = vmatmul.mubr.msk.f32.vlgmr.msra.gmra.mrb[64].mxu0 %vm451_vm4, %v5733_v57 }
0x1147   :  { %4286 = vmatprep.mubr.msk.f32.mxu0 %vm5172_vm2, %v5171_v13 }
0x114a   :  { %4287 = vmatmul.mubr.msk.f32.gmra.mrb[66].mxu0 %vm451_vm4, %v5742_v58 }
0x114b   :  { %4289 = vmatprep.mubr.msk.f32.mxu0 %vm5172_vm2, %v5171_v13 }
0x114e   :  { %4290 = vmatmul.mubr.msk.f32.gmra.mrb[68].mxu0 %vm451_vm4, %v5751_v49 }
0x114f   :  { %4292 = vmatprep.mubr.msk.f32.mxu0 %vm5172_vm2, %v5171_v13 }
0x1152   :  { %4293 = vmatmul.mubr.msk.f32.gmra.mrb[70].mxu0 %vm451_vm4, %v5760_v60 }
0x1153   :  { %4295 = vmatprep.mubr.msk.f32.mxu0 %vm5172_vm2, %v5171_v13 }
0x1156   :  { %4296 = vmatmul.mubr.msk.f32.gmra.mrb[72].mxu0 %vm451_vm4, %v5769_v61 }
0x1157   :  { %4298 = vmatprep.mubr.msk.f32.mxu0 %vm5172_vm2, %v5171_v13 }
0x115a   :  { %4299 = vmatmul.mubr.msk.f32.gmra.mrb[74].mxu0 %vm451_vm4, %v5778_v62 }
0x115b   :  { %4301 = vmatprep.mubr.msk.f32.mxu0 %vm5172_vm2, %v5171_v13 }
0x115e   :  { %4302 = vmatmul.mubr.msk.f32.gmra.mrb[70].mxu0 %vm451_vm4, %v5787_v63 }
0x115f   :  { %4304 = vmatprep.mubr.msk.f32.mxu0 %vm5172_vm2, %v5171_v13 }
0x1162   :  { %4305 = vmatmul.mubr.msk.f32.gmra.mrb[72].mxu0 %vm451_vm4, %v5796_v0 }
0x1163   :  { %4307 = vmatprep.mubr.msk.f32.mxu0 %vm5172_vm2, %v5171_v13 }
0x1166   :  { %4308 = vmatmul.mubr.msk.f32.gmra.mrb[76].mxu0 %vm451_vm4, %v5805_v1 }
0x1167   :  { %4345 = vmatprep.mubr.msk.f32.mxu0 %vm5172_vm2, %v5171_v13 }
0x1219   :  { %v1962_v50 = vpop.f32.mrb[64].mxu0 }
0x121a   :  { %v1963_v51 = vadd.f32 %v1962_v50, %v5319_v35  ;;  %v4285_v44 = vpop.f32.mrb[65].mxu0 }
0x121c   :  { %2007 = vrot.lane.b32.xlu0 %v1963_v51, %s5194_s7 }
0x121d   :  { %v1967_v52 = vpop.f32.mrb[66].mxu0 }
0x121e   :  { %v1968_v3 = vadd.f32 %v1967_v52, %v5325_v41  ;;  %v4288_v39 = vpop.f32.mrb[67].mxu0 }
0x1220   :  { %2018 = vrot.lane.b32.xlu1 %v1968_v3, %s5194_s7 }
0x1221   :  { %v1972_v5 = vpop.f32.mrb[68].mxu0 }
0x1222   :  { %v1973_v9 = vadd.f32 %v1972_v5, %v5329_v48  ;;  %v4291_v11 = vpop.f32.mrb[69].mxu0 }
0x1224   :  { %2037 = vrot.lane.b32.xlu1 %v1864_v37, %s5173_s30  ;;  %2029 = vrot.lane.b32.xlu0 %v1973_v9, %s5194_s7 }
0x122d   :  { %v1987_v12 = vpop.f32.mrb[74].mxu0 }
0x122e   :  { %v4300_v14 = vpop.f32.mrb[75].mxu0  ;;  %v1988_v27 = vadd.f32 %v1987_v12, %v5452_v56 }
0x1231   :  { %v1992_v15 = vpop.f32.mrb[70].mxu0 }
0x1232   :  { %v4659_v16 = vadd.f32 %v5445_v34, %v1992_v15  ;;  %v4303_v17 = vpop.f32.mrb[71].mxu0 }
0x1234   :  { %v3674_v18 = vmul.f32 -1.442695, %v4659_v16 }
0x1235   :  { %v1997_v55 = vpop.f32.mrb[72].mxu0 }
0x1236   :  { %4976 = vpow2.f32 %v3674_v18  ;;  %v4661_v2 = vadd.f32 %v5449_v42, %v1997_v55  ;;  %v4306_v6 = vpop.f32.mrb[73].mxu0 }
0x1238   :  { %v3675_v19 = vmul.f32 -1.442695, %v4661_v2 }
0x1239   :  { %v2002_v22 = vpop.f32.mrb[76].mxu0 }
0x123a   :  { %v4309_v23 = vpop.f32.mrb[77].mxu0  ;;  %4978 = vpow2.f32 %v3675_v19  ;;  %v2003_v28 = vadd.f32 %v2002_v22, %v5339_v59 }
0x1240   :  { %v4977_v24 = vpop.eup %4976 }
0x1241   :  { %v2046_v25 = vadd.f32 1.0, %v4977_v24 }
0x1243   :  { %4980 = vrcp.f32 %v2046_v25 }
0x1244   :  { %v4979_v53 = vpop.eup %4978 }
0x1245   :  { %v2053_v26 = vadd.f32 1.0, %v4979_v53 }
0x1247   :  { %4982 = vrcp.f32 %v2053_v26 }
0x124d   :  { %v4981_v10 = vpop.eup %4980 }
0x124e   :  { %v2056_v8 = vmul.f32 %v4981_v10, %v1988_v27 }
0x1250   :  { %v2057_v29 = vadd.f32 %v2056_v8, %v2003_v28 }
0x1251   :  { %v4983_v30 = vpop.eup %4982 }
0x1252   :  { %4984 = vtanh.f32 %v2057_v29  ;;  %v2059_v4 = vsub.f32 1.0, %v4983_v30  ;;  %v2061_v36 = vmul.f32 %v4983_v30, %v5941_v46 }
0x125c   :  { %v4985_v31 = vpop.eup %4984 }
0x125d   :  { %v2060_v32 = vmul.f32 %v4985_v31, %v2059_v4 }
0x125f   :  { %v2062_v37 = vadd.f32 %v2061_v36, %v2060_v32 }
0x1261   :  { %2064 = vrot.lane.b32.xlu0 %v2062_v37, %s5194_s7  ;;  %s5201_s7 = smov 104  }
0x128e   :  { %v2008_v40 = vpop.permute.xlu0 %2007 }
0x128f   :  { %v2010_v43 = vadd.f32 %v2008_v40, %v5317_v33 }
0x1291   :  { %v3672_v47 = vmul.f32 -1.442695, %v2010_v43 }
0x1292   :  { %v2019_v50 = vpop.permute.xlu1 %2018 }
0x1293   :  { %4986 = vpow2.f32 %v3672_v47  ;;  %v2021_v51 = vadd.f32 %v2019_v50, %v5323_v38 }
0x1295   :  { %v3673_v44 = vmul.f32 -1.442695, %v2021_v51 }
0x1296   :  { %v2030_v46 = vpop.permute.xlu0 %2029  ;;  %v2038_v17 = vpop.permute.xlu1 %2037 }
0x1297   :  { %4988 = vpow2.f32 %v3673_v44 }
0x129d   :  { %v4987_v52 = vpop.eup %4986 }
0x129e   :  { %v2014_v3 = vadd.f32 1.0, %v4987_v52 }
0x12a0   :  { %4990 = vrcp.f32 %v2014_v3 }
0x12a1   :  { %v4989_v39 = vpop.eup %4988 }
0x12a2   :  { %v2025_v5 = vadd.f32 1.0, %v4989_v39 }
0x12a4   :  { %4992 = vrcp.f32 %v2025_v5 }
0x12aa   :  { %v4991_v9 = vpop.eup %4990 }
0x12ab   :  { %v2032_v11 = vmul.f32 %v4991_v9, %v2030_v46 }
0x12ad   :  { %v2033_v12 = vadd.f32 %v2032_v11, %v5333_v54 }
0x12ae   :  { %v4993_v14 = vpop.eup %4992 }
0x12af   :  { %4994 = vtanh.f32 %v2033_v12  ;;  %v2035_v15 = vsub.f32 1.0, %v4993_v14  ;;  %v2040_v18 = vmul.f32 %v4993_v14, %v2038_v17 }
0x12b9   :  { %v4995_v16 = vpop.eup %4994 }
0x12ba   :  { %v2036_v55 = vmul.f32 %v4995_v16, %v2035_v15 }
0x12bc   :  { %v2041_v2 = vadd.f32 %v2040_v18, %v2036_v55 }
0x12be   :  { %2067 = vrot.lane.b32.xlu1 %v2041_v2, %s5195_s0 }
0x12d3   :  { %v2065_v6 = vpop.permute.xlu0 %2064 }
0x12d4   :  { %2069 = vrot.lane.b32.xlu0 %v2065_v6, %s5195_s0  ;;  %s5202_s0 = smov 26  }
0x1330   :  { %v2068_v19 = vpop.permute.xlu1 %2067 }
0x1346   :  { %v5997_v22 = vpop.permute.xlu0 %2069 }
0x1347   :  { %v4600_v23 = vpack.c.bf16 %v5997_v22, %v2068_v19 }
0x1349   :  { %4601 = vmatpush3.bf16.msra.mxu1 %v4600_v23 }
0x134a   :  { %4605 = vmatprep.subr.bf16.mxu1 %v5182_v45 }
0x134c   :  { %4315 = vmatmul.mubr.msk.f32.vlgmr.msra.gmra.mrb[58].mxu1 %vm451_vm4, %v5733_v57 }
0x134d   :  { %4317 = vmatprep.mubr.msk.f32.mxu1 %vm5172_vm2, %v5171_v13 }
0x1350   :  { %4318 = vmatmul.mubr.msk.f32.gmra.mrb[60].mxu1 %vm451_vm4, %v5742_v58 }
0x1351   :  { %4320 = vmatprep.mubr.msk.f32.mxu1 %vm5172_vm2, %v5171_v13 }
0x1354   :  { %4321 = vmatmul.mubr.msk.f32.gmra.mrb[62].mxu1 %vm451_vm4, %v5751_v49 }
0x1355   :  { %4323 = vmatprep.mubr.msk.f32.mxu1 %vm5172_vm2, %v5171_v13 }
0x1358   :  { %4324 = vmatmul.mubr.msk.f32.gmra.mrb[64].mxu1 %vm451_vm4, %v5760_v60 }
0x1359   :  { %4326 = vmatprep.mubr.msk.f32.mxu1 %vm5172_vm2, %v5171_v13 }
0x135c   :  { %4327 = vmatmul.mubr.msk.f32.gmra.mrb[66].mxu1 %vm451_vm4, %v5769_v61 }
0x135d   :  { %4329 = vmatprep.mubr.msk.f32.mxu1 %vm5172_vm2, %v5171_v13 }
0x1360   :  { %4330 = vmatmul.mubr.msk.f32.gmra.mrb[68].mxu1 %vm451_vm4, %v5778_v62 }
0x1361   :  { %4332 = vmatprep.mubr.msk.f32.mxu1 %vm5172_vm2, %v5171_v13 }
0x1364   :  { %4333 = vmatmul.mubr.msk.f32.gmra.mrb[64].mxu1 %vm451_vm4, %v5787_v63 }
0x1365   :  { %4335 = vmatprep.mubr.msk.f32.mxu1 %vm5172_vm2, %v5171_v13 }
0x1368   :  { %4336 = vmatmul.mubr.msk.f32.gmra.mrb[66].mxu1 %vm451_vm4, %v5796_v0 }
0x1369   :  { %4338 = vmatprep.mubr.msk.f32.mxu1 %vm5172_vm2, %v5171_v13 }
0x136c   :  { %4339 = vmatmul.mubr.msk.f32.gmra.mrb[70].mxu1 %vm451_vm4, %v5805_v1 }
0x136d   :  { %4376 = vmatprep.mubr.msk.f32.mxu1 %vm5172_vm2, %v5171_v13 }
0x141f   :  { %v2139_v24 = vpop.f32.mrb[58].mxu1 }
0x1420   :  { %v2140_v25 = vadd.f32 %v2139_v24, %v5319_v35  ;;  %v4316_v53 = vpop.f32.mrb[59].mxu1 }
0x1422   :  { %2184 = vrot.lane.b32.xlu1 %v2140_v25, %s5196_s8 }
0x1423   :  { %v2144_v26 = vpop.f32.mrb[60].mxu1 }
0x1424   :  { %v2145_v27 = vadd.f32 %v2144_v26, %v5325_v41  ;;  %v4319_v10 = vpop.f32.mrb[61].mxu1 }
0x1426   :  { %2195 = vrot.lane.b32.xlu0 %v2145_v27, %s5196_s8 }
0x1427   :  { %v2149_v28 = vpop.f32.mrb[62].mxu1 }
0x1428   :  { %v2150_v8 = vadd.f32 %v2149_v28, %v5329_v48  ;;  %v4322_v29 = vpop.f32.mrb[63].mxu1 }
0x142a   :  { %2214 = vrot.lane.b32.xlu0 %v2041_v2, %s5173_s30  ;;  %2206 = vrot.lane.b32.xlu1 %v2150_v8, %s5196_s8 }
0x1433   :  { %v2164_v30 = vpop.f32.mrb[68].mxu1 }
0x1434   :  { %v4331_v4 = vpop.f32.mrb[69].mxu1  ;;  %v2165_v9 = vadd.f32 %v2164_v30, %v5452_v56 }
0x1437   :  { %v2169_v31 = vpop.f32.mrb[64].mxu1 }
0x1438   :  { %v4663_v32 = vadd.f32 %v5445_v34, %v2169_v31  ;;  %v4334_v36 = vpop.f32.mrb[65].mxu1 }
0x143a   :  { %v3687_v37 = vmul.f32 -1.442695, %v4663_v32 }
0x143b   :  { %v2174_v40 = vpop.f32.mrb[66].mxu1 }
0x143c   :  { %4996 = vpow2.f32 %v3687_v37  ;;  %v4665_v43 = vadd.f32 %v5449_v42, %v2174_v40  ;;  %v4337_v47 = vpop.f32.mrb[67].mxu1 }
0x143e   :  { %v3688_v50 = vmul.f32 -1.442695, %v4665_v43 }
0x143f   :  { %v2179_v51 = vpop.f32.mrb[70].mxu1 }
0x1440   :  { %v4340_v44 = vpop.f32.mrb[71].mxu1  ;;  %4998 = vpow2.f32 %v3688_v50  ;;  %v2180_v11 = vadd.f32 %v2179_v51, %v5339_v59 }
0x1446   :  { %v4997_v52 = vpop.eup %4996 }
0x1447   :  { %v2223_v3 = vadd.f32 1.0, %v4997_v52 }
0x1449   :  { %5000 = vrcp.f32 %v2223_v3 }
0x144a   :  { %v4999_v39 = vpop.eup %4998 }
0x144b   :  { %v2230_v5 = vadd.f32 1.0, %v4999_v39 }
0x144d   :  { %5002 = vrcp.f32 %v2230_v5 }
0x1453   :  { %v5001_v46 = vpop.eup %5000 }
0x1454   :  { %v2233_v12 = vmul.f32 %v5001_v46, %v2165_v9 }
0x1456   :  { %v2234_v14 = vadd.f32 %v2233_v12, %v2180_v11 }
0x1457   :  { %v5003_v15 = vpop.eup %5002 }
0x1458   :  { %5004 = vtanh.f32 %v2234_v14  ;;  %v2236_v16 = vsub.f32 1.0, %v5003_v15  ;;  %v2238_v55 = vmul.f32 %v5003_v15, %v5997_v22 }
0x1462   :  { %v5005_v17 = vpop.eup %5004 }
0x1463   :  { %v2237_v18 = vmul.f32 %v5005_v17, %v2236_v16 }
0x1465   :  { %v2239_v2 = vadd.f32 %v2238_v55, %v2237_v18 }
0x1467   :  { %2241 = vrot.lane.b32.xlu1 %v2239_v2, %s5196_s8  ;;  %s5203_s8 = smov 102  }
0x1494   :  { %v2185_v6 = vpop.permute.xlu1 %2184 }
0x1495   :  { %v2187_v19 = vadd.f32 %v2185_v6, %v5317_v33 }
0x1497   :  { %v3685_v23 = vmul.f32 -1.442695, %v2187_v19 }
0x1498   :  { %v2196_v24 = vpop.permute.xlu0 %2195 }
0x1499   :  { %5006 = vpow2.f32 %v3685_v23  ;;  %v2198_v25 = vadd.f32 %v2196_v24, %v5323_v38 }
0x149b   :  { %v3686_v53 = vmul.f32 -1.442695, %v2198_v25 }
0x149c   :  { %v2207_v22 = vpop.permute.xlu1 %2206  ;;  %v2215_v36 = vpop.permute.xlu0 %2214 }
0x149d   :  { %5008 = vpow2.f32 %v3686_v53 }
0x14a3   :  { %v5007_v26 = vpop.eup %5006 }
0x14a4   :  { %v2191_v27 = vadd.f32 1.0, %v5007_v26 }
0x14a6   :  { %5010 = vrcp.f32 %v2191_v27 }
0x14a7   :  { %v5009_v10 = vpop.eup %5008 }
0x14a8   :  { %v2202_v28 = vadd.f32 1.0, %v5009_v10 }
0x14aa   :  { %5012 = vrcp.f32 %v2202_v28 }
0x14b0   :  { %v5011_v8 = vpop.eup %5010 }
0x14b1   :  { %v2209_v29 = vmul.f32 %v5011_v8, %v2207_v22 }
0x14b3   :  { %v2210_v30 = vadd.f32 %v2209_v29, %v5333_v54 }
0x14b4   :  { %v5013_v4 = vpop.eup %5012 }
0x14b5   :  { %5014 = vtanh.f32 %v2210_v30  ;;  %v2212_v31 = vsub.f32 1.0, %v5013_v4  ;;  %v2217_v37 = vmul.f32 %v5013_v4, %v2215_v36 }
0x14bf   :  { %v5015_v32 = vpop.eup %5014 }
0x14c0   :  { %v2213_v40 = vmul.f32 %v5015_v32, %v2212_v31 }
0x14c2   :  { %v2218_v43 = vadd.f32 %v2217_v37, %v2213_v40 }
0x14c4   :  { %2244 = vrot.lane.b32.xlu0 %v2218_v43, %s5197_s9 }
0x14d9   :  { %v2242_v47 = vpop.permute.xlu1 %2241 }
0x14da   :  { %2246 = vrot.lane.b32.xlu1 %v2242_v47, %s5197_s9  ;;  %s5204_s9 = smov 28  }
0x1536   :  { %v2245_v50 = vpop.permute.xlu0 %2244 }
0x154c   :  { %v6053_v51 = vpop.permute.xlu1 %2246 }
0x154d   :  { %v4603_v44 = vpack.c.bf16 %v6053_v51, %v2245_v50 }
0x154f   :  { %4604 = vmatpush3.bf16.msra.mxu0 %v4603_v44 }
0x1550   :  { %4608 = vmatprep.subr.bf16.mxu0 %v5182_v45 }
0x1552   :  { %4346 = vmatmul.mubr.msk.f32.vlgmr.msra.gmra.mrb[78].mxu0 %vm451_vm4, %v5733_v57 }
0x1553   :  { %4348 = vmatprep.mubr.msk.f32.mxu0 %vm5172_vm2, %v5171_v13 }
0x1556   :  { %4349 = vmatmul.mubr.msk.f32.gmra.mrb[80].mxu0 %vm451_vm4, %v5742_v58 }
0x1557   :  { %4351 = vmatprep.mubr.msk.f32.mxu0 %vm5172_vm2, %v5171_v13 }
0x155a   :  { %4352 = vmatmul.mubr.msk.f32.gmra.mrb[82].mxu0 %vm451_vm4, %v5751_v49 }
0x155b   :  { %4354 = vmatprep.mubr.msk.f32.mxu0 %vm5172_vm2, %v5171_v13 }
0x155e   :  { %4355 = vmatmul.mubr.msk.f32.gmra.mrb[84].mxu0 %vm451_vm4, %v5760_v60 }
0x155f   :  { %4357 = vmatprep.mubr.msk.f32.mxu0 %vm5172_vm2, %v5171_v13 }
0x1562   :  { %4358 = vmatmul.mubr.msk.f32.gmra.mrb[86].mxu0 %vm451_vm4, %v5769_v61 }
0x1563   :  { %4360 = vmatprep.mubr.msk.f32.mxu0 %vm5172_vm2, %v5171_v13 }
0x1566   :  { %4361 = vmatmul.mubr.msk.f32.gmra.mrb[88].mxu0 %vm451_vm4, %v5778_v62 }
0x1567   :  { %4363 = vmatprep.mubr.msk.f32.mxu0 %vm5172_vm2, %v5171_v13 }
0x156a   :  { %4364 = vmatmul.mubr.msk.f32.gmra.mrb[84].mxu0 %vm451_vm4, %v5787_v63 }
0x156b   :  { %4366 = vmatprep.mubr.msk.f32.mxu0 %vm5172_vm2, %v5171_v13 }
0x156e   :  { %4367 = vmatmul.mubr.msk.f32.gmra.mrb[86].mxu0 %vm451_vm4, %v5796_v0 }
0x156f   :  { %4369 = vmatprep.mubr.msk.f32.mxu0 %vm5172_vm2, %v5171_v13 }
0x1572   :  { %4370 = vmatmul.mubr.msk.f32.gmra.mrb[90].mxu0 %vm451_vm4, %v5805_v1 }
0x1573   :  { %4407 = vmatprep.mubr.msk.f32.mxu0 %vm5172_vm2, %v5171_v13 }
0x1625   :  { %v2316_v57 = vpop.f32.mrb[78].mxu0 }
0x1626   :  { %v2317_v58 = vadd.f32 %v2316_v57, %v5319_v35  ;;  %v4347_v49 = vpop.f32.mrb[79].mxu0 }
0x1628   :  { %2361 = vrot.lane.b32.xlu0 %v2317_v58, %s5198_s10 }
0x1629   :  { %v2321_v60 = vpop.f32.mrb[80].mxu0 }
0x162a   :  { %v2322_v61 = vadd.f32 %v2321_v60, %v5325_v41  ;;  %v4350_v62 = vpop.f32.mrb[81].mxu0 }
0x162c   :  { %2372 = vrot.lane.b32.xlu1 %v2322_v61, %s5198_s10 }
0x162d   :  { %v2326_v63 = vpop.f32.mrb[82].mxu0 }
0x162e   :  { %v2327_v0 = vadd.f32 %v2326_v63, %v5329_v48  ;;  %v4353_v1 = vpop.f32.mrb[83].mxu0 }
0x1630   :  { %2391 = vrot.lane.b32.xlu1 %v2218_v43, %s5173_s30  ;;  %2383 = vrot.lane.b32.xlu0 %v2327_v0, %s5198_s10 }
0x1639   :  { %v2341_v52 = vpop.f32.mrb[88].mxu0 }
0x163a   :  { %v4362_v3 = vpop.f32.mrb[89].mxu0  ;;  %v2342_v19 = vadd.f32 %v2341_v52, %v5452_v56 }
0x163d   :  { %v2346_v39 = vpop.f32.mrb[84].mxu0 }
0x163e   :  { %v4667_v5 = vadd.f32 %v5445_v34, %v2346_v39  ;;  %v4365_v9 = vpop.f32.mrb[85].mxu0 }
0x163f   :  { %v6125_v9 = vld [vmem:[%s6477_s1 + $0x78] sm:$0xff] }
0x1640   :  { %v3700_v46 = vmul.f32 -1.442695, %v4667_v5  ;;  %v6116_v5 = vld [vmem:[%s6477_s1 + $0x70] sm:$0xff] }
0x1641   :  { %v2351_v11 = vpop.f32.mrb[86].mxu0 }
0x1642   :  { %5016 = vpow2.f32 %v3700_v46  ;;  %v4669_v12 = vadd.f32 %v5449_v42, %v2351_v11  ;;  %v4368_v14 = vpop.f32.mrb[87].mxu0  ;;  %v6134_v46 = vld [vmem:[%s6477_s1 + $0x80] sm:$0xff]  ;;  %v6143_v11 = vld [vmem:[%s6477_s1 + $0x88] sm:$0xff] }
0x1643   :  { %v6161_v14 = vld [vmem:[%s6477_s1 + $0x98] sm:$0xff] }
0x1644   :  { %v3701_v15 = vmul.f32 -1.442695, %v4669_v12  ;;  %v6152_v12 = vld [vmem:[%s6477_s1 + $0x90] sm:$0xff] }
0x1645   :  { %v2356_v16 = vpop.f32.mrb[90].mxu0 }
0x1646   :  { %v4371_v17 = vpop.f32.mrb[91].mxu0  ;;  %5018 = vpow2.f32 %v3701_v15  ;;  %v2357_v24 = vadd.f32 %v2356_v16, %v5339_v59  ;;  %v6170_v15 = vld [vmem:[%s6477_s1 + $0xa0] sm:$0xff]  ;;  %v6179_v16 = vld [vmem:[%s6477_s1 + $0xa8] sm:$0xff] }
0x1647   :  { %v6188_v17 = vld [vmem:[%s6477_s1 + $0xb0] sm:$0xff] }
0x164c   :  { %v5017_v18 = vpop.eup %5016 }
0x164d   :  { %v2400_v55 = vadd.f32 1.0, %v5017_v18 }
0x164f   :  { %5020 = vrcp.f32 %v2400_v55 }
0x1650   :  { %v5019_v2 = vpop.eup %5018 }
0x1651   :  { %v2407_v6 = vadd.f32 1.0, %v5019_v2 }
0x1653   :  { %5022 = vrcp.f32 %v2407_v6 }
0x1659   :  { %v5021_v23 = vpop.eup %5020 }
0x165a   :  { %v2410_v25 = vmul.f32 %v5021_v23, %v2342_v19 }
0x165c   :  { %v2411_v53 = vadd.f32 %v2410_v25, %v2357_v24 }
0x165d   :  { %v5023_v26 = vpop.eup %5022 }
0x165e   :  { %5024 = vtanh.f32 %v2411_v53  ;;  %v2413_v27 = vsub.f32 1.0, %v5023_v26  ;;  %v2415_v8 = vmul.f32 %v5023_v26, %v6053_v51 }
0x1668   :  { %v5025_v10 = vpop.eup %5024 }
0x1669   :  { %v2414_v28 = vmul.f32 %v5025_v10, %v2413_v27 }
0x166b   :  { %v2416_v22 = vadd.f32 %v2415_v8, %v2414_v28 }
0x166d   :  { %2418 = vrot.lane.b32.xlu0 %v2416_v22, %s5198_s10  ;;  %s5205_s10 = smov 100  }
0x169a   :  { %v2362_v29 = vpop.permute.xlu0 %2361 }
0x169b   :  { %v2364_v30 = vadd.f32 %v2362_v29, %v5317_v33 }
0x169d   :  { %v3698_v4 = vmul.f32 -1.442695, %v2364_v30 }
0x169e   :  { %v2373_v31 = vpop.permute.xlu1 %2372 }
0x169f   :  { %5026 = vpow2.f32 %v3698_v4  ;;  %v2375_v32 = vadd.f32 %v2373_v31, %v5323_v38 }
0x16a1   :  { %v3699_v36 = vmul.f32 -1.442695, %v2375_v32 }
0x16a2   :  { %v2384_v51 = vpop.permute.xlu0 %2383  ;;  %v2392_v61 = vpop.permute.xlu1 %2391 }
0x16a3   :  { %5028 = vpow2.f32 %v3699_v36 }
0x16a9   :  { %v5027_v37 = vpop.eup %5026 }
0x16aa   :  { %v2368_v40 = vadd.f32 1.0, %v5027_v37 }
0x16ac   :  { %5030 = vrcp.f32 %v2368_v40 }
0x16ad   :  { %v5029_v43 = vpop.eup %5028 }
0x16ae   :  { %v2379_v47 = vadd.f32 1.0, %v5029_v43 }
0x16b0   :  { %5032 = vrcp.f32 %v2379_v47 }
0x16b6   :  { %v5031_v50 = vpop.eup %5030 }
0x16b7   :  { %v2386_v44 = vmul.f32 %v5031_v50, %v2384_v51 }
0x16b9   :  { %v2387_v57 = vadd.f32 %v2386_v44, %v5333_v54 }
0x16ba   :  { %v5033_v58 = vpop.eup %5032 }
0x16bb   :  { %5034 = vtanh.f32 %v2387_v57  ;;  %v2389_v49 = vsub.f32 1.0, %v5033_v58  ;;  %v2394_v62 = vmul.f32 %v5033_v58, %v2392_v61 }
0x16c5   :  { %v5035_v60 = vpop.eup %5034 }
0x16c6   :  { %v2390_v63 = vmul.f32 %v5035_v60, %v2389_v49 }
0x16c8   :  { %v2395_v0 = vadd.f32 %v2394_v62, %v2390_v63 }
0x16ca   :  { %2421 = vrot.lane.b32.xlu1 %v2395_v0, %s5199_s11 }
0x16df   :  { %v2419_v1 = vpop.permute.xlu0 %2418 }
0x16e0   :  { %2423 = vrot.lane.b32.xlu0 %v2419_v1, %s5199_s11  ;;  %s5206_s11 = smov 30  }
0x173c   :  { %v2422_v52 = vpop.permute.xlu1 %2421 }
0x1752   :  { %v6109_v3 = vpop.permute.xlu0 %2423 }
0x1753   :  { %v4606_v39 = vpack.c.bf16 %v6109_v3, %v2422_v52 }
0x1755   :  { %4607 = vmatpush3.bf16.msra.mxu1 %v4606_v39 }
0x1756   :  { %4611 = vmatprep.subr.bf16.mxu1 %v5182_v45 }
0x1758   :  { %4377 = vmatmul.mubr.msk.f32.vlgmr.msra.gmra.mrb[72].mxu1 %vm451_vm4, %v6116_v5 }
0x1759   :  { %4379 = vmatprep.mubr.msk.f32.mxu1 %vm5172_vm2, %v5171_v13 }
0x175c   :  { %4380 = vmatmul.mubr.msk.f32.gmra.mrb[74].mxu1 %vm451_vm4, %v6125_v9 }
0x175d   :  { %4382 = vmatprep.mubr.msk.f32.mxu1 %vm5172_vm2, %v5171_v13 }
0x1760   :  { %4383 = vmatmul.mubr.msk.f32.gmra.mrb[76].mxu1 %vm451_vm4, %v6134_v46 }
0x1761   :  { %4385 = vmatprep.mubr.msk.f32.mxu1 %vm5172_vm2, %v5171_v13 }
0x1764   :  { %4386 = vmatmul.mubr.msk.f32.gmra.mrb[78].mxu1 %vm451_vm4, %v6143_v11 }
0x1765   :  { %4388 = vmatprep.mubr.msk.f32.mxu1 %vm5172_vm2, %v5171_v13 }
0x1768   :  { %4389 = vmatmul.mubr.msk.f32.gmra.mrb[80].mxu1 %vm451_vm4, %v6152_v12 }
0x1769   :  { %4391 = vmatprep.mubr.msk.f32.mxu1 %vm5172_vm2, %v5171_v13 }
0x176c   :  { %4392 = vmatmul.mubr.msk.f32.gmra.mrb[82].mxu1 %vm451_vm4, %v6161_v14 }
0x176d   :  { %4394 = vmatprep.mubr.msk.f32.mxu1 %vm5172_vm2, %v5171_v13 }
0x1770   :  { %4395 = vmatmul.mubr.msk.f32.gmra.mrb[78].mxu1 %vm451_vm4, %v6170_v15 }
0x1771   :  { %4397 = vmatprep.mubr.msk.f32.mxu1 %vm5172_vm2, %v5171_v13 }
0x1774   :  { %4398 = vmatmul.mubr.msk.f32.gmra.mrb[80].mxu1 %vm451_vm4, %v6179_v16 }
0x1775   :  { %4400 = vmatprep.mubr.msk.f32.mxu1 %vm5172_vm2, %v5171_v13 }
0x1778   :  { %4401 = vmatmul.mubr.msk.f32.gmra.mrb[84].mxu1 %vm451_vm4, %v6188_v17 }
0x1779   :  { %4438 = vmatprep.mubr.msk.f32.mxu1 %vm5172_vm2, %v5171_v13 }
0x182b   :  { %v2493_v18 = vpop.f32.mrb[72].mxu1 }
0x182c   :  { %v2494_v55 = vadd.f32 %v2493_v18, %v5319_v35  ;;  %v4378_v2 = vpop.f32.mrb[73].mxu1 }
0x182e   :  { %2538 = vrot.lane.b32.xlu1 %v2494_v55, %s5200_s3 }
0x182f   :  { %v2498_v6 = vpop.f32.mrb[74].mxu1 }
0x1830   :  { %v2499_v19 = vadd.f32 %v2498_v6, %v5325_v41  ;;  %v4381_v23 = vpop.f32.mrb[75].mxu1 }
0x1832   :  { %2549 = vrot.lane.b32.xlu0 %v2499_v19, %s5200_s3 }
0x1833   :  { %v2503_v24 = vpop.f32.mrb[76].mxu1 }
0x1834   :  { %v2504_v25 = vadd.f32 %v2503_v24, %v5329_v48  ;;  %v4384_v53 = vpop.f32.mrb[77].mxu1 }
0x1836   :  { %2568 = vrot.lane.b32.xlu0 %v2395_v0, %s5173_s30  ;;  %2560 = vrot.lane.b32.xlu1 %v2504_v25, %s5200_s3 }
0x183f   :  { %v2518_v26 = vpop.f32.mrb[82].mxu1 }
0x1840   :  { %v4393_v27 = vpop.f32.mrb[83].mxu1  ;;  %v2519_v50 = vadd.f32 %v2518_v26, %v5452_v56 }
0x1843   :  { %v2523_v10 = vpop.f32.mrb[78].mxu1 }
0x1844   :  { %v4671_v28 = vadd.f32 %v5445_v34, %v2523_v10  ;;  %v4396_v8 = vpop.f32.mrb[79].mxu1 }
0x1846   :  { %v3713_v22 = vmul.f32 -1.442695, %v4671_v28 }
0x1847   :  { %v2528_v29 = vpop.f32.mrb[80].mxu1 }
0x1848   :  { %5036 = vpow2.f32 %v3713_v22  ;;  %v4673_v30 = vadd.f32 %v5449_v42, %v2528_v29  ;;  %v4399_v4 = vpop.f32.mrb[81].mxu1 }
0x184a   :  { %v3714_v31 = vmul.f32 -1.442695, %v4673_v30 }
0x184b   :  { %v2533_v32 = vpop.f32.mrb[84].mxu1 }
0x184c   :  { %v4402_v36 = vpop.f32.mrb[85].mxu1  ;;  %5038 = vpow2.f32 %v3714_v31  ;;  %v2534_v44 = vadd.f32 %v2533_v32, %v5339_v59 }
0x1852   :  { %v5037_v37 = vpop.eup %5036 }
0x1853   :  { %v2577_v40 = vadd.f32 1.0, %v5037_v37 }
0x1855   :  { %5040 = vrcp.f32 %v2577_v40 }
0x1856   :  { %v5039_v43 = vpop.eup %5038 }
0x1857   :  { %v2584_v47 = vadd.f32 1.0, %v5039_v43 }
0x1859   :  { %5042 = vrcp.f32 %v2584_v47 }
0x185f   :  { %v5041_v51 = vpop.eup %5040 }
0x1860   :  { %v2587_v57 = vmul.f32 %v5041_v51, %v2519_v50 }
0x1862   :  { %v2588_v58 = vadd.f32 %v2587_v57, %v2534_v44 }
0x1863   :  { %v5043_v49 = vpop.eup %5042 }
0x1864   :  { %5044 = vtanh.f32 %v2588_v58  ;;  %v2590_v60 = vsub.f32 1.0, %v5043_v49  ;;  %v2592_v63 = vmul.f32 %v5043_v49, %v6109_v3 }
0x186e   :  { %v5045_v61 = vpop.eup %5044 }
0x186f   :  { %v2591_v62 = vmul.f32 %v5045_v61, %v2590_v60 }
0x1871   :  { %v2593_v0 = vadd.f32 %v2592_v63, %v2591_v62 }
0x1873   :  { %2595 = vrot.lane.b32.xlu1 %v2593_v0, %s5200_s3 }
0x18a0   :  { %v2539_v1 = vpop.permute.xlu1 %2538 }
0x18a1   :  { %v2541_v52 = vadd.f32 %v2539_v1, %v5317_v33 }
0x18a3   :  { %v3711_v39 = vmul.f32 -1.442695, %v2541_v52 }
0x18a4   :  { %v2550_v18 = vpop.permute.xlu0 %2549 }
0x18a5   :  { %5046 = vpow2.f32 %v3711_v39  ;;  %v2552_v55 = vadd.f32 %v2550_v18, %v5323_v38 }
0x18a7   :  { %v3712_v2 = vmul.f32 -1.442695, %v2552_v55 }
0x18a8   :  { %v2561_v3 = vpop.permute.xlu1 %2560  ;;  %v2569_v8 = vpop.permute.xlu0 %2568 }
0x18a9   :  { %5048 = vpow2.f32 %v3712_v2 }
0x18af   :  { %v5047_v6 = vpop.eup %5046 }
0x18b0   :  { %v2545_v19 = vadd.f32 1.0, %v5047_v6 }
0x18b2   :  { %5050 = vrcp.f32 %v2545_v19 }
0x18b3   :  { %v5049_v23 = vpop.eup %5048 }
0x18b4   :  { %v2556_v24 = vadd.f32 1.0, %v5049_v23 }
0x18b6   :  { %5052 = vrcp.f32 %v2556_v24 }
0x18bc   :  { %v5051_v25 = vpop.eup %5050 }
0x18bd   :  { %v2563_v53 = vmul.f32 %v5051_v25, %v2561_v3 }
0x18bf   :  { %v2564_v26 = vadd.f32 %v2563_v53, %v5333_v54 }
0x18c0   :  { %v5053_v27 = vpop.eup %5052 }
0x18c1   :  { %5054 = vtanh.f32 %v2564_v26  ;;  %v2566_v10 = vsub.f32 1.0, %v5053_v27  ;;  %v2571_v22 = vmul.f32 %v5053_v27, %v2569_v8 }
0x18cb   :  { %v5055_v28 = vpop.eup %5054 }
0x18cc   :  { %v2567_v29 = vmul.f32 %v5055_v28, %v2566_v10 }
0x18ce   :  { %v2572_v30 = vadd.f32 %v2571_v22, %v2567_v29 }
0x18d0   :  { %2598 = vrot.lane.b32.xlu0 %v2572_v30, %s5201_s7 }
0x18e5   :  { %v2596_v4 = vpop.permute.xlu1 %2595 }
0x18e6   :  { %2600 = vrot.lane.b32.xlu1 %v2596_v4, %s5201_s7 }
0x1942   :  { %v2599_v31 = vpop.permute.xlu0 %2598 }
0x1958   :  { %v6210_v32 = vpop.permute.xlu1 %2600 }
0x1959   :  { %v4609_v36 = vpack.c.bf16 %v6210_v32, %v2599_v31 }
0x195b   :  { %4610 = vmatpush3.bf16.msra.mxu0 %v4609_v36 }
0x195c   :  { %4614 = vmatprep.subr.bf16.mxu0 %v5182_v45 }
0x195e   :  { %4408 = vmatmul.mubr.msk.f32.vlgmr.msra.gmra.mrb[92].mxu0 %vm451_vm4, %v6116_v5 }
0x195f   :  { %4410 = vmatprep.mubr.msk.f32.mxu0 %vm5172_vm2, %v5171_v13 }
0x1962   :  { %4411 = vmatmul.mubr.msk.f32.gmra.mrb[94].mxu0 %vm451_vm4, %v6125_v9 }
0x1963   :  { %4413 = vmatprep.mubr.msk.f32.mxu0 %vm5172_vm2, %v5171_v13 }
0x1966   :  { %4414 = vmatmul.mubr.msk.f32.gmra.mrb[96].mxu0 %vm451_vm4, %v6134_v46 }
0x1967   :  { %4416 = vmatprep.mubr.msk.f32.mxu0 %vm5172_vm2, %v5171_v13 }
0x196a   :  { %4417 = vmatmul.mubr.msk.f32.gmra.mrb[98].mxu0 %vm451_vm4, %v6143_v11 }
0x196b   :  { %4419 = vmatprep.mubr.msk.f32.mxu0 %vm5172_vm2, %v5171_v13 }
0x196e   :  { %4420 = vmatmul.mubr.msk.f32.gmra.mrb[100].mxu0 %vm451_vm4, %v6152_v12 }
0x196f   :  { %4422 = vmatprep.mubr.msk.f32.mxu0 %vm5172_vm2, %v5171_v13 }
0x1972   :  { %4423 = vmatmul.mubr.msk.f32.gmra.mrb[102].mxu0 %vm451_vm4, %v6161_v14 }
0x1973   :  { %4425 = vmatprep.mubr.msk.f32.mxu0 %vm5172_vm2, %v5171_v13 }
0x1976   :  { %4426 = vmatmul.mubr.msk.f32.gmra.mrb[98].mxu0 %vm451_vm4, %v6170_v15 }
0x1977   :  { %4428 = vmatprep.mubr.msk.f32.mxu0 %vm5172_vm2, %v5171_v13 }
0x197a   :  { %4429 = vmatmul.mubr.msk.f32.gmra.mrb[100].mxu0 %vm451_vm4, %v6179_v16 }
0x197b   :  { %4431 = vmatprep.mubr.msk.f32.mxu0 %vm5172_vm2, %v5171_v13 }
0x197e   :  { %4432 = vmatmul.mubr.msk.f32.gmra.mrb[104].mxu0 %vm451_vm4, %v6188_v17 }
0x197f   :  { %4469 = vmatprep.mubr.msk.f32.mxu0 %vm5172_vm2, %v5171_v13 }
0x1a31   :  { %v2670_v37 = vpop.f32.mrb[92].mxu0 }
0x1a32   :  { %v2671_v40 = vadd.f32 %v2670_v37, %v5319_v35  ;;  %v4409_v43 = vpop.f32.mrb[93].mxu0 }
0x1a34   :  { %2715 = vrot.lane.b32.xlu0 %v2671_v40, %s5202_s0 }
0x1a35   :  { %v2675_v47 = vpop.f32.mrb[94].mxu0 }
0x1a36   :  { %v2676_v50 = vadd.f32 %v2675_v47, %v5325_v41  ;;  %v4412_v51 = vpop.f32.mrb[95].mxu0 }
0x1a38   :  { %2726 = vrot.lane.b32.xlu1 %v2676_v50, %s5202_s0 }
0x1a39   :  { %v2680_v44 = vpop.f32.mrb[96].mxu0 }
0x1a3a   :  { %v2681_v57 = vadd.f32 %v2680_v44, %v5329_v48  ;;  %v4415_v58 = vpop.f32.mrb[97].mxu0 }
0x1a3c   :  { %2745 = vrot.lane.b32.xlu1 %v2572_v30, %s5173_s30  ;;  %2737 = vrot.lane.b32.xlu0 %v2681_v57, %s5202_s0 }
0x1a45   :  { %v2695_v49 = vpop.f32.mrb[102].mxu0 }
0x1a46   :  { %v4424_v60 = vpop.f32.mrb[103].mxu0  ;;  %v2696_v25 = vadd.f32 %v2695_v49, %v5452_v56 }
0x1a49   :  { %v2700_v61 = vpop.f32.mrb[98].mxu0 }
0x1a4a   :  { %v4675_v62 = vadd.f32 %v5445_v34, %v2700_v61  ;;  %v4427_v63 = vpop.f32.mrb[99].mxu0 }
0x1a4c   :  { %v3726_v0 = vmul.f32 -1.442695, %v4675_v62 }
0x1a4d   :  { %v2705_v1 = vpop.f32.mrb[100].mxu0 }
0x1a4e   :  { %5056 = vpow2.f32 %v3726_v0  ;;  %v4677_v52 = vadd.f32 %v5449_v42, %v2705_v1  ;;  %v4430_v39 = vpop.f32.mrb[101].mxu0 }
0x1a50   :  { %v3727_v18 = vmul.f32 -1.442695, %v4677_v52 }
0x1a51   :  { %v2710_v55 = vpop.f32.mrb[104].mxu0 }
0x1a52   :  { %v4433_v2 = vpop.f32.mrb[105].mxu0  ;;  %5058 = vpow2.f32 %v3727_v18  ;;  %v2711_v53 = vadd.f32 %v2710_v55, %v5339_v59 }
0x1a58   :  { %v5057_v6 = vpop.eup %5056 }
0x1a59   :  { %v2754_v19 = vadd.f32 1.0, %v5057_v6 }
0x1a5b   :  { %5060 = vrcp.f32 %v2754_v19 }
0x1a5c   :  { %v5059_v23 = vpop.eup %5058 }
0x1a5d   :  { %v2761_v24 = vadd.f32 1.0, %v5059_v23 }
0x1a5f   :  { %5062 = vrcp.f32 %v2761_v24 }
0x1a65   :  { %v5061_v3 = vpop.eup %5060 }
0x1a66   :  { %v2764_v26 = vmul.f32 %v5061_v3, %v2696_v25 }
0x1a68   :  { %v2765_v27 = vadd.f32 %v2764_v26, %v2711_v53 }
0x1a69   :  { %v5063_v10 = vpop.eup %5062 }
0x1a6a   :  { %5064 = vtanh.f32 %v2765_v27  ;;  %v2767_v28 = vsub.f32 1.0, %v5063_v10  ;;  %v2769_v29 = vmul.f32 %v5063_v10, %v6210_v32 }
0x1a74   :  { %v5065_v8 = vpop.eup %5064 }
0x1a75   :  { %v2768_v22 = vmul.f32 %v5065_v8, %v2767_v28 }
0x1a77   :  { %v2770_v30 = vadd.f32 %v2769_v29, %v2768_v22 }
0x1a79   :  { %2772 = vrot.lane.b32.xlu0 %v2770_v30, %s5202_s0 }
0x1aa6   :  { %v2716_v4 = vpop.permute.xlu0 %2715 }
0x1aa7   :  { %v2718_v31 = vadd.f32 %v2716_v4, %v5317_v33 }
0x1aa9   :  { %v3724_v36 = vmul.f32 -1.442695, %v2718_v31 }
0x1aaa   :  { %v2727_v37 = vpop.permute.xlu1 %2726 }
0x1aab   :  { %5066 = vpow2.f32 %v3724_v36  ;;  %v2729_v40 = vadd.f32 %v2727_v37, %v5323_v38 }
0x1aad   :  { %v3725_v43 = vmul.f32 -1.442695, %v2729_v40 }
0x1aae   :  { %v2738_v32 = vpop.permute.xlu0 %2737  ;;  %v2746_v63 = vpop.permute.xlu1 %2745 }
0x1aaf   :  { %5068 = vpow2.f32 %v3725_v43 }
0x1ab5   :  { %v5067_v47 = vpop.eup %5066 }
0x1ab6   :  { %v2722_v50 = vadd.f32 1.0, %v5067_v47 }
0x1ab8   :  { %5070 = vrcp.f32 %v2722_v50 }
0x1ab9   :  { %v5069_v51 = vpop.eup %5068 }
0x1aba   :  { %v2733_v44 = vadd.f32 1.0, %v5069_v51 }
0x1abc   :  { %5072 = vrcp.f32 %v2733_v44 }
0x1ac2   :  { %v5071_v57 = vpop.eup %5070 }
0x1ac3   :  { %v2740_v58 = vmul.f32 %v5071_v57, %v2738_v32 }
0x1ac5   :  { %v2741_v49 = vadd.f32 %v2740_v58, %v5333_v54 }
0x1ac6   :  { %v5073_v60 = vpop.eup %5072 }
0x1ac7   :  { %5074 = vtanh.f32 %v2741_v49  ;;  %v2743_v61 = vsub.f32 1.0, %v5073_v60  ;;  %v2748_v0 = vmul.f32 %v5073_v60, %v2746_v63 }
0x1ad1   :  { %v5075_v62 = vpop.eup %5074 }
0x1ad2   :  { %v2744_v1 = vmul.f32 %v5075_v62, %v2743_v61 }
0x1ad4   :  { %v2749_v52 = vadd.f32 %v2748_v0, %v2744_v1 }
0x1ad6   :  { %2775 = vrot.lane.b32.xlu1 %v2749_v52, %s5203_s8 }
0x1aeb   :  { %v2773_v39 = vpop.permute.xlu0 %2772 }
0x1aec   :  { %2777 = vrot.lane.b32.xlu0 %v2773_v39, %s5203_s8 }
0x1b48   :  { %v2776_v18 = vpop.permute.xlu1 %2775 }
0x1b5e   :  { %v6266_v55 = vpop.permute.xlu0 %2777 }
0x1b5f   :  { %v4612_v2 = vpack.c.bf16 %v6266_v55, %v2776_v18 }
0x1b61   :  { %4613 = vmatpush3.bf16.msra.mxu1 %v4612_v2 }
0x1b62   :  { %4617 = vmatprep.subr.bf16.mxu1 %v5182_v45 }
0x1b64   :  { %4439 = vmatmul.mubr.msk.f32.vlgmr.msra.gmra.mrb[86].mxu1 %vm451_vm4, %v6116_v5 }
0x1b65   :  { %4441 = vmatprep.mubr.msk.f32.mxu1 %vm5172_vm2, %v5171_v13 }
0x1b68   :  { %4442 = vmatmul.mubr.msk.f32.gmra.mrb[88].mxu1 %vm451_vm4, %v6125_v9 }
0x1b69   :  { %4444 = vmatprep.mubr.msk.f32.mxu1 %vm5172_vm2, %v5171_v13 }
0x1b6c   :  { %4445 = vmatmul.mubr.msk.f32.gmra.mrb[90].mxu1 %vm451_vm4, %v6134_v46 }
0x1b6d   :  { %4447 = vmatprep.mubr.msk.f32.mxu1 %vm5172_vm2, %v5171_v13 }
0x1b70   :  { %4448 = vmatmul.mubr.msk.f32.gmra.mrb[92].mxu1 %vm451_vm4, %v6143_v11 }
0x1b71   :  { %4450 = vmatprep.mubr.msk.f32.mxu1 %vm5172_vm2, %v5171_v13 }
0x1b74   :  { %4451 = vmatmul.mubr.msk.f32.gmra.mrb[94].mxu1 %vm451_vm4, %v6152_v12 }
0x1b75   :  { %4453 = vmatprep.mubr.msk.f32.mxu1 %vm5172_vm2, %v5171_v13 }
0x1b78   :  { %4454 = vmatmul.mubr.msk.f32.gmra.mrb[96].mxu1 %vm451_vm4, %v6161_v14 }
0x1b79   :  { %4456 = vmatprep.mubr.msk.f32.mxu1 %vm5172_vm2, %v5171_v13 }
0x1b7c   :  { %4457 = vmatmul.mubr.msk.f32.gmra.mrb[92].mxu1 %vm451_vm4, %v6170_v15 }
0x1b7d   :  { %4459 = vmatprep.mubr.msk.f32.mxu1 %vm5172_vm2, %v5171_v13 }
0x1b80   :  { %4460 = vmatmul.mubr.msk.f32.gmra.mrb[94].mxu1 %vm451_vm4, %v6179_v16 }
0x1b81   :  { %4462 = vmatprep.mubr.msk.f32.mxu1 %vm5172_vm2, %v5171_v13 }
0x1b84   :  { %4463 = vmatmul.mubr.msk.f32.gmra.mrb[98].mxu1 %vm451_vm4, %v6188_v17 }
0x1b85   :  { %4500 = vmatprep.mubr.msk.f32.mxu1 %vm5172_vm2, %v5171_v13 }
0x1c37   :  { %v2847_v45 = vpop.f32.mrb[86].mxu1 }
0x1c38   :  { %v2848_v6 = vadd.f32 %v2847_v45, %v5319_v35  ;;  %v4440_v19 = vpop.f32.mrb[87].mxu1 }
0x1c3a   :  { %2892 = vrot.lane.b32.xlu1 %v2848_v6, %s5204_s9 }
0x1c3b   :  { %v2852_v23 = vpop.f32.mrb[88].mxu1 }
0x1c3c   :  { %v2853_v24 = vadd.f32 %v2852_v23, %v5325_v41  ;;  %v4443_v25 = vpop.f32.mrb[89].mxu1 }
0x1c3e   :  { %2903 = vrot.lane.b32.xlu0 %v2853_v24, %s5204_s9 }
0x1c3f   :  { %v2857_v3 = vpop.f32.mrb[90].mxu1 }
0x1c40   :  { %v2858_v53 = vadd.f32 %v2857_v3, %v5329_v48  ;;  %v4446_v26 = vpop.f32.mrb[91].mxu1 }
0x1c42   :  { %2922 = vrot.lane.b32.xlu0 %v2749_v52, %s5173_s30  ;;  %2914 = vrot.lane.b32.xlu1 %v2858_v53, %s5204_s9 }
0x1c4b   :  { %v2872_v27 = vpop.f32.mrb[96].mxu1 }
0x1c4c   :  { %v4455_v10 = vpop.f32.mrb[97].mxu1  ;;  %v2873_v44 = vadd.f32 %v2872_v27, %v5452_v56 }
0x1c4f   :  { %v2877_v28 = vpop.f32.mrb[92].mxu1 }
0x1c50   :  { %v4679_v8 = vadd.f32 %v5445_v34, %v2877_v28  ;;  %v4458_v22 = vpop.f32.mrb[93].mxu1 }
0x1c52   :  { %v3739_v29 = vmul.f32 -1.442695, %v4679_v8 }
0x1c53   :  { %v2882_v30 = vpop.f32.mrb[94].mxu1 }
0x1c54   :  { %5076 = vpow2.f32 %v3739_v29  ;;  %v4681_v4 = vadd.f32 %v5449_v42, %v2882_v30  ;;  %v4461_v31 = vpop.f32.mrb[95].mxu1 }
0x1c56   :  { %v3740_v36 = vmul.f32 -1.442695, %v4681_v4 }
0x1c57   :  { %v2887_v37 = vpop.f32.mrb[98].mxu1 }
0x1c58   :  { %v4464_v40 = vpop.f32.mrb[99].mxu1  ;;  %5078 = vpow2.f32 %v3740_v36  ;;  %v2888_v32 = vadd.f32 %v2887_v37, %v5339_v59 }
0x1c5e   :  { %v5077_v43 = vpop.eup %5076 }
0x1c5f   :  { %v2931_v47 = vadd.f32 1.0, %v5077_v43 }
0x1c61   :  { %5080 = vrcp.f32 %v2931_v47 }
0x1c62   :  { %v5079_v50 = vpop.eup %5078 }
0x1c63   :  { %v2938_v51 = vadd.f32 1.0, %v5079_v50 }
0x1c65   :  { %5082 = vrcp.f32 %v2938_v51 }
0x1c6b   :  { %v5081_v57 = vpop.eup %5080 }
0x1c6c   :  { %v2941_v58 = vmul.f32 %v5081_v57, %v2873_v44 }
0x1c6e   :  { %v2942_v49 = vadd.f32 %v2941_v58, %v2888_v32 }
0x1c6f   :  { %v5083_v60 = vpop.eup %5082 }
0x1c70   :  { %5084 = vtanh.f32 %v2942_v49  ;;  %v2944_v61 = vsub.f32 1.0, %v5083_v60  ;;  %v2946_v0 = vmul.f32 %v5083_v60, %v6266_v55 }
0x1c7a   :  { %v5085_v62 = vpop.eup %5084 }
0x1c7b   :  { %v2945_v63 = vmul.f32 %v5085_v62, %v2944_v61 }
0x1c7d   :  { %v2947_v1 = vadd.f32 %v2946_v0, %v2945_v63 }
0x1c7f   :  { %2949 = vrot.lane.b32.xlu1 %v2947_v1, %s5204_s9 }
0x1cac   :  { %v2893_v52 = vpop.permute.xlu1 %2892 }
0x1cad   :  { %v2895_v39 = vadd.f32 %v2893_v52, %v5317_v33 }
0x1caf   :  { %v3737_v18 = vmul.f32 -1.442695, %v2895_v39 }
0x1cb0   :  { %v2904_v2 = vpop.permute.xlu0 %2903 }
0x1cb1   :  { %5086 = vpow2.f32 %v3737_v18  ;;  %v2906_v45 = vadd.f32 %v2904_v2, %v5323_v38 }
0x1cb3   :  { %v3738_v6 = vmul.f32 -1.442695, %v2906_v45 }
0x1cb4   :  { %v2915_v55 = vpop.permute.xlu1 %2914  ;;  %v2923_v8 = vpop.permute.xlu0 %2922 }
0x1cb5   :  { %5088 = vpow2.f32 %v3738_v6 }
0x1cbb   :  { %v5087_v19 = vpop.eup %5086 }
0x1cbc   :  { %v2899_v23 = vadd.f32 1.0, %v5087_v19 }
0x1cbe   :  { %5090 = vrcp.f32 %v2899_v23 }
0x1cbf   :  { %v5089_v24 = vpop.eup %5088 }
0x1cc0   :  { %v2910_v25 = vadd.f32 1.0, %v5089_v24 }
0x1cc2   :  { %5092 = vrcp.f32 %v2910_v25 }
0x1cc8   :  { %v5091_v3 = vpop.eup %5090 }
0x1cc9   :  { %v2917_v53 = vmul.f32 %v5091_v3, %v2915_v55 }
0x1ccb   :  { %v2918_v26 = vadd.f32 %v2917_v53, %v5333_v54 }
0x1ccc   :  { %v5093_v27 = vpop.eup %5092 }
0x1ccd   :  { %5094 = vtanh.f32 %v2918_v26  ;;  %v2920_v10 = vsub.f32 1.0, %v5093_v27  ;;  %v2925_v22 = vmul.f32 %v5093_v27, %v2923_v8 }
0x1cd7   :  { %v5095_v28 = vpop.eup %5094 }
0x1cd8   :  { %v2921_v29 = vmul.f32 %v5095_v28, %v2920_v10 }
0x1cda   :  { %v2926_v30 = vadd.f32 %v2925_v22, %v2921_v29 }
0x1cdc   :  { %2952 = vrot.lane.b32.xlu0 %v2926_v30, %s5205_s10 }
0x1cf1   :  { %v2950_v4 = vpop.permute.xlu1 %2949 }
0x1cf2   :  { %2954 = vrot.lane.b32.xlu1 %v2950_v4, %s5205_s10 }
0x1d4e   :  { %v2953_v31 = vpop.permute.xlu0 %2952 }
0x1d64   :  { %v6322_v36 = vpop.permute.xlu1 %2954 }
0x1d65   :  { %v4615_v37 = vpack.c.bf16 %v6322_v36, %v2953_v31 }
0x1d67   :  { %4616 = vmatpush3.bf16.msra.mxu0 %v4615_v37 }
0x1d6a   :  { %4470 = vmatmul.mubr.msk.f32.vlgmr.msra.gmra.mrb[106].mxu0 %vm451_vm4, %v6116_v5 }
0x1d6b   :  { %4472 = vmatprep.mubr.msk.f32.mxu0 %vm5172_vm2, %v5171_v13 }
0x1d6e   :  { %4473 = vmatmul.mubr.msk.f32.gmra.mrb[108].mxu0 %vm451_vm4, %v6125_v9 }
0x1d6f   :  { %4475 = vmatprep.mubr.msk.f32.mxu0 %vm5172_vm2, %v5171_v13 }
0x1d72   :  { %4476 = vmatmul.mubr.msk.f32.gmra.mrb[110].mxu0 %vm451_vm4, %v6134_v46 }
0x1d73   :  { %4478 = vmatprep.mubr.msk.f32.mxu0 %vm5172_vm2, %v5171_v13 }
0x1d76   :  { %4479 = vmatmul.mubr.msk.f32.gmra.mrb[112].mxu0 %vm451_vm4, %v6143_v11 }
0x1d77   :  { %4481 = vmatprep.mubr.msk.f32.mxu0 %vm5172_vm2, %v5171_v13 }
0x1d7a   :  { %4482 = vmatmul.mubr.msk.f32.gmra.mrb[114].mxu0 %vm451_vm4, %v6152_v12 }
0x1d7b   :  { %4484 = vmatprep.mubr.msk.f32.mxu0 %vm5172_vm2, %v5171_v13 }
0x1d7e   :  { %4485 = vmatmul.mubr.msk.f32.gmra.mrb[116].mxu0 %vm451_vm4, %v6161_v14 }
0x1d7f   :  { %4487 = vmatprep.mubr.msk.f32.mxu0 %vm5172_vm2, %v5171_v13 }
0x1d82   :  { %4488 = vmatmul.mubr.msk.f32.gmra.mrb[112].mxu0 %vm451_vm4, %v6170_v15 }
0x1d83   :  { %4490 = vmatprep.mubr.msk.f32.mxu0 %vm5172_vm2, %v5171_v13 }
0x1d86   :  { %4491 = vmatmul.mubr.msk.f32.gmra.mrb[114].mxu0 %vm451_vm4, %v6179_v16 }
0x1d87   :  { %4493 = vmatprep.mubr.msk.f32.mxu0 %vm5172_vm2, %v5171_v13 }
0x1d8a   :  { %4494 = vmatmul.mubr.msk.f32.gmra.mrb[118].mxu0 %vm451_vm4, %v6188_v17 }
0x1e3d   :  { %v3024_v40 = vpop.f32.mrb[106].mxu0 }
0x1e3e   :  { %v3025_v43 = vadd.f32 %v3024_v40, %v5319_v35  ;;  %v4471_v47 = vpop.f32.mrb[107].mxu0 }
0x1e40   :  { %3069 = vrot.lane.b32.xlu0 %v3025_v43, %s5206_s11 }
0x1e41   :  { %v3029_v50 = vpop.f32.mrb[108].mxu0 }
0x1e42   :  { %v3030_v51 = vadd.f32 %v3029_v50, %v5325_v41  ;;  %v4474_v44 = vpop.f32.mrb[109].mxu0 }
0x1e44   :  { %3080 = vrot.lane.b32.xlu1 %v3030_v51, %s5206_s11 }
0x1e45   :  { %v3034_v57 = vpop.f32.mrb[110].mxu0 }
0x1e46   :  { %v3035_v32 = vadd.f32 %v3034_v57, %v5329_v48  ;;  %v4477_v58 = vpop.f32.mrb[111].mxu0 }
0x1e48   :  { %3099 = vrot.lane.b32.xlu1 %v2926_v30, %s5173_s30  ;;  %3091 = vrot.lane.b32.xlu0 %v3035_v32, %s5206_s11  ;;  %s5207_s30 = smov 98  }
0x1e51   :  { %v3049_v49 = vpop.f32.mrb[116].mxu0 }
0x1e52   :  { %v4486_v35 = vpop.f32.mrb[117].mxu0  ;;  %v3050_v19 = vadd.f32 %v3049_v49, %v5452_v56 }
0x1e55   :  { %v3054_v60 = vpop.f32.mrb[112].mxu0 }
0x1e56   :  { %v4683_v61 = vadd.f32 %v5445_v34, %v3054_v60  ;;  %v4489_v62 = vpop.f32.mrb[113].mxu0  ;;  %v154_v60 = vld [vmem:[%s6477_s1 + $0x30] sm:$0xff] }
0x1e57   :  { %v5208_v62 = vmov 30  }
0x1e58   :  { %v3752_v63 = vmul.f32 -1.442695, %v4683_v61 }
0x1e59   :  { %v3059_v0 = vpop.f32.mrb[114].mxu0 }
0x1e5a   :  { %5096 = vpow2.f32 %v3752_v63  ;;  %v4685_v41 = vadd.f32 %v5449_v42, %v3059_v0  ;;  %v4492_v1 = vpop.f32.mrb[115].mxu0  ;;  %v3266_v63 = vld [vmem:[%s6477_s1 + $0x100] sm:$0xff]  ;;  %v3267_v0 = vld [vmem:[%s6477_s1 + $0x108] sm:$0xff] }
0x1e5b   :  { %v3366_v1 = vrot.slane %v3267_v0, 4 }
0x1e5c   :  { %v3753_v52 = vmul.f32 -1.442695, %v4685_v41  ;;  %v4620_v41 = vpack.c.bf16 %v3267_v0, %v3266_v63 }
0x1e5d   :  { %v3064_v39 = vpop.f32.mrb[118].mxu0 }
0x1e5e   :  { %v4495_v48 = vpop.f32.mrb[119].mxu0  ;;  %5098 = vpow2.f32 %v3753_v52  ;;  %v3065_v24 = vadd.f32 %v3064_v39, %v5339_v59  ;;  %4622 = vmatprep.subr.msk.bf16.mxu0 %vm4621_vm7, %v4620_v41 }
0x1e5f   :  { %4625 = vmatpush3.bf16.msk.msra.mxu0 %vm4621_vm7, %v4620_v41 }
0x1e60   :  { %4534 = vmatprep.subr.msk.mxu0 %vm280_vm1, %v3366_v1 }
0x1e64   :  { %v5097_v18 = vpop.eup %5096 }
0x1e65   :  { %v3108_v2 = vadd.f32 1.0, %v5097_v18 }
0x1e67   :  { %5100 = vrcp.f32 %v3108_v2 }
0x1e68   :  { %v5099_v45 = vpop.eup %5098 }
0x1e69   :  { %v3115_v6 = vadd.f32 1.0, %v5099_v45 }
0x1e6b   :  { %5102 = vrcp.f32 %v3115_v6 }
0x1e71   :  { %v5101_v23 = vpop.eup %5100 }
0x1e72   :  { %v3118_v25 = vmul.f32 %v5101_v23, %v3050_v19 }
0x1e74   :  { %v3119_v3 = vadd.f32 %v3118_v25, %v3065_v24 }
0x1e75   :  { %v5103_v55 = vpop.eup %5102 }
0x1e76   :  { %5104 = vtanh.f32 %v3119_v3  ;;  %v3121_v53 = vsub.f32 1.0, %v5103_v55  ;;  %v3123_v10 = vmul.f32 %v5103_v55, %v6322_v36 }
0x1e80   :  { %v5105_v26 = vpop.eup %5104 }
0x1e81   :  { %v3122_v27 = vmul.f32 %v5105_v26, %v3121_v53 }
0x1e83   :  { %v3124_v28 = vadd.f32 %v3123_v10, %v3122_v27 }
0x1e85   :  { %3126 = vrot.lane.b32.xlu0 %v3124_v28, %s5206_s11 }
0x1eb2   :  { %v3070_v8 = vpop.permute.xlu0 %3069 }
0x1eb3   :  { %v3072_v22 = vadd.f32 %v3070_v8, %v5317_v33 }
0x1eb5   :  { %v3750_v29 = vmul.f32 -1.442695, %v3072_v22 }
0x1eb6   :  { %v3081_v30 = vpop.permute.xlu1 %3080 }
0x1eb7   :  { %5106 = vpow2.f32 %v3750_v29  ;;  %v3083_v4 = vadd.f32 %v3081_v30, %v5323_v38 }
0x1eb9   :  { %v3751_v31 = vmul.f32 -1.442695, %v3083_v4 }
0x1eba   :  { %v3092_v36 = vpop.permute.xlu0 %3091  ;;  %v3100_v58 = vpop.permute.xlu1 %3099 }
0x1ebb   :  { %5108 = vpow2.f32 %v3751_v31 }
0x1ec1   :  { %v5107_v37 = vpop.eup %5106 }
0x1ec2   :  { %v3076_v40 = vadd.f32 1.0, %v5107_v37 }
0x1ec4   :  { %5110 = vrcp.f32 %v3076_v40 }
0x1ec5   :  { %v5109_v43 = vpop.eup %5108 }
0x1ec6   :  { %v3087_v47 = vadd.f32 1.0, %v5109_v43 }
0x1ec8   :  { %5112 = vrcp.f32 %v3087_v47 }
0x1ece   :  { %v5111_v50 = vpop.eup %5110 }
0x1ecf   :  { %v3094_v51 = vmul.f32 %v5111_v50, %v3092_v36 }
0x1ed1   :  { %v3095_v44 = vadd.f32 %v3094_v51, %v5333_v54  ;;  %v155_v54 = vld [vmem:[%s6477_s1 + $0x38] sm:$0xff] }
0x1ed2   :  { %v5113_v33 = vpop.eup %5112 }
0x1ed3   :  { %5114 = vtanh.f32 %v3095_v44  ;;  %v3097_v57 = vsub.f32 1.0, %v5113_v33  ;;  %v3102_v49 = vmul.f32 %v5113_v33, %v3100_v58 }
0x1edd   :  { %v5115_v32 = vpop.eup %5114 }
0x1ede   :  { %v3098_v38 = vmul.f32 %v5115_v32, %v3097_v57  ;;  %v3460_v57 = vlaneseq }
0x1ee0   :  { %v3103_v35 = vadd.f32 %v3102_v49, %v3098_v38  ;;  %v3461_v32 = vshrl.u32 %v3460_v57, 7  ;;  %v3268_v49 = vld [vmem:[%s6477_s1 + $0x110] sm:$0x3] }
0x1ee2   :  { %3129 = vrot.lane.b32.xlu1 %v3103_v35, %s5207_s30  ;;  %v3462_v58 = vsub.s32 0, %v3461_v32  ;;  %v3480_v38 = vsub.s32 1, %v3461_v32 }
0x1ee4   :  { %v3481_v63 = vrot.slane %v3268_v49, %v3480_v38 }
0x1ee6   :  { %158 = vperm.xlu1 %4801, %v154_v60  }
0x1eea   :  { %4803 = vset.pattern.permute.xlu1 %v5208_v62 }
0x1ef7   :  { %v3127_v61 = vpop.permute.xlu0 %3126 }
0x1ef8   :  { %3131 = vrot.lane.b32.xlu0 %v3127_v61, %s5207_s30 }
0x1efc   :  { %163 = vperm.xlu0 %4800, %v155_v54  }
0x1f00   :  { %4802 = vset.pattern.permute.xlu0 %v5208_v62 }
0x1f54   :  { %v3130_v52 = vpop.permute.xlu1 %3129 }
0x1f65   :  { %v159_v39 = vpop.permute.xlu1 %158 }
0x1f66   :  { %v240_v48 = vadd.f32 %v5533_v21, %v159_v39 }
0x1f68   :  { %3276 = vrot.lane.b32.xlu1 %v240_v48, %s5193_s4  ;;  %4531 = vmatprep.mubr.msk.f32.mxu0 %vm3278_vm8, %v240_v48 }
0x1f6a   :  { %v6392_v18 = vpop.permute.xlu0 %3131 }
0x1f6b   :  { %v4618_v2 = vpack.c.bf16 %v6392_v18, %v3130_v52 }
0x1f6d   :  { %4619 = vmatpush3.bf16.msra.mxu1 %v4618_v2 }
0x1f70   :  { %4501 = vmatmul.mubr.msk.f32.vlgmr.msra.gmra.mrb[100].mxu1 %vm451_vm4, %v6116_v5 }
0x1f71   :  { %4503 = vmatprep.mubr.msk.f32.mxu1 %vm5172_vm2, %v5171_v13 }
0x1f74   :  { %4504 = vmatmul.mubr.msk.f32.gmra.mrb[102].mxu1 %vm451_vm4, %v6125_v9 }
0x1f75   :  { %4506 = vmatprep.mubr.msk.f32.mxu1 %vm5172_vm2, %v5171_v13 }
0x1f78   :  { %4507 = vmatmul.mubr.msk.f32.gmra.mrb[104].mxu1 %vm451_vm4, %v6134_v46 }
0x1f79   :  { %4509 = vmatprep.mubr.msk.f32.mxu1 %vm5172_vm2, %v5171_v13 }
0x1f7b   :  { %v164_v21 = vpop.permute.xlu0 %163 }
0x1f7c   :  { %v245_v45 = vadd.f32 %v5531_v20, %v164_v21  ;;  %4510 = vmatmul.mubr.msk.f32.gmra.mrb[106].mxu1 %vm451_vm4, %v6143_v11 }
0x1f7d   :  { %4512 = vmatprep.mubr.msk.f32.mxu1 %vm5172_vm2, %v5171_v13 }
0x1f7e   :  { %3364 = vrot.lane.b32.xlu0 %v245_v45, %s5193_s4 }
0x1f80   :  { %4513 = vmatmul.mubr.msk.f32.gmra.mrb[108].mxu1 %vm451_vm4, %v6152_v12 }
0x1f81   :  { %4515 = vmatprep.mubr.msk.f32.mxu1 %vm5172_vm2, %v5171_v13 }
0x1f82   :  { %3450 = vrot.lane.b32.xlu0 %v3103_v35, %s5174_s5 }
0x1f84   :  { %4516 = vmatmul.mubr.msk.f32.gmra.mrb[110].mxu1 %vm451_vm4, %v6161_v14 }
0x1f85   :  { %4518 = vmatprep.mubr.msk.f32.mxu1 %vm5172_vm2, %v5171_v13 }
0x1f86   :  { %3453 = vperm.xlu0 %4802, %v3103_v35   ;;  %v3463_v35 = vrot.slane %v3268_v49, %v3462_v58 }
0x1f88   :  { %4519 = vmatmul.mubr.msk.f32.gmra.mrb[106].mxu1 %vm451_vm4, %v6170_v15 }
0x1f89   :  { %4521 = vmatprep.mubr.msk.f32.mxu1 %vm5172_vm2, %v5171_v13 }
0x1f8c   :  { %4522 = vmatmul.mubr.msk.f32.gmra.mrb[108].mxu1 %vm451_vm4, %v6179_v16 }
0x1f8d   :  { %4524 = vmatprep.mubr.msk.f32.mxu1 %vm5172_vm2, %v5171_v13 }
0x1f90   :  { %4525 = vmatmul.mubr.msk.f32.gmra.mrb[112].mxu1 %vm451_vm4, %v6188_v17 }
0x1fda   :  { %v3277_v20 = vpop.permute.xlu1 %3276 }
0x1fdb   :  { %4532 = vmatmul.mubr.msk.f32.vlgmr.msra.gmra.mrb[120].mxu0 %vm3278_vm8, %v3277_v20 }
0x1fdc   :  { %4536 = vmatprep.mubr.msk.f32.mxu0 %vm270_vm3, %v245_v45  ;;  %4535 = vmatpush3.msk.msra.mxu0 %vm280_vm1, %v3366_v1 }
0x1ff0   :  { %v3365_v5 = vpop.permute.xlu0 %3364 }
0x1ff1   :  { %4537 = vmatmul.mubr.msk.f32.vlgmr.msra.gmra.mrb[120].mxu0 %vm270_vm3, %v3365_v5 }
0x1ff4   :  { %v3451_v44 = vpop.permute.xlu0 %3450 }
0x2005   :  { %v3454_v60 = vpop.permute.xlu0 %3453 }
0x2006   :  { %v3464_v0 = vmul.f32 %v3463_v35, %v3454_v60 }
0x2043   :  { %v3201_v9 = vpop.f32.mrb[100].mxu1 }
0x2044   :  { %v4502_v46 = vpop.f32.mrb[101].mxu1 }
0x2047   :  { %v3205_v11 = vpop.f32.mrb[102].mxu1 }
0x2048   :  { %v4505_v12 = vpop.f32.mrb[103].mxu1 }
0x204b   :  { %v3209_v14 = vpop.f32.mrb[104].mxu1 }
0x204c   :  { %v4508_v15 = vpop.f32.mrb[105].mxu1 }
0x2057   :  { %v3223_v13 = vpop.f32.mrb[110].mxu1 }
0x2058   :  { %v4517_v16 = vpop.f32.mrb[111].mxu1  ;;  %v3224_v22 = vadd.f32 %v3223_v13, %v5452_v56  ;;  %v3765_v56 = vld [vmem:[%s6477_s1 + $0x118] ss:$0 sm:$0xff] }
0x205b   :  { %v3228_v6 = vpop.f32.mrb[106].mxu1 }
0x205c   :  { %v4687_v17 = vadd.f32 %v5445_v34, %v3228_v6  ;;  %v4520_v19 = vpop.f32.mrb[107].mxu1 }
0x205e   :  { %v3763_v23 = vmul.f32 -1.442695, %v4687_v17 }
0x205f   :  { %v3233_v24 = vpop.f32.mrb[108].mxu1 }
0x2060   :  { %5116 = vpow2.f32 %v3763_v23  ;;  %v4689_v25 = vadd.f32 %v5449_v42, %v3233_v24  ;;  %v4523_v3 = vpop.f32.mrb[109].mxu1 }
0x2061   :  { %v3514_v3 = vld [vmem:[%s6477_s1 + $0x120] sm:$0xff] }
0x2062   :  { %v3764_v55 = vmul.f32 -1.442695, %v4689_v25 }
0x2063   :  { %v3238_v53 = vpop.f32.mrb[112].mxu1 }
0x2064   :  { %v4526_v26 = vpop.f32.mrb[113].mxu1  ;;  %5118 = vpow2.f32 %v3764_v55  ;;  %v3239_v34 = vadd.f32 %v3238_v53, %v5339_v59 }
0x2065   :  { %v3516_v26 = vld [vmem:[%s6477_s1 + $0x128] sm:$0xff] }
0x206a   :  { %v5117_v27 = vpop.eup %5116 }
0x206b   :  { %v3246_v10 = vadd.f32 1.0, %v5117_v27 }
0x206d   :  { %5120 = vrcp.f32 %v3246_v10 }
0x206e   :  { %v5119_v28 = vpop.eup %5118 }
0x206f   :  { %v3253_v8 = vadd.f32 1.0, %v5119_v28 }
0x2071   :  { %5122 = vrcp.f32 %v3253_v8 }
0x2077   :  { %v5121_v29 = vpop.eup %5120 }
0x2078   :  { %v3256_v30 = vmul.f32 %v5121_v29, %v3224_v22 }
0x207a   :  { %v3257_v4 = vadd.f32 %v3256_v30, %v3239_v34 }
0x207b   :  { %v5123_v42 = vpop.eup %5122 }
0x207c   :  { %5124 = vtanh.f32 %v3257_v4  ;;  %v3259_v31 = vsub.f32 1.0, %v5123_v42  ;;  %v3261_v43 = vmul.f32 %v5123_v42, %v6392_v18 }
0x2086   :  { %v5125_v37 = vpop.eup %5124 }
0x2087   :  { %v3260_v40 = vmul.f32 %v5125_v37, %v3259_v31 }
0x2089   :  { %v3262_v47 = vadd.f32 %v3261_v43, %v3260_v40 }
0x208b   :  { %3264 = vrot.lane.b32.xlu1 %v3262_v47, %s5206_s11 }
0x20c4   :  { %v4538_v50 = vpop.f32.mrb[120].mxu0 }
0x20c5   :  { %v4690_v36 = vadd.f32 %v4538_v50, %v3765_v56  ;;  %v3439_v51 = vpop.f32.mrb[121].mxu0 }
0x20c6   :  { %v4691_v54 = vadd.f32 %v3765_v56, %v3439_v51 }
0x20c8   :  { %v3466_v52 = vadd.f32 %v4691_v54, %v3464_v0 }
0x20fd   :  { %v3265_v59 = vpop.permute.xlu1 %3264 }
0x20fe   :  { %3468 = vrot.lane.b32.xlu1 %v3265_v59, %s5174_s5 }
0x2102   :  { %3457 = vperm.xlu1 %4803, %v3451_v44  }
0x2106   :  { %3471 = vperm.xlu1 %4803, %v3265_v59  }
0x210a   :  { %4805 = vset.pattern.permute.xlu1 %v5170_v7 }
0x2170   :  { %v3469_v33 = vpop.permute.xlu1 %3468 }
0x2171   :  { %3475 = vperm.xlu0 %4802, %v3469_v33  }
0x2175   :  { %4804 = vset.pattern.permute.xlu0 %v5170_v7 }
0x2181   :  { %v3458_v61 = vpop.permute.xlu1 %3457 }
0x2182   :  { %v3465_v62 = vmul.f32 %v3463_v35, %v3458_v61 }
0x2184   :  { %v3467_v41 = vadd.f32 %v4690_v36, %v3465_v62 }
0x2185   :  { %v3472_v1 = vpop.permute.xlu1 %3471 }
0x2186   :  { %v3482_v39 = vmul.f32 %v3481_v63, %v3472_v1 }
0x2188   :  { %v3484_v7 = vadd.f32 %v3482_v39, %v3466_v52 }
0x218a   :  { %v3487_v48 = vsel %vm3486_vm9, %v3484_v7, 0.0 }
0x218b   :  { %3488 = vadd.xlane.f32.xlu1 %v3487_v48 }
0x21f0   :  { %v3476_v18 = vpop.permute.xlu0 %3475 }
0x21f1   :  { %v3483_v2 = vmul.f32 %v3481_v63, %v3476_v18 }
0x21f3   :  { %v3485_v21 = vadd.f32 %v3483_v2, %v3467_v41 }
0x21f5   :  { %v3490_v45 = vsel %vm3486_vm9, %v3485_v21, 0.0 }
0x21f6   :  { %3491 = vadd.xlane.f32.xlu0 %v3490_v45 }
0x2218   :  { %v3489_v20 = vpop.xlane.xlu1 %3488 }
0x2283   :  { %v3492_v5 = vpop.xlane.xlu0 %3491 }
0x2284   :  { %v3493_v9 = vadd.f32 %v3492_v5, %v3489_v20 }
0x2286   :  { %v3494_v46 = vmul.f32 0.0625, %v3493_v9 }
0x2288   :  { %3497 = vperm.xlu0 %4804, %v3494_v46  }
0x2307   :  { %v3498_v11 = vpop.permute.xlu0 %3497 }
0x2308   :  { %v3500_v12 = vsub.f32 %v3484_v7, %v3498_v11  ;;  %v3501_v14 = vsub.f32 %v3485_v21, %v3498_v11 }
0x230a   :  { %v3502_v15 = vmul.f32 %v3500_v12, %v3500_v12  ;;  %v3503_v13 = vmul.f32 %v3501_v14, %v3501_v14 }
0x230c   :  { %v3504_v16 = vsel %vm3486_vm9, %v3502_v15, 0.0  ;;  %v3507_v6 = vsel %vm3486_vm9, %v3503_v13, 0.0 }
0x230d   :  { %3505 = vadd.xlane.f32.xlu1 %v3504_v16 }
0x2311   :  { %3508 = vadd.xlane.f32.xlu1 %v3507_v6 }
0x239a   :  { %v3506_v17 = vpop.xlane.xlu1 %3505 }
0x239e   :  { %v3509_v19 = vpop.xlane.xlu1 %3508 }
0x239f   :  { %v3510_v23 = vadd.f32 %v3509_v19, %v3506_v17 }
0x23a1   :  { %v3511_v24 = vmul.f32 0.0625, %v3510_v23 }
0x23a3   :  { %v3512_v25 = vadd.f32 1e-05, %v3511_v24 }
0x23a5   :  { %5126 = vrsqrt.f32 %v3512_v25 }
0x23af   :  { %v5127_v55 = vpop.eup %5126 }
0x23b0   :  { %v3515_v53 = vmul.f32 %v5127_v55, %v3514_v3 }
0x23b2   :  { %3519 = vperm.xlu1 %4805, %v3515_v53  }
0x23b6   :  { %3526 = vperm.xlu1 %4805, %v3516_v26  }
0x2431   :  { %v3520_v27 = vpop.permute.xlu1 %3519 }
0x2432   :  { %v3522_v10 = vmul.f32 %v3520_v27, %v3500_v12  ;;  %v3523_v28 = vmul.f32 %v3520_v27, %v3501_v14 }
0x2435   :  { %v3527_v8 = vpop.permute.xlu1 %3526 }
0x2436   :  { %v3529_v22 = vadd.f32 %v3527_v8, %v3522_v10  ;;  %v3530_v29 = vadd.f32 %v3527_v8, %v3523_v28 }
0x2438   :  { %3531 = vst.msk [vmem:[#allocation2] sm:$0xff] %vm3486_vm9, %v3529_v22  ;;  %3532 = vst.msk [vmem:[#allocation2 + $0x8] sm:$0xff] %vm3486_vm9, %v3530_v29 }
0x2439   :  { %5157 = shalt.err (!%p5154_p4)
}
0x243a   :  { %s5158_s3 = scalar_lea.hbm %s6478_s2, 256 }
0x243b   :  { %p5159_p5 = scmp.ne.s32.totalorder %s6478_s2, %s5158_s3  ;;  %p5162_p6 = scmp.lt.u32.totalorder %s5158_s3, %s6478_s2 }
0x243d   :  { %p5164_p7 = pnand %p5162_p6, %p5159_p5 }
0x243f   :  { %5167 = shalt.err (!%p5164_p7)
}
0x2440   :  { %s5211_s10 = smov 128  }
0x2441   :  { %3544 = dma.vmem_to_hbm [thread:$0]  %s3539_s27, 256, %s6478_s2, [#allocation3], %s5211_s10, %s5211_s10, %s5185_s6  }
0x2442   :  { %5168 = dma.done.wait [#allocation3], 256  }
0x2443   :  { %5169 = vsyncadd [#allocation3], 4294967040 }
0x2444   :  { %3548 = vsyncpa [#allocation3], 1 }

</bundles_post_ra>
